<compile_context>
chip_gen: v7x
topology: tpu7x:2x2x1
jax: 0.10.0
libtpu: 0.0.40
codegen_flags: <defaults>
</compile_context>

<pallas_src>
import functools

import jax
import jax.numpy as jnp
from jax.experimental import pallas as pl
from jax.experimental.pallas import tpu as pltpu

_EPS = 1e-5


def _full_spec(shape):
    rank = len(shape)
    return pl.BlockSpec(shape, lambda i, _r=rank: (0,) * _r)


# ----------------------------------------------------------------------------
# Fused conv stage:  conv(kxk, VALID) + bias + ReLU + AvgPool2d(2) + BatchNorm2d
# ----------------------------------------------------------------------------
def _conv_stage_kernel(x_ref, l_ref, r_ref, b_ref, lp_ref, rp_ref, s_ref, o_ref,
                       *, ksize, wp, inv_count):
    # x_ref : (N*H, W*Cin)        lane-dense input slab
    # l_ref : (k, N*Ho, N*H)      row-window selectors (0/1)
    # r_ref : (k, W*Cin, Wo*Cout) shifted conv-weight operators
    # b_ref : (1, Wo*Cout)        bias tiled per output column
    # lp_ref: (N*Hp, N*Ho)        H-pooling operator (0.5 entries)
    # rp_ref: (Wo*Cout, Wp*Cout)  W-pooling operator (0.5 entries)
    # s_ref : (Wp*Cout, Cout)     per-channel lane-sum operator for BN
    x2 = x_ref[...]

    # ---- convolution: sum_kh  L[kh] @ X @ R[kh]  (all rank-2 MXU matmuls) ----
    y = None
    for kh in range(ksize):
        t = jnp.dot(l_ref[kh], x2, preferred_element_type=jnp.float32)
        term = jnp.dot(t, r_ref[kh], preferred_element_type=jnp.float32)
        y = term if y is None else y + term

    # ---- bias + ReLU ----
    y = jnp.maximum(y + b_ref[...], 0.0)                       # (N*Ho, Wo*Cout)

    # ---- 2x2 average pooling: rows via L_pool, lanes via R_pool (0.5*0.5) ----
    z = jnp.dot(jnp.dot(lp_ref[...], y, preferred_element_type=jnp.float32),
                rp_ref[...], preferred_element_type=jnp.float32)  # (N*Hp, Wp*Cout)

    # ---- BatchNorm2d (training stats, biased variance, affine=False) ----
    s = s_ref[...]
    mu_c = jnp.sum(jnp.dot(z, s, preferred_element_type=jnp.float32),
                   axis=0, keepdims=True) * inv_count          # (1, Cout)
    d = z - jnp.tile(mu_c, (1, wp))
    var_c = jnp.sum(jnp.dot(d * d, s, preferred_element_type=jnp.float32),
                    axis=0, keepdims=True) * inv_count         # (1, Cout)
    o_ref[...] = d * jnp.tile(jax.lax.rsqrt(var_c + _EPS), (1, wp))


def _conv_stage(x2, w_oihw, bias, n, h, wdt):
    """x2: (N*H, W*Cin) slab -> (N*Hp, Wp*Cout) slab after conv/ReLU/pool/BN."""
    f32 = jnp.float32
    cout, cin, k, _ = w_oihw.shape
    ho, wo = h - k + 1, wdt - k + 1
    hp, wp = ho // 2, wo // 2

    eye_n = jnp.eye(n, dtype=f32)

    # Row-window selectors L[kh]: picks rows h = ho + kh inside every image.
    hh = jnp.arange(h)
    hho = jnp.arange(ho)
    l_ops = jnp.stack([jnp.kron(eye_n, (hh[None, :] == hho[:, None] + kh).astype(f32))
                       for kh in range(k)])                    # (k, N*Ho, N*H)

    # Shifted-weight operators R[kh][(w,ci),(wo,co)] = w[co,ci,kh,w-wo].
    diff = jnp.arange(wdt)[:, None] - jnp.arange(wo)[None, :]  # (W, Wo)
    mask = ((diff >= 0) & (diff < k)).astype(f32)
    kw_sel = jnp.clip(diff, 0, k - 1)
    r_list = []
    for kh in range(k):
        wk = jnp.transpose(w_oihw[:, :, kh, :], (2, 1, 0)).astype(f32)  # (k, Cin, Cout)
        g = wk[kw_sel] * mask[:, :, None, None]                         # (W, Wo, Cin, Cout)
        r_list.append(jnp.transpose(g, (0, 2, 1, 3)).reshape(wdt * cin, wo * cout))
    r_ops = jnp.stack(r_list)                                  # (k, W*Cin, Wo*Cout)

    bias_row = jnp.tile(bias.astype(f32), wo).reshape(1, wo * cout)

    # Pooling operators (0.5 each; combined 0.25 = AvgPool2d(2)).
    a_h = (jnp.arange(ho)[None, :] // 2 == jnp.arange(hp)[:, None]).astype(f32)
    l_pool = 0.5 * jnp.kron(eye_n, a_h)                                    # (N*Hp, N*Ho)
    a_w = (jnp.arange(wo)[:, None] // 2 == jnp.arange(wp)[None, :]).astype(f32)
    r_pool = 0.5 * jnp.kron(a_w, jnp.eye(cout, dtype=f32))                 # (Wo*C, Wp*C)

    # Per-channel lane-sum operator for the BatchNorm reduction.
    s_ch = jnp.kron(jnp.ones((wp, 1), f32), jnp.eye(cout, dtype=f32))      # (Wp*C, C)

    inputs = (x2.astype(f32), l_ops, r_ops, bias_row, l_pool, r_pool, s_ch)
    out_shape = (n * hp, wp * cout)
    kern = functools.partial(_conv_stage_kernel, ksize=k, wp=wp,
                             inv_count=1.0 / float(n * hp * wp))
    y = pl.pallas_call(
        kern,
        grid=(1,),
        in_specs=[_full_spec(a.shape) for a in inputs],
        out_specs=_full_spec(out_shape),
        out_shape=jax.ShapeDtypeStruct(out_shape, f32),
        compiler_params=pltpu.CompilerParams(dimension_semantics=("arbitrary",)),
    )(*inputs)
    return y, hp, wp


# ----------------------------------------------------------------------------
# Fused FC head: fc1+ReLU+BN -> fc2+ReLU+BN -> fc3+ReLU+BN -> fc_out
# ----------------------------------------------------------------------------
def _fc_kernel(x_ref, w1_ref, b1_ref, w2_ref, b2_ref, w3_ref, b3_ref,
               w4_ref, b4_ref, o_ref):
    def lin(h, w_ref, b_ref):
        return jnp.dot(h, w_ref[...], preferred_element_type=jnp.float32) + b_ref[...]

    def relu_bn(h):
        h = jnp.maximum(h, 0.0)
        mu = jnp.mean(h, axis=0, keepdims=True)
        d = h - mu
        var = jnp.mean(d * d, axis=0, keepdims=True)           # biased variance
        return d * jax.lax.rsqrt(var + _EPS)

    h = relu_bn(lin(x_ref[...], w1_ref, b1_ref))               # (N, 120)
    h = relu_bn(lin(h, w2_ref, b2_ref))                        # (N, 84)
    h = relu_bn(lin(h, w3_ref, b3_ref))                        # (N, feat)
    o_ref[...] = lin(h, w4_ref, b4_ref)                        # (N, 1)


def _fc_head(flat, params, hsp, wsp):
    f32 = jnp.float32
    c2 = 16
    n_out1 = params["fc1_w"].shape[0]
    # Permute fc1 columns from PyTorch flatten order (c,h,w) to our (h,w,c)
    # order so no activation transpose is needed between conv and FC stages.
    w1 = params["fc1_w"].reshape(n_out1, c2, hsp, wsp).transpose(0, 2, 3, 1)
    w1 = jnp.transpose(w1.reshape(n_out1, -1)).astype(f32)      # (flat_dim, 120)
    b1 = params["fc1_b"].reshape(1, -1).astype(f32)
    w2m = jnp.transpose(params["fc2_w"]).astype(f32)            # (120, 84)
    b2 = params["fc2_b"].reshape(1, -1).astype(f32)
    w3m = jnp.transpose(params["fc3_w"]).astype(f32)            # (84, feat)
    b3 = params["fc3_b"].reshape(1, -1).astype(f32)
    w4m = jnp.transpose(params["fc_out_w"]).astype(f32)         # (feat, 1)
    b4 = params["fc_out_b"].reshape(1, -1).astype(f32)

    inputs = (flat.astype(f32), w1, b1, w2m, b2, w3m, b3, w4m, b4)
    n = flat.shape[0]
    out_shape = (n, 1)
    return pl.pallas_call(
        _fc_kernel,
        grid=(1,),
        in_specs=[_full_spec(a.shape) for a in inputs],
        out_specs=_full_spec(out_shape),
        out_shape=jax.ShapeDtypeStruct(out_shape, jnp.float32),
        compiler_params=pltpu.CompilerParams(dimension_semantics=("arbitrary",)),
    )(*inputs)


# ----------------------------------------------------------------------------
# Full forward
# ----------------------------------------------------------------------------
def forward(params, x_nchw):
    """Model_dsprites forward. x_nchw: (N, Cin, H, W) float32 -> (N, 1)."""
    n, cin, h, w = x_nchw.shape
    # NCHW -> lane-dense (N*H, W*Cin) slab (free reshape/transpose in XLA glue).
    x2 = jnp.transpose(x_nchw, (0, 2, 3, 1)).reshape(n * h, w * cin)

    y1, h1, w1 = _conv_stage(x2, params["conv1_w"], params["conv1_b"], n, h, w)
    y2, h2, w2 = _conv_stage(y1, params["conv2_w"], params["conv2_b"], n, h1, w1)

    flat = y2.reshape(n, h2 * w2 * 16)       # (h, w, c) feature order; fc1 cols permuted to match
    return _fc_head(flat, params, h2, w2)


# ----------------------------------------------------------------------------
# Deterministic synthetic parameters
# ----------------------------------------------------------------------------
def make_params(key, input_dim=(1, 32, 32), feat_size=84):
    cin, H, W = input_dim
    h1, w1 = (H - 4) // 2, (W - 4) // 2
    h2, w2 = (h1 - 4) // 2, (w1 - 4) // 2
    flat_dim = 16 * h2 * w2

    keys = jax.random.split(key, 12)

    def init(k, shape, scale=0.1):
        return (scale * jax.random.normal(k, shape)).astype(jnp.float32)

    return {
        "conv1_w": init(keys[0], (6, cin, 5, 5)),
        "conv1_b": init(keys[1], (6,)),
        "conv2_w": init(keys[2], (16, 6, 5, 5)),
        "conv2_b": init(keys[3], (16,)),
        "fc1_w": init(keys[4], (120, flat_dim)),
        "fc1_b": init(keys[5], (120,)),
        "fc2_w": init(keys[6], (84, 120)),
        "fc2_b": init(keys[7], (84,)),
        "fc3_w": init(keys[8], (feat_size, 84)),
        "fc3_b": init(keys[9], (feat_size,)),
        "fc_out_w": init(keys[10], (1, feat_size)),
        "fc_out_b": init(keys[11], (1,)),
    }


if __name__ == "__main__":
    N = 4
    input_dim = (1, 32, 32)          # small but consistent with the module
    feat_size = 84

    root = jax.random.PRNGKey(0)
    k_params, k_x = jax.random.split(root)
    params = make_params(k_params, input_dim=input_dim, feat_size=feat_size)
    x = jax.random.normal(k_x, (N, *input_dim), dtype=jnp.float32)

    out = jax.jit(forward)(params, x)
    out = jax.block_until_ready(out)

    assert out.shape == (N, 1), out.shape
    assert bool(jnp.all(jnp.isfinite(out)))
    print("KERNEL_OK")
</pallas_src>

<mosaic_0001>
module attributes {stable_mosaic.version = 11 : i64} {
  func.func @_conv_stage_kernel(%arg0: i32, %arg1: memref<128x32xf32, #tpu.memory_space<vmem>>, %arg2: memref<5x112x128xf32, #tpu.memory_space<vmem>>, %arg3: memref<5x32x168xf32, #tpu.memory_space<vmem>>, %arg4: memref<1x168xf32, #tpu.memory_space<vmem>>, %arg5: memref<56x112xf32, #tpu.memory_space<vmem>>, %arg6: memref<168x84xf32, #tpu.memory_space<vmem>>, %arg7: memref<84x6xf32, #tpu.memory_space<vmem>>, %arg8: memref<56x84xf32, #tpu.memory_space<vmem>>) attributes {dimension_semantics = [#tpu.dimension_semantics<arbitrary>], iteration_bounds = array<i64: 1>, scalar_prefetch = 0 : i64, scratch_operands = 0 : i64, tpu.core_type = #tpu.core_type<tc>, window_params = [{pipeline_mode = #tpu.pipeline_mode<synchronous>, transform_indices = @transform_0, window_bounds = array<i64: 128, 32>}, {pipeline_mode = #tpu.pipeline_mode<synchronous>, transform_indices = @transform_1, window_bounds = array<i64: 5, 112, 128>}, {pipeline_mode = #tpu.pipeline_mode<synchronous>, transform_indices = @transform_2, window_bounds = array<i64: 5, 32, 168>}, {pipeline_mode = #tpu.pipeline_mode<synchronous>, transform_indices = @transform_3, window_bounds = array<i64: 1, 168>}, {pipeline_mode = #tpu.pipeline_mode<synchronous>, transform_indices = @transform_4, window_bounds = array<i64: 56, 112>}, {pipeline_mode = #tpu.pipeline_mode<synchronous>, transform_indices = @transform_5, window_bounds = array<i64: 168, 84>}, {pipeline_mode = #tpu.pipeline_mode<synchronous>, transform_indices = @transform_6, window_bounds = array<i64: 84, 6>}, {pipeline_mode = #tpu.pipeline_mode<synchronous>, transform_indices = @transform_7, window_bounds = array<i64: 56, 84>}]} {
    %c0 = arith.constant 0 : index
    %c0_0 = arith.constant 0 : index
    %0 = vector.load %arg1[%c0, %c0_0] : memref<128x32xf32, #tpu.memory_space<vmem>>, vector<128x32xf32>
    %c0_1 = arith.constant 0 : index
    %c0_2 = arith.constant 0 : index
    %c0_3 = arith.constant 0 : index
    %1 = vector.load %arg2[%c0_1, %c0_2, %c0_3] : memref<5x112x128xf32, #tpu.memory_space<vmem>>, vector<1x112x128xf32>
    %2 = vector.shape_cast %1 : vector<1x112x128xf32> to vector<112x128xf32>
    %cst = arith.constant dense<0.000000e+00> : vector<112x32xf32>
    %3 = tpu.matmul %2, %0, %cst {dimension_numbers = #tpu.dot_dimension_numbers<[1], [0], [0], [1], [0, 0, 1, 1], [], []>} : vector<112x128xf32>, vector<128x32xf32>, vector<112x32xf32> -> vector<112x32xf32>
    %c0_4 = arith.constant 0 : index
    %c0_5 = arith.constant 0 : index
    %c0_6 = arith.constant 0 : index
    %4 = vector.load %arg3[%c0_4, %c0_5, %c0_6] : memref<5x32x168xf32, #tpu.memory_space<vmem>>, vector<1x32x168xf32>
    %5 = vector.shape_cast %4 : vector<1x32x168xf32> to vector<32x168xf32>
    %cst_7 = arith.constant dense<0.000000e+00> : vector<112x168xf32>
    %6 = tpu.matmul %3, %5, %cst_7 {dimension_numbers = #tpu.dot_dimension_numbers<[1], [0], [0], [1], [0, 0, 1, 1], [], []>} : vector<112x32xf32>, vector<32x168xf32>, vector<112x168xf32> -> vector<112x168xf32>
    %c1 = arith.constant 1 : index
    %c0_8 = arith.constant 0 : index
    %c0_9 = arith.constant 0 : index
    %7 = vector.load %arg2[%c1, %c0_8, %c0_9] : memref<5x112x128xf32, #tpu.memory_space<vmem>>, vector<1x112x128xf32>
    %8 = vector.shape_cast %7 : vector<1x112x128xf32> to vector<112x128xf32>
    %cst_10 = arith.constant dense<0.000000e+00> : vector<112x32xf32>
    %9 = tpu.matmul %8, %0, %cst_10 {dimension_numbers = #tpu.dot_dimension_numbers<[1], [0], [0], [1], [0, 0, 1, 1], [], []>} : vector<112x128xf32>, vector<128x32xf32>, vector<112x32xf32> -> vector<112x32xf32>
    %c1_11 = arith.constant 1 : index
    %c0_12 = arith.constant 0 : index
    %c0_13 = arith.constant 0 : index
    %10 = vector.load %arg3[%c1_11, %c0_12, %c0_13] : memref<5x32x168xf32, #tpu.memory_space<vmem>>, vector<1x32x168xf32>
    %11 = vector.shape_cast %10 : vector<1x32x168xf32> to vector<32x168xf32>
    %cst_14 = arith.constant dense<0.000000e+00> : vector<112x168xf32>
    %12 = tpu.matmul %9, %11, %cst_14 {dimension_numbers = #tpu.dot_dimension_numbers<[1], [0], [0], [1], [0, 0, 1, 1], [], []>} : vector<112x32xf32>, vector<32x168xf32>, vector<112x168xf32> -> vector<112x168xf32>
    %13 = arith.addf %6, %12 : vector<112x168xf32>
    %c2 = arith.constant 2 : index
    %c0_15 = arith.constant 0 : index
    %c0_16 = arith.constant 0 : index
    %14 = vector.load %arg2[%c2, %c0_15, %c0_16] : memref<5x112x128xf32, #tpu.memory_space<vmem>>, vector<1x112x128xf32>
    %15 = vector.shape_cast %14 : vector<1x112x128xf32> to vector<112x128xf32>
    %cst_17 = arith.constant dense<0.000000e+00> : vector<112x32xf32>
    %16 = tpu.matmul %15, %0, %cst_17 {dimension_numbers = #tpu.dot_dimension_numbers<[1], [0], [0], [1], [0, 0, 1, 1], [], []>} : vector<112x128xf32>, vector<128x32xf32>, vector<112x32xf32> -> vector<112x32xf32>
    %c2_18 = arith.constant 2 : index
    %c0_19 = arith.constant 0 : index
    %c0_20 = arith.constant 0 : index
    %17 = vector.load %arg3[%c2_18, %c0_19, %c0_20] : memref<5x32x168xf32, #tpu.memory_space<vmem>>, vector<1x32x168xf32>
    %18 = vector.shape_cast %17 : vector<1x32x168xf32> to vector<32x168xf32>
    %cst_21 = arith.constant dense<0.000000e+00> : vector<112x168xf32>
    %19 = tpu.matmul %16, %18, %cst_21 {dimension_numbers = #tpu.dot_dimension_numbers<[1], [0], [0], [1], [0, 0, 1, 1], [], []>} : vector<112x32xf32>, vector<32x168xf32>, vector<112x168xf32> -> vector<112x168xf32>
    %20 = arith.addf %13, %19 : vector<112x168xf32>
    %c3 = arith.constant 3 : index
    %c0_22 = arith.constant 0 : index
    %c0_23 = arith.constant 0 : index
    %21 = vector.load %arg2[%c3, %c0_22, %c0_23] : memref<5x112x128xf32, #tpu.memory_space<vmem>>, vector<1x112x128xf32>
    %22 = vector.shape_cast %21 : vector<1x112x128xf32> to vector<112x128xf32>
    %cst_24 = arith.constant dense<0.000000e+00> : vector<112x32xf32>
    %23 = tpu.matmul %22, %0, %cst_24 {dimension_numbers = #tpu.dot_dimension_numbers<[1], [0], [0], [1], [0, 0, 1, 1], [], []>} : vector<112x128xf32>, vector<128x32xf32>, vector<112x32xf32> -> vector<112x32xf32>
    %c3_25 = arith.constant 3 : index
    %c0_26 = arith.constant 0 : index
    %c0_27 = arith.constant 0 : index
    %24 = vector.load %arg3[%c3_25, %c0_26, %c0_27] : memref<5x32x168xf32, #tpu.memory_space<vmem>>, vector<1x32x168xf32>
    %25 = vector.shape_cast %24 : vector<1x32x168xf32> to vector<32x168xf32>
    %cst_28 = arith.constant dense<0.000000e+00> : vector<112x168xf32>
    %26 = tpu.matmul %23, %25, %cst_28 {dimension_numbers = #tpu.dot_dimension_numbers<[1], [0], [0], [1], [0, 0, 1, 1], [], []>} : vector<112x32xf32>, vector<32x168xf32>, vector<112x168xf32> -> vector<112x168xf32>
    %27 = arith.addf %20, %26 : vector<112x168xf32>
    %c4 = arith.constant 4 : index
    %c0_29 = arith.constant 0 : index
    %c0_30 = arith.constant 0 : index
    %28 = vector.load %arg2[%c4, %c0_29, %c0_30] : memref<5x112x128xf32, #tpu.memory_space<vmem>>, vector<1x112x128xf32>
    %29 = vector.shape_cast %28 : vector<1x112x128xf32> to vector<112x128xf32>
    %cst_31 = arith.constant dense<0.000000e+00> : vector<112x32xf32>
    %30 = tpu.matmul %29, %0, %cst_31 {dimension_numbers = #tpu.dot_dimension_numbers<[1], [0], [0], [1], [0, 0, 1, 1], [], []>} : vector<112x128xf32>, vector<128x32xf32>, vector<112x32xf32> -> vector<112x32xf32>
    %c4_32 = arith.constant 4 : index
    %c0_33 = arith.constant 0 : index
    %c0_34 = arith.constant 0 : index
    %31 = vector.load %arg3[%c4_32, %c0_33, %c0_34] : memref<5x32x168xf32, #tpu.memory_space<vmem>>, vector<1x32x168xf32>
    %32 = vector.shape_cast %31 : vector<1x32x168xf32> to vector<32x168xf32>
    %cst_35 = arith.constant dense<0.000000e+00> : vector<112x168xf32>
    %33 = tpu.matmul %30, %32, %cst_35 {dimension_numbers = #tpu.dot_dimension_numbers<[1], [0], [0], [1], [0, 0, 1, 1], [], []>} : vector<112x32xf32>, vector<32x168xf32>, vector<112x168xf32> -> vector<112x168xf32>
    %34 = arith.addf %27, %33 : vector<112x168xf32>
    %c0_36 = arith.constant 0 : index
    %c0_37 = arith.constant 0 : index
    %35 = vector.load %arg4[%c0_36, %c0_37] : memref<1x168xf32, #tpu.memory_space<vmem>>, vector<1x168xf32>
    %36 = vector.broadcast %35 : vector<1x168xf32> to vector<112x168xf32>
    %37 = arith.addf %34, %36 : vector<112x168xf32>
    %cst_38 = arith.constant 0.000000e+00 : f32
    %38 = vector.broadcast %cst_38 : f32 to vector<112x168xf32>
    %39 = arith.maximumf %37, %38 : vector<112x168xf32>
    %c0_39 = arith.constant 0 : index
    %c0_40 = arith.constant 0 : index
    %40 = vector.load %arg5[%c0_39, %c0_40] : memref<56x112xf32, #tpu.memory_space<vmem>>, vector<56x112xf32>
    %cst_41 = arith.constant dense<0.000000e+00> : vector<56x168xf32>
    %41 = tpu.matmul %40, %39, %cst_41 {dimension_numbers = #tpu.dot_dimension_numbers<[1], [0], [0], [1], [0, 0, 1, 1], [], []>} : vector<56x112xf32>, vector<112x168xf32>, vector<56x168xf32> -> vector<56x168xf32>
    %c0_42 = arith.constant 0 : index
    %c0_43 = arith.constant 0 : index
    %42 = vector.load %arg6[%c0_42, %c0_43] : memref<168x84xf32, #tpu.memory_space<vmem>>, vector<168x84xf32>
    %cst_44 = arith.constant dense<0.000000e+00> : vector<56x84xf32>
    %43 = tpu.matmul %41, %42, %cst_44 {dimension_numbers = #tpu.dot_dimension_numbers<[1], [0], [0], [1], [0, 0, 1, 1], [], []>} : vector<56x168xf32>, vector<168x84xf32>, vector<56x84xf32> -> vector<56x84xf32>
    %c0_45 = arith.constant 0 : index
    %c0_46 = arith.constant 0 : index
    %44 = vector.load %arg7[%c0_45, %c0_46] : memref<84x6xf32, #tpu.memory_space<vmem>>, vector<84x6xf32>
    %cst_47 = arith.constant dense<0.000000e+00> : vector<56x6xf32>
    %45 = tpu.matmul %43, %44, %cst_47 {dimension_numbers = #tpu.dot_dimension_numbers<[1], [0], [0], [1], [0, 0, 1, 1], [], []>} : vector<56x84xf32>, vector<84x6xf32>, vector<56x6xf32> -> vector<56x6xf32>
    %cst_48 = arith.constant dense<0.000000e+00> : vector<6xf32>
    %46 = vector.multi_reduction <add>, %45, %cst_48 [0] : vector<56x6xf32> to vector<6xf32>
    %47 = vector.shape_cast %46 : vector<6xf32> to vector<1x6xf32>
    %cst_49 = arith.constant 0.00127551018 : f32
    %48 = vector.broadcast %cst_49 : f32 to vector<1x6xf32>
    %49 = arith.mulf %47, %48 : vector<1x6xf32>
    %50 = tpu.concatenate %49, %49, %49, %49, %49, %49, %49, %49, %49, %49, %49, %49, %49, %49 in 1 : vector<1x6xf32>, vector<1x6xf32>, vector<1x6xf32>, vector<1x6xf32>, vector<1x6xf32>, vector<1x6xf32>, vector<1x6xf32>, vector<1x6xf32>, vector<1x6xf32>, vector<1x6xf32>, vector<1x6xf32>, vector<1x6xf32>, vector<1x6xf32>, vector<1x6xf32> -> vector<1x84xf32>
    %51 = vector.broadcast %50 : vector<1x84xf32> to vector<56x84xf32>
    %52 = arith.subf %43, %51 : vector<56x84xf32>
    %53 = arith.mulf %52, %52 : vector<56x84xf32>
    %cst_50 = arith.constant dense<0.000000e+00> : vector<56x6xf32>
    %54 = tpu.matmul %53, %44, %cst_50 {dimension_numbers = #tpu.dot_dimension_numbers<[1], [0], [0], [1], [0, 0, 1, 1], [], []>} : vector<56x84xf32>, vector<84x6xf32>, vector<56x6xf32> -> vector<56x6xf32>
    %cst_51 = arith.constant dense<0.000000e+00> : vector<6xf32>
    %55 = vector.multi_reduction <add>, %54, %cst_51 [0] : vector<56x6xf32> to vector<6xf32>
    %56 = vector.shape_cast %55 : vector<6xf32> to vector<1x6xf32>
    %cst_52 = arith.constant 0.00127551018 : f32
    %57 = vector.broadcast %cst_52 : f32 to vector<1x6xf32>
    %58 = arith.mulf %56, %57 : vector<1x6xf32>
    %cst_53 = arith.constant 9.99999974E-6 : f32
    %59 = vector.broadcast %cst_53 : f32 to vector<1x6xf32>
    %60 = arith.addf %58, %59 : vector<1x6xf32>
    %61 = math.rsqrt %60 : vector<1x6xf32>
    %62 = tpu.concatenate %61, %61, %61, %61, %61, %61, %61, %61, %61, %61, %61, %61, %61, %61 in 1 : vector<1x6xf32>, vector<1x6xf32>, vector<1x6xf32>, vector<1x6xf32>, vector<1x6xf32>, vector<1x6xf32>, vector<1x6xf32>, vector<1x6xf32>, vector<1x6xf32>, vector<1x6xf32>, vector<1x6xf32>, vector<1x6xf32>, vector<1x6xf32>, vector<1x6xf32> -> vector<1x84xf32>
    %63 = vector.broadcast %62 : vector<1x84xf32> to vector<56x84xf32>
    %64 = arith.mulf %52, %63 : vector<56x84xf32>
    %c0_54 = arith.constant 0 : index
    %c0_55 = arith.constant 0 : index
    %65 = vector.load %arg8[%c0_54, %c0_55] : memref<56x84xf32, #tpu.memory_space<vmem>>, vector<56x84xf32>
    tpu.vector_store %arg8[%c0_54, %c0_55], %64 {strides = array<i32>} : memref<56x84xf32, #tpu.memory_space<vmem>>, vector<56x84xf32>,
    return
  }
  func.func @transform_0(%arg0: i32) -> (i32, i32) {
    %c0_i32 = arith.constant 0 : i32
    %c0_i32_0 = arith.constant 0 : i32
    %c0_i32_1 = arith.constant 0 : i32
    return %c0_i32, %c0_i32_0 : i32, i32
  }
  func.func @transform_1(%arg0: i32) -> (i32, i32, i32) {
    %c0_i32 = arith.constant 0 : i32
    %c0_i32_0 = arith.constant 0 : i32
    %c0_i32_1 = arith.constant 0 : i32
    %c0_i32_2 = arith.constant 0 : i32
    return %c0_i32, %c0_i32_0, %c0_i32_1 : i32, i32, i32
  }
  func.func @transform_2(%arg0: i32) -> (i32, i32, i32) {
    %c0_i32 = arith.constant 0 : i32
    %c0_i32_0 = arith.constant 0 : i32
    %c0_i32_1 = arith.constant 0 : i32
    %c0_i32_2 = arith.constant 0 : i32
    return %c0_i32, %c0_i32_0, %c0_i32_1 : i32, i32, i32
  }
  func.func @transform_3(%arg0: i32) -> (i32, i32) {
    %c0_i32 = arith.constant 0 : i32
    %c0_i32_0 = arith.constant 0 : i32
    %c0_i32_1 = arith.constant 0 : i32
    return %c0_i32, %c0_i32_0 : i32, i32
  }
  func.func @transform_4(%arg0: i32) -> (i32, i32) {
    %c0_i32 = arith.constant 0 : i32
    %c0_i32_0 = arith.constant 0 : i32
    %c0_i32_1 = arith.constant 0 : i32
    return %c0_i32, %c0_i32_0 : i32, i32
  }
  func.func @transform_5(%arg0: i32) -> (i32, i32) {
    %c0_i32 = arith.constant 0 : i32
    %c0_i32_0 = arith.constant 0 : i32
    %c0_i32_1 = arith.constant 0 : i32
    return %c0_i32, %c0_i32_0 : i32, i32
  }
  func.func @transform_6(%arg0: i32) -> (i32, i32) {
    %c0_i32 = arith.constant 0 : i32
    %c0_i32_0 = arith.constant 0 : i32
    %c0_i32_1 = arith.constant 0 : i32
    return %c0_i32, %c0_i32_0 : i32, i32
  }
  func.func @transform_7(%arg0: i32) -> (i32, i32) {
    %c0_i32 = arith.constant 0 : i32
    %c0_i32_0 = arith.constant 0 : i32
    %c0_i32_1 = arith.constant 0 : i32
    return %c0_i32, %c0_i32_0 : i32, i32
  }
}

module attributes {stable_mosaic.version = 11 : i64} {
  func.func @_conv_stage_kernel(%arg0: i32, %arg1: memref<56x84xf32, #tpu.memory_space<vmem>>, %arg2: memref<5x40x56xf32, #tpu.memory_space<vmem>>, %arg3: memref<5x84x160xf32, #tpu.memory_space<vmem>>, %arg4: memref<1x160xf32, #tpu.memory_space<vmem>>, %arg5: memref<20x40xf32, #tpu.memory_space<vmem>>, %arg6: memref<160x80xf32, #tpu.memory_space<vmem>>, %arg7: memref<80x16xf32, #tpu.memory_space<vmem>>, %arg8: memref<20x80xf32, #tpu.memory_space<vmem>>) attributes {dimension_semantics = [#tpu.dimension_semantics<arbitrary>], iteration_bounds = array<i64: 1>, scalar_prefetch = 0 : i64, scratch_operands = 0 : i64, tpu.core_type = #tpu.core_type<tc>, window_params = [{pipeline_mode = #tpu.pipeline_mode<synchronous>, transform_indices = @transform_0, window_bounds = array<i64: 56, 84>}, {pipeline_mode = #tpu.pipeline_mode<synchronous>, transform_indices = @transform_1, window_bounds = array<i64: 5, 40, 56>}, {pipeline_mode = #tpu.pipeline_mode<synchronous>, transform_indices = @transform_2, window_bounds = array<i64: 5, 84, 160>}, {pipeline_mode = #tpu.pipeline_mode<synchronous>, transform_indices = @transform_3, window_bounds = array<i64: 1, 160>}, {pipeline_mode = #tpu.pipeline_mode<synchronous>, transform_indices = @transform_4, window_bounds = array<i64: 20, 40>}, {pipeline_mode = #tpu.pipeline_mode<synchronous>, transform_indices = @transform_5, window_bounds = array<i64: 160, 80>}, {pipeline_mode = #tpu.pipeline_mode<synchronous>, transform_indices = @transform_6, window_bounds = array<i64: 80, 16>}, {pipeline_mode = #tpu.pipeline_mode<synchronous>, transform_indices = @transform_7, window_bounds = array<i64: 20, 80>}]} {
    %c0 = arith.constant 0 : index
    %c0_0 = arith.constant 0 : index
    %0 = vector.load %arg1[%c0, %c0_0] : memref<56x84xf32, #tpu.memory_space<vmem>>, vector<56x84xf32>
    %c0_1 = arith.constant 0 : index
    %c0_2 = arith.constant 0 : index
    %c0_3 = arith.constant 0 : index
    %1 = vector.load %arg2[%c0_1, %c0_2, %c0_3] : memref<5x40x56xf32, #tpu.memory_space<vmem>>, vector<1x40x56xf32>
    %2 = vector.shape_cast %1 : vector<1x40x56xf32> to vector<40x56xf32>
    %cst = arith.constant dense<0.000000e+00> : vector<40x84xf32>
    %3 = tpu.matmul %2, %0, %cst {dimension_numbers = #tpu.dot_dimension_numbers<[1], [0], [0], [1], [0, 0, 1, 1], [], []>} : vector<40x56xf32>, vector<56x84xf32>, vector<40x84xf32> -> vector<40x84xf32>
    %c0_4 = arith.constant 0 : index
    %c0_5 = arith.constant 0 : index
    %c0_6 = arith.constant 0 : index
    %4 = vector.load %arg3[%c0_4, %c0_5, %c0_6] : memref<5x84x160xf32, #tpu.memory_space<vmem>>, vector<1x84x160xf32>
    %5 = vector.shape_cast %4 : vector<1x84x160xf32> to vector<84x160xf32>
    %cst_7 = arith.constant dense<0.000000e+00> : vector<40x160xf32>
    %6 = tpu.matmul %3, %5, %cst_7 {dimension_numbers = #tpu.dot_dimension_numbers<[1], [0], [0], [1], [0, 0, 1, 1], [], []>} : vector<40x84xf32>, vector<84x160xf32>, vector<40x160xf32> -> vector<40x160xf32>
    %c1 = arith.constant 1 : index
    %c0_8 = arith.constant 0 : index
    %c0_9 = arith.constant 0 : index
    %7 = vector.load %arg2[%c1, %c0_8, %c0_9] : memref<5x40x56xf32, #tpu.memory_space<vmem>>, vector<1x40x56xf32>
    %8 = vector.shape_cast %7 : vector<1x40x56xf32> to vector<40x56xf32>
    %cst_10 = arith.constant dense<0.000000e+00> : vector<40x84xf32>
    %9 = tpu.matmul %8, %0, %cst_10 {dimension_numbers = #tpu.dot_dimension_numbers<[1], [0], [0], [1], [0, 0, 1, 1], [], []>} : vector<40x56xf32>, vector<56x84xf32>, vector<40x84xf32> -> vector<40x84xf32>
    %c1_11 = arith.constant 1 : index
    %c0_12 = arith.constant 0 : index
    %c0_13 = arith.constant 0 : index
    %10 = vector.load %arg3[%c1_11, %c0_12, %c0_13] : memref<5x84x160xf32, #tpu.memory_space<vmem>>, vector<1x84x160xf32>
    %11 = vector.shape_cast %10 : vector<1x84x160xf32> to vector<84x160xf32>
    %cst_14 = arith.constant dense<0.000000e+00> : vector<40x160xf32>
    %12 = tpu.matmul %9, %11, %cst_14 {dimension_numbers = #tpu.dot_dimension_numbers<[1], [0], [0], [1], [0, 0, 1, 1], [], []>} : vector<40x84xf32>, vector<84x160xf32>, vector<40x160xf32> -> vector<40x160xf32>
    %13 = arith.addf %6, %12 : vector<40x160xf32>
    %c2 = arith.constant 2 : index
    %c0_15 = arith.constant 0 : index
    %c0_16 = arith.constant 0 : index
    %14 = vector.load %arg2[%c2, %c0_15, %c0_16] : memref<5x40x56xf32, #tpu.memory_space<vmem>>, vector<1x40x56xf32>
    %15 = vector.shape_cast %14 : vector<1x40x56xf32> to vector<40x56xf32>
    %cst_17 = arith.constant dense<0.000000e+00> : vector<40x84xf32>
    %16 = tpu.matmul %15, %0, %cst_17 {dimension_numbers = #tpu.dot_dimension_numbers<[1], [0], [0], [1], [0, 0, 1, 1], [], []>} : vector<40x56xf32>, vector<56x84xf32>, vector<40x84xf32> -> vector<40x84xf32>
    %c2_18 = arith.constant 2 : index
    %c0_19 = arith.constant 0 : index
    %c0_20 = arith.constant 0 : index
    %17 = vector.load %arg3[%c2_18, %c0_19, %c0_20] : memref<5x84x160xf32, #tpu.memory_space<vmem>>, vector<1x84x160xf32>
    %18 = vector.shape_cast %17 : vector<1x84x160xf32> to vector<84x160xf32>
    %cst_21 = arith.constant dense<0.000000e+00> : vector<40x160xf32>
    %19 = tpu.matmul %16, %18, %cst_21 {dimension_numbers = #tpu.dot_dimension_numbers<[1], [0], [0], [1], [0, 0, 1, 1], [], []>} : vector<40x84xf32>, vector<84x160xf32>, vector<40x160xf32> -> vector<40x160xf32>
    %20 = arith.addf %13, %19 : vector<40x160xf32>
    %c3 = arith.constant 3 : index
    %c0_22 = arith.constant 0 : index
    %c0_23 = arith.constant 0 : index
    %21 = vector.load %arg2[%c3, %c0_22, %c0_23] : memref<5x40x56xf32, #tpu.memory_space<vmem>>, vector<1x40x56xf32>
    %22 = vector.shape_cast %21 : vector<1x40x56xf32> to vector<40x56xf32>
    %cst_24 = arith.constant dense<0.000000e+00> : vector<40x84xf32>
    %23 = tpu.matmul %22, %0, %cst_24 {dimension_numbers = #tpu.dot_dimension_numbers<[1], [0], [0], [1], [0, 0, 1, 1], [], []>} : vector<40x56xf32>, vector<56x84xf32>, vector<40x84xf32> -> vector<40x84xf32>
    %c3_25 = arith.constant 3 : index
    %c0_26 = arith.constant 0 : index
    %c0_27 = arith.constant 0 : index
    %24 = vector.load %arg3[%c3_25, %c0_26, %c0_27] : memref<5x84x160xf32, #tpu.memory_space<vmem>>, vector<1x84x160xf32>
    %25 = vector.shape_cast %24 : vector<1x84x160xf32> to vector<84x160xf32>
    %cst_28 = arith.constant dense<0.000000e+00> : vector<40x160xf32>
    %26 = tpu.matmul %23, %25, %cst_28 {dimension_numbers = #tpu.dot_dimension_numbers<[1], [0], [0], [1], [0, 0, 1, 1], [], []>} : vector<40x84xf32>, vector<84x160xf32>, vector<40x160xf32> -> vector<40x160xf32>
    %27 = arith.addf %20, %26 : vector<40x160xf32>
    %c4 = arith.constant 4 : index
    %c0_29 = arith.constant 0 : index
    %c0_30 = arith.constant 0 : index
    %28 = vector.load %arg2[%c4, %c0_29, %c0_30] : memref<5x40x56xf32, #tpu.memory_space<vmem>>, vector<1x40x56xf32>
    %29 = vector.shape_cast %28 : vector<1x40x56xf32> to vector<40x56xf32>
    %cst_31 = arith.constant dense<0.000000e+00> : vector<40x84xf32>
    %30 = tpu.matmul %29, %0, %cst_31 {dimension_numbers = #tpu.dot_dimension_numbers<[1], [0], [0], [1], [0, 0, 1, 1], [], []>} : vector<40x56xf32>, vector<56x84xf32>, vector<40x84xf32> -> vector<40x84xf32>
    %c4_32 = arith.constant 4 : index
    %c0_33 = arith.constant 0 : index
    %c0_34 = arith.constant 0 : index
    %31 = vector.load %arg3[%c4_32, %c0_33, %c0_34] : memref<5x84x160xf32, #tpu.memory_space<vmem>>, vector<1x84x160xf32>
    %32 = vector.shape_cast %31 : vector<1x84x160xf32> to vector<84x160xf32>
    %cst_35 = arith.constant dense<0.000000e+00> : vector<40x160xf32>
    %33 = tpu.matmul %30, %32, %cst_35 {dimension_numbers = #tpu.dot_dimension_numbers<[1], [0], [0], [1], [0, 0, 1, 1], [], []>} : vector<40x84xf32>, vector<84x160xf32>, vector<40x160xf32> -> vector<40x160xf32>
    %34 = arith.addf %27, %33 : vector<40x160xf32>
    %c0_36 = arith.constant 0 : index
    %c0_37 = arith.constant 0 : index
    %35 = vector.load %arg4[%c0_36, %c0_37] : memref<1x160xf32, #tpu.memory_space<vmem>>, vector<1x160xf32>
    %36 = vector.broadcast %35 : vector<1x160xf32> to vector<40x160xf32>
    %37 = arith.addf %34, %36 : vector<40x160xf32>
    %cst_38 = arith.constant 0.000000e+00 : f32
    %38 = vector.broadcast %cst_38 : f32 to vector<40x160xf32>
    %39 = arith.maximumf %37, %38 : vector<40x160xf32>
    %c0_39 = arith.constant 0 : index
    %c0_40 = arith.constant 0 : index
    %40 = vector.load %arg5[%c0_39, %c0_40] : memref<20x40xf32, #tpu.memory_space<vmem>>, vector<20x40xf32>
    %cst_41 = arith.constant dense<0.000000e+00> : vector<20x160xf32>
    %41 = tpu.matmul %40, %39, %cst_41 {dimension_numbers = #tpu.dot_dimension_numbers<[1], [0], [0], [1], [0, 0, 1, 1], [], []>} : vector<20x40xf32>, vector<40x160xf32>, vector<20x160xf32> -> vector<20x160xf32>
    %c0_42 = arith.constant 0 : index
    %c0_43 = arith.constant 0 : index
    %42 = vector.load %arg6[%c0_42, %c0_43] : memref<160x80xf32, #tpu.memory_space<vmem>>, vector<160x80xf32>
    %cst_44 = arith.constant dense<0.000000e+00> : vector<20x80xf32>
    %43 = tpu.matmul %41, %42, %cst_44 {dimension_numbers = #tpu.dot_dimension_numbers<[1], [0], [0], [1], [0, 0, 1, 1], [], []>} : vector<20x160xf32>, vector<160x80xf32>, vector<20x80xf32> -> vector<20x80xf32>
    %c0_45 = arith.constant 0 : index
    %c0_46 = arith.constant 0 : index
    %44 = vector.load %arg7[%c0_45, %c0_46] : memref<80x16xf32, #tpu.memory_space<vmem>>, vector<80x16xf32>
    %cst_47 = arith.constant dense<0.000000e+00> : vector<20x16xf32>
    %45 = tpu.matmul %43, %44, %cst_47 {dimension_numbers = #tpu.dot_dimension_numbers<[1], [0], [0], [1], [0, 0, 1, 1], [], []>} : vector<20x80xf32>, vector<80x16xf32>, vector<20x16xf32> -> vector<20x16xf32>
    %cst_48 = arith.constant dense<0.000000e+00> : vector<16xf32>
    %46 = vector.multi_reduction <add>, %45, %cst_48 [0] : vector<20x16xf32> to vector<16xf32>
    %47 = vector.shape_cast %46 : vector<16xf32> to vector<1x16xf32>
    %cst_49 = arith.constant 0.00999999977 : f32
    %48 = vector.broadcast %cst_49 : f32 to vector<1x16xf32>
    %49 = arith.mulf %47, %48 : vector<1x16xf32>
    %50 = tpu.concatenate %49, %49, %49, %49, %49 in 1 : vector<1x16xf32>, vector<1x16xf32>, vector<1x16xf32>, vector<1x16xf32>, vector<1x16xf32> -> vector<1x80xf32>
    %51 = vector.broadcast %50 : vector<1x80xf32> to vector<20x80xf32>
    %52 = arith.subf %43, %51 : vector<20x80xf32>
    %53 = arith.mulf %52, %52 : vector<20x80xf32>
    %cst_50 = arith.constant dense<0.000000e+00> : vector<20x16xf32>
    %54 = tpu.matmul %53, %44, %cst_50 {dimension_numbers = #tpu.dot_dimension_numbers<[1], [0], [0], [1], [0, 0, 1, 1], [], []>} : vector<20x80xf32>, vector<80x16xf32>, vector<20x16xf32> -> vector<20x16xf32>
    %cst_51 = arith.constant dense<0.000000e+00> : vector<16xf32>
    %55 = vector.multi_reduction <add>, %54, %cst_51 [0] : vector<20x16xf32> to vector<16xf32>
    %56 = vector.shape_cast %55 : vector<16xf32> to vector<1x16xf32>
    %cst_52 = arith.constant 0.00999999977 : f32
    %57 = vector.broadcast %cst_52 : f32 to vector<1x16xf32>
    %58 = arith.mulf %56, %57 : vector<1x16xf32>
    %cst_53 = arith.constant 9.99999974E-6 : f32
    %59 = vector.broadcast %cst_53 : f32 to vector<1x16xf32>
    %60 = arith.addf %58, %59 : vector<1x16xf32>
    %61 = math.rsqrt %60 : vector<1x16xf32>
    %62 = tpu.concatenate %61, %61, %61, %61, %61 in 1 : vector<1x16xf32>, vector<1x16xf32>, vector<1x16xf32>, vector<1x16xf32>, vector<1x16xf32> -> vector<1x80xf32>
    %63 = vector.broadcast %62 : vector<1x80xf32> to vector<20x80xf32>
    %64 = arith.mulf %52, %63 : vector<20x80xf32>
    %c0_54 = arith.constant 0 : index
    %c0_55 = arith.constant 0 : index
    %65 = vector.load %arg8[%c0_54, %c0_55] : memref<20x80xf32, #tpu.memory_space<vmem>>, vector<20x80xf32>
    tpu.vector_store %arg8[%c0_54, %c0_55], %64 {strides = array<i32>} : memref<20x80xf32, #tpu.memory_space<vmem>>, vector<20x80xf32>,
    return
  }
  func.func @transform_0(%arg0: i32) -> (i32, i32) {
    %c0_i32 = arith.constant 0 : i32
    %c0_i32_0 = arith.constant 0 : i32
    %c0_i32_1 = arith.constant 0 : i32
    return %c0_i32, %c0_i32_0 : i32, i32
  }
  func.func @transform_1(%arg0: i32) -> (i32, i32, i32) {
    %c0_i32 = arith.constant 0 : i32
    %c0_i32_0 = arith.constant 0 : i32
    %c0_i32_1 = arith.constant 0 : i32
    %c0_i32_2 = arith.constant 0 : i32
    return %c0_i32, %c0_i32_0, %c0_i32_1 : i32, i32, i32
  }
  func.func @transform_2(%arg0: i32) -> (i32, i32, i32) {
    %c0_i32 = arith.constant 0 : i32
    %c0_i32_0 = arith.constant 0 : i32
    %c0_i32_1 = arith.constant 0 : i32
    %c0_i32_2 = arith.constant 0 : i32
    return %c0_i32, %c0_i32_0, %c0_i32_1 : i32, i32, i32
  }
  func.func @transform_3(%arg0: i32) -> (i32, i32) {
    %c0_i32 = arith.constant 0 : i32
    %c0_i32_0 = arith.constant 0 : i32
    %c0_i32_1 = arith.constant 0 : i32
    return %c0_i32, %c0_i32_0 : i32, i32
  }
  func.func @transform_4(%arg0: i32) -> (i32, i32) {
    %c0_i32 = arith.constant 0 : i32
    %c0_i32_0 = arith.constant 0 : i32
    %c0_i32_1 = arith.constant 0 : i32
    return %c0_i32, %c0_i32_0 : i32, i32
  }
  func.func @transform_5(%arg0: i32) -> (i32, i32) {
    %c0_i32 = arith.constant 0 : i32
    %c0_i32_0 = arith.constant 0 : i32
    %c0_i32_1 = arith.constant 0 : i32
    return %c0_i32, %c0_i32_0 : i32, i32
  }
  func.func @transform_6(%arg0: i32) -> (i32, i32) {
    %c0_i32 = arith.constant 0 : i32
    %c0_i32_0 = arith.constant 0 : i32
    %c0_i32_1 = arith.constant 0 : i32
    return %c0_i32, %c0_i32_0 : i32, i32
  }
  func.func @transform_7(%arg0: i32) -> (i32, i32) {
    %c0_i32 = arith.constant 0 : i32
    %c0_i32_0 = arith.constant 0 : i32
    %c0_i32_1 = arith.constant 0 : i32
    return %c0_i32, %c0_i32_0 : i32, i32
  }
}

module attributes {stable_mosaic.version = 11 : i64} {
  func.func @_fc_kernel(%arg0: i32, %arg1: memref<4x400xf32, #tpu.memory_space<vmem>>, %arg2: memref<400x120xf32, #tpu.memory_space<vmem>>, %arg3: memref<1x120xf32, #tpu.memory_space<vmem>>, %arg4: memref<120x84xf32, #tpu.memory_space<vmem>>, %arg5: memref<1x84xf32, #tpu.memory_space<vmem>>, %arg6: memref<84x84xf32, #tpu.memory_space<vmem>>, %arg7: memref<1x84xf32, #tpu.memory_space<vmem>>, %arg8: memref<84x1xf32, #tpu.memory_space<vmem>>, %arg9: memref<1x1xf32, #tpu.memory_space<vmem>>, %arg10: memref<4x1xf32, #tpu.memory_space<vmem>>) attributes {dimension_semantics = [#tpu.dimension_semantics<arbitrary>], iteration_bounds = array<i64: 1>, scalar_prefetch = 0 : i64, scratch_operands = 0 : i64, tpu.core_type = #tpu.core_type<tc>, window_params = [{pipeline_mode = #tpu.pipeline_mode<synchronous>, transform_indices = @transform_0, window_bounds = array<i64: 4, 400>}, {pipeline_mode = #tpu.pipeline_mode<synchronous>, transform_indices = @transform_1, window_bounds = array<i64: 400, 120>}, {pipeline_mode = #tpu.pipeline_mode<synchronous>, transform_indices = @transform_2, window_bounds = array<i64: 1, 120>}, {pipeline_mode = #tpu.pipeline_mode<synchronous>, transform_indices = @transform_3, window_bounds = array<i64: 120, 84>}, {pipeline_mode = #tpu.pipeline_mode<synchronous>, transform_indices = @transform_4, window_bounds = array<i64: 1, 84>}, {pipeline_mode = #tpu.pipeline_mode<synchronous>, transform_indices = @transform_5, window_bounds = array<i64: 84, 84>}, {pipeline_mode = #tpu.pipeline_mode<synchronous>, transform_indices = @transform_6, window_bounds = array<i64: 1, 84>}, {pipeline_mode = #tpu.pipeline_mode<synchronous>, transform_indices = @transform_7, window_bounds = array<i64: 84, 1>}, {pipeline_mode = #tpu.pipeline_mode<synchronous>, transform_indices = @transform_8, window_bounds = array<i64: 1, 1>}, {pipeline_mode = #tpu.pipeline_mode<synchronous>, transform_indices = @transform_9, window_bounds = array<i64: 4, 1>}]} {
    %c0 = arith.constant 0 : index
    %c0_0 = arith.constant 0 : index
    %0 = vector.load %arg1[%c0, %c0_0] : memref<4x400xf32, #tpu.memory_space<vmem>>, vector<4x400xf32>
    %c0_1 = arith.constant 0 : index
    %c0_2 = arith.constant 0 : index
    %1 = vector.load %arg2[%c0_1, %c0_2] : memref<400x120xf32, #tpu.memory_space<vmem>>, vector<400x120xf32>
    %cst = arith.constant dense<0.000000e+00> : vector<4x120xf32>
    %2 = tpu.matmul %0, %1, %cst {dimension_numbers = #tpu.dot_dimension_numbers<[1], [0], [0], [1], [0, 0, 1, 1], [], []>} : vector<4x400xf32>, vector<400x120xf32>, vector<4x120xf32> -> vector<4x120xf32>
    %c0_3 = arith.constant 0 : index
    %c0_4 = arith.constant 0 : index
    %3 = vector.load %arg3[%c0_3, %c0_4] : memref<1x120xf32, #tpu.memory_space<vmem>>, vector<1x120xf32>
    %4 = vector.broadcast %3 : vector<1x120xf32> to vector<4x120xf32>
    %5 = arith.addf %2, %4 : vector<4x120xf32>
    %cst_5 = arith.constant 0.000000e+00 : f32
    %6 = vector.broadcast %cst_5 : f32 to vector<4x120xf32>
    %7 = arith.maximumf %5, %6 : vector<4x120xf32>
    %cst_6 = arith.constant dense<0.000000e+00> : vector<120xf32>
    %8 = vector.multi_reduction <add>, %7, %cst_6 [0] : vector<4x120xf32> to vector<120xf32>
    %9 = vector.shape_cast %8 : vector<120xf32> to vector<1x120xf32>
    %cst_7 = arith.constant 4.000000e+00 : f32
    %10 = vector.broadcast %cst_7 : f32 to vector<1x120xf32>
    %11 = arith.divf %9, %10 : vector<1x120xf32>
    %12 = vector.broadcast %11 : vector<1x120xf32> to vector<4x120xf32>
    %13 = arith.subf %7, %12 : vector<4x120xf32>
    %14 = arith.mulf %13, %13 : vector<4x120xf32>
    %cst_8 = arith.constant dense<0.000000e+00> : vector<120xf32>
    %15 = vector.multi_reduction <add>, %14, %cst_8 [0] : vector<4x120xf32> to vector<120xf32>
    %16 = vector.shape_cast %15 : vector<120xf32> to vector<1x120xf32>
    %cst_9 = arith.constant 4.000000e+00 : f32
    %17 = vector.broadcast %cst_9 : f32 to vector<1x120xf32>
    %18 = arith.divf %16, %17 : vector<1x120xf32>
    %cst_10 = arith.constant 9.99999974E-6 : f32
    %19 = vector.broadcast %cst_10 : f32 to vector<1x120xf32>
    %20 = arith.addf %18, %19 : vector<1x120xf32>
    %21 = math.rsqrt %20 : vector<1x120xf32>
    %22 = vector.broadcast %21 : vector<1x120xf32> to vector<4x120xf32>
    %23 = arith.mulf %13, %22 : vector<4x120xf32>
    %c0_11 = arith.constant 0 : index
    %c0_12 = arith.constant 0 : index
    %24 = vector.load %arg4[%c0_11, %c0_12] : memref<120x84xf32, #tpu.memory_space<vmem>>, vector<120x84xf32>
    %cst_13 = arith.constant dense<0.000000e+00> : vector<4x84xf32>
    %25 = tpu.matmul %23, %24, %cst_13 {dimension_numbers = #tpu.dot_dimension_numbers<[1], [0], [0], [1], [0, 0, 1, 1], [], []>} : vector<4x120xf32>, vector<120x84xf32>, vector<4x84xf32> -> vector<4x84xf32>
    %c0_14 = arith.constant 0 : index
    %c0_15 = arith.constant 0 : index
    %26 = vector.load %arg5[%c0_14, %c0_15] : memref<1x84xf32, #tpu.memory_space<vmem>>, vector<1x84xf32>
    %27 = vector.broadcast %26 : vector<1x84xf32> to vector<4x84xf32>
    %28 = arith.addf %25, %27 : vector<4x84xf32>
    %cst_16 = arith.constant 0.000000e+00 : f32
    %29 = vector.broadcast %cst_16 : f32 to vector<4x84xf32>
    %30 = arith.maximumf %28, %29 : vector<4x84xf32>
    %cst_17 = arith.constant dense<0.000000e+00> : vector<84xf32>
    %31 = vector.multi_reduction <add>, %30, %cst_17 [0] : vector<4x84xf32> to vector<84xf32>
    %32 = vector.shape_cast %31 : vector<84xf32> to vector<1x84xf32>
    %cst_18 = arith.constant 4.000000e+00 : f32
    %33 = vector.broadcast %cst_18 : f32 to vector<1x84xf32>
    %34 = arith.divf %32, %33 : vector<1x84xf32>
    %35 = vector.broadcast %34 : vector<1x84xf32> to vector<4x84xf32>
    %36 = arith.subf %30, %35 : vector<4x84xf32>
    %37 = arith.mulf %36, %36 : vector<4x84xf32>
    %cst_19 = arith.constant dense<0.000000e+00> : vector<84xf32>
    %38 = vector.multi_reduction <add>, %37, %cst_19 [0] : vector<4x84xf32> to vector<84xf32>
    %39 = vector.shape_cast %38 : vector<84xf32> to vector<1x84xf32>
    %cst_20 = arith.constant 4.000000e+00 : f32
    %40 = vector.broadcast %cst_20 : f32 to vector<1x84xf32>
    %41 = arith.divf %39, %40 : vector<1x84xf32>
    %cst_21 = arith.constant 9.99999974E-6 : f32
    %42 = vector.broadcast %cst_21 : f32 to vector<1x84xf32>
    %43 = arith.addf %41, %42 : vector<1x84xf32>
    %44 = math.rsqrt %43 : vector<1x84xf32>
    %45 = vector.broadcast %44 : vector<1x84xf32> to vector<4x84xf32>
    %46 = arith.mulf %36, %45 : vector<4x84xf32>
    %c0_22 = arith.constant 0 : index
    %c0_23 = arith.constant 0 : index
    %47 = vector.load %arg6[%c0_22, %c0_23] : memref<84x84xf32, #tpu.memory_space<vmem>>, vector<84x84xf32>
    %cst_24 = arith.constant dense<0.000000e+00> : vector<4x84xf32>
    %48 = tpu.matmul %46, %47, %cst_24 {dimension_numbers = #tpu.dot_dimension_numbers<[1], [0], [0], [1], [0, 0, 1, 1], [], []>} : vector<4x84xf32>, vector<84x84xf32>, vector<4x84xf32> -> vector<4x84xf32>
    %c0_25 = arith.constant 0 : index
    %c0_26 = arith.constant 0 : index
    %49 = vector.load %arg7[%c0_25, %c0_26] : memref<1x84xf32, #tpu.memory_space<vmem>>, vector<1x84xf32>
    %50 = vector.broadcast %49 : vector<1x84xf32> to vector<4x84xf32>
    %51 = arith.addf %48, %50 : vector<4x84xf32>
    %cst_27 = arith.constant 0.000000e+00 : f32
    %52 = vector.broadcast %cst_27 : f32 to vector<4x84xf32>
    %53 = arith.maximumf %51, %52 : vector<4x84xf32>
    %cst_28 = arith.constant dense<0.000000e+00> : vector<84xf32>
    %54 = vector.multi_reduction <add>, %53, %cst_28 [0] : vector<4x84xf32> to vector<84xf32>
    %55 = vector.shape_cast %54 : vector<84xf32> to vector<1x84xf32>
    %cst_29 = arith.constant 4.000000e+00 : f32
    %56 = vector.broadcast %cst_29 : f32 to vector<1x84xf32>
    %57 = arith.divf %55, %56 : vector<1x84xf32>
    %58 = vector.broadcast %57 : vector<1x84xf32> to vector<4x84xf32>
    %59 = arith.subf %53, %58 : vector<4x84xf32>
    %60 = arith.mulf %59, %59 : vector<4x84xf32>
    %cst_30 = arith.constant dense<0.000000e+00> : vector<84xf32>
    %61 = vector.multi_reduction <add>, %60, %cst_30 [0] : vector<4x84xf32> to vector<84xf32>
    %62 = vector.shape_cast %61 : vector<84xf32> to vector<1x84xf32>
    %cst_31 = arith.constant 4.000000e+00 : f32
    %63 = vector.broadcast %cst_31 : f32 to vector<1x84xf32>
    %64 = arith.divf %62, %63 : vector<1x84xf32>
    %cst_32 = arith.constant 9.99999974E-6 : f32
    %65 = vector.broadcast %cst_32 : f32 to vector<1x84xf32>
    %66 = arith.addf %64, %65 : vector<1x84xf32>
    %67 = math.rsqrt %66 : vector<1x84xf32>
    %68 = vector.broadcast %67 : vector<1x84xf32> to vector<4x84xf32>
    %69 = arith.mulf %59, %68 : vector<4x84xf32>
    %c0_33 = arith.constant 0 : index
    %c0_34 = arith.constant 0 : index
    %70 = vector.load %arg8[%c0_33, %c0_34] : memref<84x1xf32, #tpu.memory_space<vmem>>, vector<84x1xf32>
    %cst_35 = arith.constant dense<0.000000e+00> : vector<4x1xf32>
    %71 = tpu.matmul %69, %70, %cst_35 {dimension_numbers = #tpu.dot_dimension_numbers<[1], [0], [0], [1], [0, 0, 1, 1], [], []>} : vector<4x84xf32>, vector<84x1xf32>, vector<4x1xf32> -> vector<4x1xf32>
    %c0_36 = arith.constant 0 : index
    %c0_37 = arith.constant 0 : index
    %72 = vector.load %arg9[%c0_36, %c0_37] : memref<1x1xf32, #tpu.memory_space<vmem>>, vector<1x1xf32>
    %73 = vector.broadcast %72 : vector<1x1xf32> to vector<4x1xf32>
    %74 = arith.addf %71, %73 : vector<4x1xf32>
    %c0_38 = arith.constant 0 : index
    %c0_39 = arith.constant 0 : index
    %75 = vector.load %arg10[%c0_38, %c0_39] : memref<4x1xf32, #tpu.memory_space<vmem>>, vector<4x1xf32>
    tpu.vector_store %arg10[%c0_38, %c0_39], %74 {strides = array<i32>} : memref<4x1xf32, #tpu.memory_space<vmem>>, vector<4x1xf32>,
    return
  }
  func.func @transform_0(%arg0: i32) -> (i32, i32) {
    %c0_i32 = arith.constant 0 : i32
    %c0_i32_0 = arith.constant 0 : i32
    %c0_i32_1 = arith.constant 0 : i32
    return %c0_i32, %c0_i32_0 : i32, i32
  }
  func.func @transform_1(%arg0: i32) -> (i32, i32) {
    %c0_i32 = arith.constant 0 : i32
    %c0_i32_0 = arith.constant 0 : i32
    %c0_i32_1 = arith.constant 0 : i32
    return %c0_i32, %c0_i32_0 : i32, i32
  }
  func.func @transform_2(%arg0: i32) -> (i32, i32) {
    %c0_i32 = arith.constant 0 : i32
    %c0_i32_0 = arith.constant 0 : i32
    %c0_i32_1 = arith.constant 0 : i32
    return %c0_i32, %c0_i32_0 : i32, i32
  }
  func.func @transform_3(%arg0: i32) -> (i32, i32) {
    %c0_i32 = arith.constant 0 : i32
    %c0_i32_0 = arith.constant 0 : i32
    %c0_i32_1 = arith.constant 0 : i32
    return %c0_i32, %c0_i32_0 : i32, i32
  }
  func.func @transform_4(%arg0: i32) -> (i32, i32) {
    %c0_i32 = arith.constant 0 : i32
    %c0_i32_0 = arith.constant 0 : i32
    %c0_i32_1 = arith.constant 0 : i32
    return %c0_i32, %c0_i32_0 : i32, i32
  }
  func.func @transform_5(%arg0: i32) -> (i32, i32) {
    %c0_i32 = arith.constant 0 : i32
    %c0_i32_0 = arith.constant 0 : i32
    %c0_i32_1 = arith.constant 0 : i32
    return %c0_i32, %c0_i32_0 : i32, i32
  }
  func.func @transform_6(%arg0: i32) -> (i32, i32) {
    %c0_i32 = arith.constant 0 : i32
    %c0_i32_0 = arith.constant 0 : i32
    %c0_i32_1 = arith.constant 0 : i32
    return %c0_i32, %c0_i32_0 : i32, i32
  }
  func.func @transform_7(%arg0: i32) -> (i32, i32) {
    %c0_i32 = arith.constant 0 : i32
    %c0_i32_0 = arith.constant 0 : i32
    %c0_i32_1 = arith.constant 0 : i32
    return %c0_i32, %c0_i32_0 : i32, i32
  }
  func.func @transform_8(%arg0: i32) -> (i32, i32) {
    %c0_i32 = arith.constant 0 : i32
    %c0_i32_0 = arith.constant 0 : i32
    %c0_i32_1 = arith.constant 0 : i32
    return %c0_i32, %c0_i32_0 : i32, i32
  }
  func.func @transform_9(%arg0: i32) -> (i32, i32) {
    %c0_i32 = arith.constant 0 : i32
    %c0_i32_0 = arith.constant 0 : i32
    %c0_i32_1 = arith.constant 0 : i32
    return %c0_i32, %c0_i32_0 : i32, i32
  }
}

</mosaic_0001>

<bundles_post_ra>
// kernel: tile.13
= control target key start
LH: loop header
LB: loop body
LE: loop exit
PB: predicated region body
PF: predicated region fallthrough
CT: control target
= control target key end

     0   :  { %s40_s0 = inlined_call_operand.vmem [shape: f32[6], index: 0, kind: input, shape index: {}]   ;;  %s41_s1 = inlined_call_operand.vmem [shape: f32[28,6], index: 1, kind: output, shape index: {}]  }
   0x1   :  { %v4_v0 = vld [vmem:[%s40_s0] ss:$0 sm:$0xff] }
   0x2   :  { %5 = vst [vmem:[%s41_s1] sm:$0xff] %v4_v0  ;;  %12 = vst [vmem:[%s41_s1 + $0x8] sm:$0xff] %v4_v0 }
   0x3   :  { %13 = vst [vmem:[%s41_s1 + $0x10] sm:$0xff] %v4_v0  ;;  %14 = vst [vmem:[%s41_s1 + $0x18] sm:$0xff] %v4_v0 }

// kernel: tile.14
= control target key start
LH: loop header
LB: loop body
LE: loop exit
PB: predicated region body
PF: predicated region fallthrough
CT: control target
= control target key end

     0   :  { %vm9_vm0 = vcmask 15360   ;;  %s247_s12 = smov 126   ;;  %s248_s13 = smov 114   ;;  %vm3_vm1 = vcmask 48128   ;;  %vm13_vm2 = vcmask 31744   ;;  %vm16_vm3 = vcmask 1048560   ;;  %s377_s0 = inlined_call_operand.vmem [shape: f32[28,6], index: 0, kind: input, shape index: {}]   ;;  %s378_s1 = inlined_call_operand.vmem [shape: f32[1,168], index: 1, kind: output, shape index: {}]  }
   0x1   :  { %v191_v0 = vld [vmem:[%s377_s0 + $0x15] sm:$0x1]   ;;  %v194_v3 = vld [vmem:[%s377_s0 + $0x13] sm:$0x1]   ;;  %v193_v4 = vld [vmem:[%s377_s0 + $0x14] sm:$0x1]  }
   0x2   :  { %v192_v1 = vld [vmem:[%s377_s0 + $0x15] sm:$0x1]   ;;  %26 = vrot.lane.b32.xlu1 %v194_v3, %s248_s13  ;;  %v195_v5 = vld [vmem:[%s377_s0 + $0x12] sm:$0x1]   ;;  %s249_s18 = smov 120   ;;  %s250_s19 = smov 108  }
   0x3   :  { %v10_v2 = vsel %vm9_vm0, %v192_v1, %v191_v0  ;;  %v196_v6 = vld [vmem:[%s377_s0 + $0x11] sm:$0x1]   ;;  %v197_v7 = vld [vmem:[%s377_s0 + $0x10] sm:$0x1]   ;;  %s251_s24 = smov 102   ;;  %s252_s25 = smov 96  }
   0x4   :  { %11 = vrot.lane.b32.xlu0 %v10_v2, %s247_s12  ;;  %v198_v8 = vld [vmem:[%s377_s0 + $0xf] sm:$0x1]   ;;  %v199_v9 = vld [vmem:[%s377_s0 + $0xe] sm:$0x1]   ;;  %s253_s30 = smov 90   ;;  %s254_s2 = smov 84  }
   0x5   :  { %v2_v10 = vld [vmem:[%s377_s0] sm:$0x1]   ;;  %v200_v11 = vld [vmem:[%s377_s0 + $0xd] sm:$0x1]   ;;  %v201_v12 = vld [vmem:[%s377_s0 + $0xc] sm:$0x1]  }
   0x6   :  { %32 = vrot.lane.b32.xlu1 %v195_v5, %s250_s19  ;;  %4 = vst.msk [vmem:[#allocation0] sm:$0x1] %vm3_vm1, %v2_v10   ;;  %s255_s9 = smov 78   ;;  %s256_s10 = smov 72   ;;  %v202_v13 = vld [vmem:[%s377_s0 + $0xb] sm:$0x1]  }
   0x7   :  { %v203_v14 = vld [vmem:[%s377_s0 + $0xa] sm:$0x1]   ;;  %s257_s15 = smov 66   ;;  %s258_s16 = smov 60   ;;  %v204_v15 = vld [vmem:[%s377_s0 + $0x9] sm:$0x1]  }
   0x8   :  { %20 = vrot.lane.b32.xlu0 %v193_v4, %s249_s18  ;;  %v205_v16 = vld [vmem:[%s377_s0 + $0x8] sm:$0x1]   ;;  %s259_s21 = smov 54   ;;  %s260_s22 = smov 48   ;;  %v206_v17 = vld [vmem:[%s377_s0 + $0x7] sm:$0x1]  }
   0x9   :  { %v207_v18 = vld [vmem:[%s377_s0 + $0x6] sm:$0x1]   ;;  %s261_s27 = smov 42   ;;  %s262_s28 = smov 36   ;;  %v208_v19 = vld [vmem:[%s377_s0 + $0x1b] sm:$0x1]  }
   0xa   :  { %44 = vrot.lane.b32.xlu1 %v197_v7, %s252_s25  ;;  %v209_v20 = vld [vmem:[%s377_s0 + $0x5] sm:$0x1]   ;;  %s263_s4 = smov 34   ;;  %s264_s5 = smov 30   ;;  %v210_v21 = vld [vmem:[%s377_s0 + $0x1a] sm:$0x1]  }
   0xb   :  { %v211_v22 = vld [vmem:[%s377_s0 + $0x4] sm:$0x1]   ;;  %s266_s11 = smov 24   ;;  %v212_v23 = vld [vmem:[%s377_s0 + $0x19] sm:$0x1]   ;;  %s268_s17 = smov 18  }
   0xc   :  { %38 = vrot.lane.b32.xlu0 %v196_v6, %s251_s24  ;;  %v213_v24 = vld [vmem:[%s377_s0 + $0x3] sm:$0x1]   ;;  %v214_v25 = vld [vmem:[%s377_s0 + $0x18] sm:$0x1]   ;;  %v215_v26 = vld [vmem:[%s377_s0 + $0x2] sm:$0x1]  }
   0xd   :  { %s270_s23 = smov 12   ;;  %v216_v27 = vld [vmem:[%s377_s0 + $0x17] sm:$0x1]   ;;  %v217_v28 = vld [vmem:[%s377_s0 + $0x1] sm:$0x1]   ;;  %s272_s29 = smov 6  }
   0xe   :  { %56 = vrot.lane.b32.xlu1 %v199_v9, %s254_s2  ;;  %v218_v29 = vld [vmem:[%s377_s0 + $0x16] sm:$0x1]   ;;  %s273_s0 = smov 4   ;;  %vm22_vm4 = vcmask 1032128   ;;  %vm28_vm5 = vcmask 982928   ;;  %vm34_vm6 = vcmask 933728  }
   0xf   :  { %vm40_vm7 = vcmask 884528   ;;  %vm46_vm8 = vcmask 835328   ;;  %vm52_vm9 = vcmask 786128   ;;  %vm58_vm10 = vcmask 736928  }
  0x10   :  { %50 = vrot.lane.b32.xlu0 %v198_v8, %s253_s30  ;;  %vm64_vm11 = vcmask 687728   ;;  %vm70_vm12 = vcmask 638528   ;;  %vm76_vm13 = vcmask 589328   ;;  %vm82_vm14 = vcmask 540128  }
  0x11   :  { %vm88_vm15 = vcmask 490928   ;;  %vm94_vm0 = vcmask 441728   ;;  %vm100_vm1 = vcmask 392528  }
  0x12   :  { %68 = vrot.lane.b32.xlu1 %v201_v12, %s256_s10  ;;  %s265_s10 = smov 28  }
  0x14   :  { %62 = vrot.lane.b32.xlu0 %v200_v11, %s255_s9 }
  0x16   :  { %80 = vrot.lane.b32.xlu1 %v203_v14, %s258_s16  ;;  %s267_s16 = smov 22  }
  0x18   :  { %74 = vrot.lane.b32.xlu0 %v202_v13, %s257_s15 }
  0x1a   :  { %92 = vrot.lane.b32.xlu1 %v205_v16, %s260_s22  ;;  %s269_s22 = smov 16  }
  0x1c   :  { %86 = vrot.lane.b32.xlu0 %v204_v15, %s259_s21 }
  0x1e   :  { %104 = vrot.lane.b32.xlu1 %v207_v18, %s262_s28  ;;  %s271_s28 = smov 10  }
  0x20   :  { %98 = vrot.lane.b32.xlu0 %v206_v17, %s261_s27 }
  0x22   :  { %117 = vrot.lane.b32.xlu1 %v209_v20, %s264_s5 }
  0x24   :  { %110 = vrot.lane.b32.xlu0 %v208_v19, %s263_s4 }
  0x26   :  { %130 = vrot.lane.b32.xlu1 %v211_v22, %s266_s11 }
  0x28   :  { %123 = vrot.lane.b32.xlu0 %v210_v21, %s265_s10 }
  0x2a   :  { %143 = vrot.lane.b32.xlu1 %v213_v24, %s268_s17 }
  0x2c   :  { %136 = vrot.lane.b32.xlu0 %v212_v23, %s267_s16 }
  0x2e   :  { %156 = vrot.lane.b32.xlu1 %v215_v26, %s270_s23 }
  0x30   :  { %149 = vrot.lane.b32.xlu0 %v214_v25, %s269_s22 }
  0x32   :  { %169 = vrot.lane.b32.xlu1 %v217_v28, %s272_s29 }
  0x34   :  { %162 = vrot.lane.b32.xlu0 %v216_v27, %s271_s28 }
  0x38   :  { %175 = vrot.lane.b32.xlu0 %v218_v29, %s273_s0 }
  0x74   :  { %v27_v31 = vpop.permute.xlu1 %26  }
  0x76   :  { %v12_v30 = vpop.permute.xlu0 %11  }
  0x77   :  { %15 = vst.msk [vmem:[#allocation0 + $0x8] sm:$0x1] %vm13_vm2, %v12_v30   ;;  %vm106_vm2 = vcmask 343328  }
  0x78   :  { %17 = vst.msk [vmem:[#allocation0] sm:$0x1] %vm16_vm3, %v12_v30   ;;  %v33_v33 = vpop.permute.xlu1 %32   ;;  %vm112_vm3 = vcmask 326928  }
  0x7a   :  { %v21_v32 = vpop.permute.xlu0 %20  }
  0x7b   :  { %23 = vst.msk [vmem:[#allocation0] sm:$0x1] %vm22_vm4, %v21_v32   ;;  %vm119_vm4 = vcmask 294128  }
  0x7c   :  { %29 = vst.msk [vmem:[#allocation0] sm:$0x1] %vm28_vm5, %v27_v31   ;;  %v45_v35 = vpop.permute.xlu1 %44   ;;  %vm125_vm5 = vcmask 277728  }
  0x7d   :  { %35 = vst.msk [vmem:[#allocation0] sm:$0x1] %vm34_vm6, %v33_v33   ;;  %vm132_vm6 = vcmask 244928  }
  0x7e   :  { %v39_v34 = vpop.permute.xlu0 %38  }
  0x7f   :  { %41 = vst.msk [vmem:[#allocation0] sm:$0x1] %vm40_vm7, %v39_v34   ;;  %vm138_vm7 = vcmask 228528  }
  0x80   :  { %47 = vst.msk [vmem:[#allocation0] sm:$0x1] %vm46_vm8, %v45_v35   ;;  %v57_v37 = vpop.permute.xlu1 %56   ;;  %vm145_vm8 = vcmask 195728  }
  0x82   :  { %v51_v36 = vpop.permute.xlu0 %50  }
  0x83   :  { %53 = vst.msk [vmem:[#allocation0] sm:$0x1] %vm52_vm9, %v51_v36   ;;  %vm151_vm9 = vcmask 179328  }
  0x84   :  { %59 = vst.msk [vmem:[#allocation0] sm:$0x1] %vm58_vm10, %v57_v37   ;;  %v69_v39 = vpop.permute.xlu1 %68   ;;  %vm158_vm10 = vcmask 146528  }
  0x86   :  { %v63_v38 = vpop.permute.xlu0 %62  }
  0x87   :  { %65 = vst.msk [vmem:[#allocation0] sm:$0x1] %vm64_vm11, %v63_v38   ;;  %vm164_vm11 = vcmask 130128  }
  0x88   :  { %71 = vst.msk [vmem:[#allocation0] sm:$0x1] %vm70_vm12, %v69_v39   ;;  %v81_v41 = vpop.permute.xlu1 %80   ;;  %vm171_vm12 = vcmask 97328  }
  0x8a   :  { %v75_v40 = vpop.permute.xlu0 %74  }
  0x8b   :  { %77 = vst.msk [vmem:[#allocation0] sm:$0x1] %vm76_vm13, %v75_v40   ;;  %vm177_vm13 = vcmask 80928  }
  0x8c   :  { %83 = vst.msk [vmem:[#allocation0] sm:$0x1] %vm82_vm14, %v81_v41   ;;  %v93_v43 = vpop.permute.xlu1 %92  }
  0x8e   :  { %v87_v42 = vpop.permute.xlu0 %86  }
  0x8f   :  { %89 = vst.msk [vmem:[#allocation0] sm:$0x1] %vm88_vm15, %v87_v42  }
  0x90   :  { %95 = vst.msk [vmem:[#allocation0] sm:$0x1] %vm94_vm0, %v93_v43   ;;  %v105_v45 = vpop.permute.xlu1 %104  }
  0x92   :  { %v99_v44 = vpop.permute.xlu0 %98  }
  0x93   :  { %101 = vst.msk [vmem:[#allocation0] sm:$0x1] %vm100_vm1, %v99_v44  }
  0x94   :  { %107 = vst.msk [vmem:[#allocation0] sm:$0x1] %vm106_vm2, %v105_v45   ;;  %v118_v47 = vpop.permute.xlu1 %117  }
  0x95   :  { %120 = vst.msk [vmem:[#allocation0] sm:$0x1] %vm119_vm4, %v118_v47  }
  0x96   :  { %v111_v46 = vpop.permute.xlu0 %110  }
  0x97   :  { %114 = vst.msk [vmem:[#allocation0 + $0x8] sm:$0x1] %vm112_vm3, %v111_v46  }
  0x98   :  { %v131_v49 = vpop.permute.xlu1 %130  }
  0x99   :  { %133 = vst.msk [vmem:[#allocation0] sm:$0x1] %vm132_vm6, %v131_v49  }
  0x9a   :  { %v124_v48 = vpop.permute.xlu0 %123  }
  0x9b   :  { %127 = vst.msk [vmem:[#allocation0 + $0x8] sm:$0x1] %vm125_vm5, %v124_v48  }
  0x9c   :  { %v144_v51 = vpop.permute.xlu1 %143  }
  0x9d   :  { %146 = vst.msk [vmem:[#allocation0] sm:$0x1] %vm145_vm8, %v144_v51  }
  0x9e   :  { %v137_v50 = vpop.permute.xlu0 %136  }
  0x9f   :  { %140 = vst.msk [vmem:[#allocation0 + $0x8] sm:$0x1] %vm138_vm7, %v137_v50  }
  0xa0   :  { %v157_v53 = vpop.permute.xlu1 %156  }
  0xa1   :  { %159 = vst.msk [vmem:[#allocation0] sm:$0x1] %vm158_vm10, %v157_v53  }
  0xa2   :  { %v150_v52 = vpop.permute.xlu0 %149  }
  0xa3   :  { %153 = vst.msk [vmem:[#allocation0 + $0x8] sm:$0x1] %vm151_vm9, %v150_v52  }
  0xa4   :  { %v170_v55 = vpop.permute.xlu1 %169  }
  0xa5   :  { %172 = vst.msk [vmem:[#allocation0] sm:$0x1] %vm171_vm12, %v170_v55  }
  0xa6   :  { %v163_v54 = vpop.permute.xlu0 %162  }
  0xa7   :  { %166 = vst.msk [vmem:[#allocation0 + $0x8] sm:$0x1] %vm164_vm11, %v163_v54  }
  0xaa   :  { %v176_v56 = vpop.permute.xlu0 %175  }
  0xab   :  { %179 = vst.msk [vmem:[#allocation0 + $0x8] sm:$0x1] %vm177_vm13, %v176_v56  }
  0xac   :  { %v183_v57 = vld [vmem:[#allocation0] sm:$0x1] }
  0xad   :  { %185 = vst [vmem:[%s378_s1] sm:$0x1] %v183_v57 }
  0xb2   :  { %v187_v58 = vld [vmem:[#allocation0 + $0x8] sm:$0x1] }
  0xb3   :  { %219 = vst [vmem:[%s378_s1 + $0x1] sm:$0x1] %v187_v58 }

// kernel: tile.18
= control target key start
LH: loop header
LB: loop body
LE: loop exit
PB: predicated region body
PF: predicated region fallthrough
CT: control target
= control target key end

     0   :  { %s28_s0 = inlined_call_operand.vmem [shape: f32[16], index: 0, kind: input, shape index: {}]   ;;  %s29_s1 = inlined_call_operand.vmem [shape: f32[10,16], index: 1, kind: output, shape index: {}]  }
   0x1   :  { %v4_v0 = vld [vmem:[%s28_s0] ss:$0 sm:$0xff] }
   0x2   :  { %5 = vst [vmem:[%s29_s1] sm:$0xff] %v4_v0  ;;  %8 = vst [vmem:[%s29_s1 + $0x8] sm:$0xff] %v4_v0 }

// kernel: tile.19
= control target key start
LH: loop header
LB: loop body
LE: loop exit
PB: predicated region body
PF: predicated region fallthrough
CT: control target
= control target key end

     0   :  { %s75_s10 = smov 112   ;;  %s76_s11 = smov 80   ;;  %vm4_vm0 = vcmask 130048   ;;  %vm10_vm1 = vcmask 1048448   ;;  %vm16_vm2 = vcmask 917248   ;;  %vm22_vm3 = vcmask 786048   ;;  %s122_s0 = inlined_call_operand.vmem [shape: f32[10,16], index: 0, kind: input, shape index: {}]   ;;  %s123_s1 = inlined_call_operand.vmem [shape: f32[1,160], index: 1, kind: output, shape index: {}]  }
   0x1   :  { %v60_v0 = vld [vmem:[%s122_s0 + $0x7] sm:$0x1]   ;;  %v62_v1 = vld [vmem:[%s122_s0 + $0x5] sm:$0x1]   ;;  %v61_v2 = vld [vmem:[%s122_s0 + $0x6] sm:$0x1]  }
   0x2   :  { %8 = vrot.lane.b32.xlu0 %v60_v0, %s75_s10  ;;  %20 = vrot.lane.b32.xlu1 %v62_v1, %s76_s11  ;;  %v63_v3 = vld [vmem:[%s122_s0 + $0x4] sm:$0x1]   ;;  %s2_s16 = smov 3  ;;  %s77_s17 = smov 96   ;;  %v64_v5 = vld [vmem:[%s122_s0 + $0x3] sm:$0x1]  }
   0x3   :  { %s78_s18 = smov 64   ;;  %v3_v4 = vld [vmem:[%s122_s0] ss:$8 sm:%s2_s16]   ;;  %v65_v6 = vld [vmem:[%s122_s0 + $0x2] sm:$0x1]   ;;  %s43_s25 = smov 3 }
   0x4   :  { %5 = vst.msk [vmem:[#allocation0] ss:$8 sm:$0x3] %vm4_vm0, %v3_v4   ;;  %s79_s26 = smov 48   ;;  %s80_s27 = smov 32   ;;  %vm28_vm4 = vcmask 654848  }
   0x5   :  { %v66_v7 = vld [vmem:[%s122_s0 + $0x1] ss:$8 sm:%s43_s25]   ;;  %s81_s0 = smov 16   ;;  %vm34_vm5 = vcmask 523648   ;;  %vm40_vm6 = vcmask 392448   ;;  %vm47_vm7 = vcmask 261248  }
   0x6   :  { %14 = vrot.lane.b32.xlu0 %v61_v2, %s77_s17  ;;  %26 = vrot.lane.b32.xlu1 %v63_v3, %s78_s18 }
   0xa   :  { %32 = vrot.lane.b32.xlu0 %v64_v5, %s79_s26  ;;  %38 = vrot.lane.b32.xlu1 %v65_v6, %s80_s27 }
   0xe   :  { %45 = vrot.lane.b32.xlu0 %v66_v7, %s81_s0 }
  0x74   :  { %v9_v8 = vpop.permute.xlu0 %8   ;;  %v21_v9 = vpop.permute.xlu1 %20  }
  0x75   :  { %11 = vst.msk [vmem:[#allocation0] sm:$0x1] %vm10_vm1, %v9_v8  }
  0x78   :  { %v15_v10 = vpop.permute.xlu0 %14   ;;  %v27_v11 = vpop.permute.xlu1 %26  }
  0x79   :  { %17 = vst.msk [vmem:[#allocation0] sm:$0x1] %vm16_vm2, %v15_v10  }
  0x7a   :  { %23 = vst.msk [vmem:[#allocation0] sm:$0x1] %vm22_vm3, %v21_v9  }
  0x7b   :  { %29 = vst.msk [vmem:[#allocation0] sm:$0x1] %vm28_vm4, %v27_v11  }
  0x7c   :  { %v33_v12 = vpop.permute.xlu0 %32   ;;  %v39_v13 = vpop.permute.xlu1 %38  }
  0x7d   :  { %35 = vst.msk [vmem:[#allocation0] sm:$0x1] %vm34_vm5, %v33_v12  }
  0x7e   :  { %41 = vst.msk [vmem:[#allocation0] sm:$0x1] %vm40_vm6, %v39_v13  }
  0x80   :  { %v46_v14 = vpop.permute.xlu0 %45  }
  0x81   :  { %48 = vst.msk [vmem:[#allocation0] ss:$8 sm:$0x3] %vm47_vm7, %v46_v14  }
  0x88   :  { %v52_v15 = vld [vmem:[#allocation0] sm:$0x1]  ;;  %v56_v16 = vld [vmem:[#allocation0 + $0x8] sm:$0x1] }
  0x89   :  { %54 = vst [vmem:[%s123_s1] sm:$0x1] %v52_v15  ;;  %67 = vst [vmem:[%s123_s1 + $0x1] sm:$0x1] %v56_v16 }

// kernel: forward.3
= control target key start
LH: loop header
LB: loop body
LE: loop exit
PB: predicated region body
PF: predicated region fallthrough
CT: control target
= control target key end

     0   :  { %vm358_vm0 = vcmask 261120   ;;  %vm1950_vm1 = vcmask 916480   ;;  %vm2100_vm2 = vcmask 326656   ;;  %vm2255_vm3 = vcmask 1043456   ;;  %s3832_s8 = smov 6   ;;  %s3833_s9 = smov 24   ;;  %s5084_s0 = inlined_call_operand.vmem [shape: f32[128,32], index: 0, kind: input, shape index: {}]   ;;  %s5085_s1 = inlined_call_operand.vmem [shape: f32[5,112,128], index: 1, kind: input, shape index: {}]   ;;  %s5086_s2 = inlined_call_operand.vmem [shape: f32[5,32,168], index: 2, kind: input, shape index: {}]   ;;  %s5087_s3 = inlined_call_operand.vmem [shape: f32[1,168], index: 3, kind: input, shape index: {}]   ;;  %s5088_s5 = inlined_call_operand.vmem [shape: f32[168,84], index: 5, kind: input, shape index: {}]   ;;  %s5089_s4 = inlined_call_operand.vmem [shape: f32[56,112], index: 4, kind: input, shape index: {}]   ;;  %s5090_s6 = inlined_call_operand.vmem [shape: f32[84,6], index: 6, kind: input, shape index: {}]   ;;  %s5091_s7 = inlined_call_operand.vmem [shape: f32[56,84], index: 7, kind: output, shape index: {}]  }
   0x1   :  { %v26_v0 = vld [vmem:[%s5084_s0] sm:$0xff]  ;;  %v27_v1 = vld [vmem:[%s5084_s0 + $0x8] sm:$0xff]  ;;  %v28_v2 = vld [vmem:[%s5084_s0 + $0x10] sm:$0xff]  ;;  %vm3830_vm4 = vmmov 0   ;;  %vm2233_vm5 = vcmask 687104   ;;  %vm2359_vm6 = vcmask 48128  }
   0x2   :  { %v3893_v3 = vpack.c.bf16 %v27_v1, %v26_v0  ;;  %v29_v4 = vld [vmem:[%s5084_s0 + $0x18] sm:$0xff]  ;;  %v30_v6 = vld [vmem:[%s5084_s0 + $0x20] sm:$0xff]  ;;  %v31_v7 = vld [vmem:[%s5084_s0 + $0x28] sm:$0xff]  ;;  %s3835_s10 = smov 36   ;;  %s3837_s11 = smov 48   ;;  %vm2421_vm7 = vcmask 97280  }
   0x3   :  { %v3898_v5 = vpack.c.bf16 %v29_v4, %v28_v2  ;;  %v3911_v8 = vpack.c.bf16 %v31_v7, %v30_v6  ;;  %v2681_v9 = vld [vmem:[%s5085_s1 + $0x70] sm:$0xff]  ;;  %v33_v11 = vld [vmem:[%s5084_s0 + $0x38] sm:$0xff]  ;;  %v34_v13 = vld [vmem:[%s5084_s0 + $0x40] sm:$0xff]  ;;  %s3839_s12 = smov 60   ;;  %s3840_s13 = smov 54   ;;  %vm2423_vm8 = vcmask 146432  }
   0x4   :  { %3439 = vmatprep.subr.bf16.mxu1 %v3893_v3  ;;  %3407 = vmatprep.subr.bf16.mxu0 %v3893_v3  ;;  %v32_v10 = vld [vmem:[%s5084_s0 + $0x30] sm:$0xff]  ;;  %v35_v14 = vld [vmem:[%s5084_s0 + $0x48] sm:$0xff]  ;;  %v42_v15 = vld [vmem:[%s5085_s1] sm:$0xff]  ;;  %s3841_s14 = smov 72   ;;  %s3842_s15 = smov 66   ;;  %vm2425_vm9 = vcmask 195584  }
   0x5   :  { %3441 = vmatpush3.bf16.msra.mxu1 %v3893_v3  ;;  %3409 = vmatpush3.bf16.msra.mxu0 %v3893_v3  ;;  %v3926_v12 = vpack.c.bf16 %v33_v11, %v32_v10  ;;  %v3941_v16 = vpack.c.bf16 %v35_v14, %v34_v13  ;;  %v36_v17 = vld [vmem:[%s5084_s0 + $0x50] sm:$0xff]  ;;  %v37_v18 = vld [vmem:[%s5084_s0 + $0x58] sm:$0xff]  ;;  %v38_v20 = vld [vmem:[%s5084_s0 + $0x60] sm:$0xff]  ;;  %s3843_s16 = smov 78   ;;  %vm2427_vm10 = vcmask 244736   ;;  %vm2429_vm11 = vcmask 293888  }
   0x6   :  { %3443 = vmatprep.subr.bf16.mxu1 %v3898_v5  ;;  %3411 = vmatprep.subr.bf16.mxu0 %v3898_v5  ;;  %v3953_v19 = vpack.c.bf16 %v37_v18, %v36_v17  ;;  %v39_v21 = vld [vmem:[%s5084_s0 + $0x68] sm:$0xff]  ;;  %v40_v23 = vld [vmem:[%s5084_s0 + $0x70] sm:$0xff]  ;;  %v41_v24 = vld [vmem:[%s5084_s0 + $0x78] sm:$0xff]  ;;  %vm2431_vm12 = vcmask 343040   ;;  %vm2433_vm13 = vcmask 392192   ;;  %vm2435_vm14 = vcmask 441344  }
   0x7   :  { %3140 = vmatprep.mubr.f32.mxu1 %v2681_v9  ;;  %3087 = vmatprep.mubr.f32.mxu0 %v42_v15  ;;  %v3965_v22 = vpack.c.bf16 %v39_v21, %v38_v20  ;;  %v3977_v25 = vpack.c.bf16 %v41_v24, %v40_v23  ;;  %v2696_v26 = vld [vmem:[%s5086_s2 + $0x48] sm:$0xff]  ;;  %v2698_v27 = vld [vmem:[%s5086_s2 + $0x58] sm:$0xff]  ;;  %v2695_v29 = vld [vmem:[%s5086_s2 + $0x40] sm:$0xff]  ;;  %vm2437_vm15 = vcmask 490496  }
   0x8   :  { %v3470_v28 = vpack.c.bf16 %v2698_v27, %v2696_v26  ;;  %v2697_v30 = vld [vmem:[%s5086_s2 + $0x50] sm:$0xff]  ;;  %v2700_v31 = vld [vmem:[%s5086_s2 + $0x68] sm:$0xff]  ;;  %v2702_v32 = vld [vmem:[%s5086_s2 + $0x78] sm:$0xff] }
   0x9   :  { %3445 = vmatpush3.bf16.msra.mxu1 %v3898_v5  ;;  %3413 = vmatpush3.bf16.msra.mxu0 %v3898_v5  ;;  %v2682_v33 = vld [vmem:[%s5085_s1 + $0x78] sm:$0xff]  ;;  %v43_v34 = vld [vmem:[%s5085_s1 + $0x8] sm:$0xff]  ;;  %v2683_v35 = vld [vmem:[%s5085_s1 + $0x80] sm:$0xff]  ;;  %v3472_v37 = vpack.c.bf16 %v2697_v30, %v2695_v29  ;;  %v3474_v38 = vpack.c.bf16 %v2702_v32, %v2700_v31  ;;  %v3828_v31 = vmov 0.0  }
   0xa   :  { %3447 = vmatprep.subr.bf16.mxu1 %v3911_v8  ;;  %3415 = vmatprep.subr.bf16.mxu0 %v3911_v8  ;;  %v44_v36 = vld [vmem:[%s5085_s1 + $0x10] sm:$0xff]  ;;  %v2699_v39 = vld [vmem:[%s5086_s2 + $0x60] sm:$0xff]  ;;  %v2684_v41 = vld [vmem:[%s5085_s1 + $0x88] sm:$0xff] }
   0xb   :  { %v2701_v40 = vld [vmem:[%s5086_s2 + $0x70] sm:$0xff]  ;;  %v45_v42 = vld [vmem:[%s5085_s1 + $0x18] sm:$0xff]  ;;  %v46_v44 = vld [vmem:[%s5085_s1 + $0x20] sm:$0xff] }
   0xc   :  { %v2685_v43 = vld [vmem:[%s5085_s1 + $0x90] sm:$0xff]  ;;  %v3476_v45 = vpack.c.bf16 %v2701_v40, %v2699_v39  ;;  %v2686_v46 = vld [vmem:[%s5085_s1 + $0x98] sm:$0xff]  ;;  %v47_v47 = vld [vmem:[%s5085_s1 + $0x28] sm:$0xff] }
   0xd   :  { %3449 = vmatpush3.bf16.msra.mxu1 %v3911_v8  ;;  %3417 = vmatpush3.bf16.msra.mxu0 %v3911_v8  ;;  %v2687_v48 = vld [vmem:[%s5085_s1 + $0xa0] sm:$0xff]  ;;  %v48_v49 = vld [vmem:[%s5085_s1 + $0x30] sm:$0xff]  ;;  %v2688_v50 = vld [vmem:[%s5085_s1 + $0xa8] sm:$0xff] }
   0xe   :  { %3451 = vmatprep.subr.bf16.mxu1 %v3926_v12  ;;  %3419 = vmatprep.subr.bf16.mxu0 %v3926_v12  ;;  %v49_v51 = vld [vmem:[%s5085_s1 + $0x38] sm:$0xff]  ;;  %v2689_v52 = vld [vmem:[%s5085_s1 + $0xb0] sm:$0xff]  ;;  %v50_v53 = vld [vmem:[%s5085_s1 + $0x40] sm:$0xff] }
   0xf   :  { %v2690_v54 = vld [vmem:[%s5085_s1 + $0xb8] sm:$0xff]  ;;  %v51_v55 = vld [vmem:[%s5085_s1 + $0x48] sm:$0xff]  ;;  %v2691_v56 = vld [vmem:[%s5085_s1 + $0xc0] sm:$0xff] }
  0x10   :  { %v52_v57 = vld [vmem:[%s5085_s1 + $0x50] sm:$0xff]  ;;  %v2692_v58 = vld [vmem:[%s5085_s1 + $0xc8] sm:$0xff]  ;;  %v53_v59 = vld [vmem:[%s5085_s1 + $0x58] sm:$0xff] }
  0x11   :  { %3453 = vmatpush3.bf16.msra.mxu1 %v3926_v12  ;;  %3421 = vmatpush3.bf16.msra.mxu0 %v3926_v12  ;;  %v2693_v60 = vld [vmem:[%s5085_s1 + $0xd0] sm:$0xff]  ;;  %v54_v61 = vld [vmem:[%s5085_s1 + $0x60] sm:$0xff]  ;;  %v2694_v62 = vld [vmem:[%s5085_s1 + $0xd8] sm:$0xff] }
  0x12   :  { %3455 = vmatprep.subr.bf16.mxu1 %v3941_v16  ;;  %3423 = vmatprep.subr.bf16.mxu0 %v3941_v16  ;;  %v55_v63 = vld [vmem:[%s5085_s1 + $0x68] sm:$0xff]  ;;  %v2731_v0 = vld [vmem:[%s5085_s1 + $0xe0] sm:$0xff]  ;;  %v2733_v2 = vld [vmem:[%s5085_s1 + $0xf0] sm:$0xff] }
  0x13   :  { %v2732_v1 = vld [vmem:[%s5085_s1 + $0xe8] sm:$0xff]  ;;  %v2734_v4 = vld [vmem:[%s5085_s1 + $0xf8] sm:$0xff]  ;;  %v2735_v6 = vld [vmem:[%s5085_s1 + $0x100] sm:$0xff] }
  0x14   :  { %v2736_v7 = vld [vmem:[%s5085_s1 + $0x108] sm:$0xff]  ;;  %v2737_v9 = vld [vmem:[%s5085_s1 + $0x110] sm:$0xff]  ;;  %v2738_v10 = vld [vmem:[%s5085_s1 + $0x118] sm:$0xff] }
  0x15   :  { %3457 = vmatpush3.bf16.msra.mxu1 %v3941_v16  ;;  %3425 = vmatpush3.bf16.msra.mxu0 %v3941_v16  ;;  %v2739_v11 = vld [vmem:[%s5085_s1 + $0x120] sm:$0xff]  ;;  %v2740_v13 = vld [vmem:[%s5085_s1 + $0x128] sm:$0xff]  ;;  %v2741_v14 = vld [vmem:[%s5085_s1 + $0x130] sm:$0xff] }
  0x16   :  { %3459 = vmatprep.subr.bf16.mxu1 %v3953_v19  ;;  %3427 = vmatprep.subr.bf16.mxu0 %v3953_v19  ;;  %v2742_v15 = vld [vmem:[%s5085_s1 + $0x138] sm:$0xff]  ;;  %v2743_v17 = vld [vmem:[%s5085_s1 + $0x140] sm:$0xff]  ;;  %v2744_v18 = vld [vmem:[%s5085_s1 + $0x148] sm:$0xff] }
  0x17   :  { %v2767_v20 = vld [vmem:[%s5085_s1 + $0x150] sm:$0xff]  ;;  %v2768_v21 = vld [vmem:[%s5085_s1 + $0x158] sm:$0xff]  ;;  %v2769_v23 = vld [vmem:[%s5085_s1 + $0x160] sm:$0xff] }
  0x18   :  { %v2770_v24 = vld [vmem:[%s5085_s1 + $0x168] sm:$0xff]  ;;  %v2771_v26 = vld [vmem:[%s5085_s1 + $0x170] sm:$0xff]  ;;  %v2772_v27 = vld [vmem:[%s5085_s1 + $0x178] sm:$0xff] }
  0x19   :  { %3461 = vmatpush3.bf16.msra.mxu1 %v3953_v19  ;;  %3429 = vmatpush3.bf16.msra.mxu0 %v3953_v19  ;;  %v2776_v29 = vld [vmem:[%s5085_s1 + $0x198] sm:$0xff]  ;;  %v2778_v30 = vld [vmem:[%s5085_s1 + $0x1a8] sm:$0xff]  ;;  %v2811_v40 = vld [vmem:[%s5085_s1 + $0x200] sm:$0xff] }
  0x1a   :  { %3463 = vmatprep.subr.bf16.mxu1 %v3965_v22  ;;  %3431 = vmatprep.subr.bf16.mxu0 %v3965_v22  ;;  %v192_v32 = vld [vmem:[%s5086_s2 + $0x8] sm:$0xff]  ;;  %v2810_v39 = vld [vmem:[%s5085_s1 + $0x1f8] sm:$0xff] }
  0x1d   :  { %3465 = vmatpush3.bf16.msra.mxu1 %v3965_v22  ;;  %3433 = vmatpush3.bf16.msra.mxu0 %v3965_v22 }
  0x1e   :  { %3467 = vmatprep.subr.bf16.mxu1 %v3977_v25  ;;  %3435 = vmatprep.subr.bf16.mxu0 %v3977_v25 }
  0x21   :  { %3469 = vmatpush3.bf16.msra.mxu1 %v3977_v25  ;;  %3437 = vmatpush3.bf16.msra.mxu0 %v3977_v25 }
  0x22   :  { %3487 = vmatprep.subr.bf16.mxu1 %v3893_v3  ;;  %3471 = vmatprep.subr.bf16.mxu0 %v3470_v28  ;;  %v2774_v28 = vld [vmem:[%s5085_s1 + $0x188] sm:$0xff] }
  0x24   :  { %3141 = vmatmul.mubr.f32.vlgmr.msra.gmra.mrb[0].mxu1 %v2682_v33  ;;  %3088 = vmatmul.mubr.f32.vlgmr.msra.gmra.mrb[0].mxu0 %v43_v34  ;;  %v2780_v33 = vld [vmem:[%s5085_s1 + $0x1b8] sm:$0xff] }
  0x25   :  { %3143 = vmatprep.mubr.f32.mxu1 %v2683_v35  ;;  %3090 = vmatprep.mubr.f32.mxu0 %v44_v36  ;;  %v2803_v35 = vld [vmem:[%s5085_s1 + $0x1c0] sm:$0xff]  ;;  %v2805_v36 = vld [vmem:[%s5085_s1 + $0x1d0] sm:$0xff] }
  0x26   :  { %3489 = vmatpush3.bf16.msra.mxu1 %v3893_v3  ;;  %3473 = vmatpush1.bf16.msra.mxu0 %v3472_v37  ;;  %v2806_v37 = vld [vmem:[%s5085_s1 + $0x1d8] sm:$0xff] }
  0x27   :  { %3491 = vmatprep.subr.bf16.mxu1 %v3898_v5  ;;  %3475 = vmatprep.subr.bf16.mxu0 %v3474_v38  ;;  %v2809_v38 = vld [vmem:[%s5085_s1 + $0x1f0] sm:$0xff] }
  0x28   :  { %3144 = vmatmul.mubr.f32.gmra.mrb[2].mxu1 %v2684_v41  ;;  %3091 = vmatmul.mubr.f32.gmra.mrb[2].mxu0 %v45_v42  ;;  %v2812_v41 = vld [vmem:[%s5085_s1 + $0x208] sm:$0xff]  ;;  %v2813_v42 = vld [vmem:[%s5085_s1 + $0x210] sm:$0xff] }
  0x29   :  { %3146 = vmatprep.mubr.f32.mxu1 %v2685_v43  ;;  %3093 = vmatprep.mubr.f32.mxu0 %v46_v44  ;;  %v2814_v43 = vld [vmem:[%s5085_s1 + $0x218] sm:$0xff]  ;;  %v2815_v44 = vld [vmem:[%s5085_s1 + $0x220] sm:$0xff] }
  0x2a   :  { %3493 = vmatpush3.bf16.msra.mxu1 %v3898_v5  ;;  %3477 = vmatpush1.bf16.msra.mxu0 %v3476_v45  ;;  %v2816_v45 = vld [vmem:[%s5085_s1 + $0x228] sm:$0xff] }
  0x2b   :  { %3495 = vmatprep.subr.bf16.mxu1 %v3911_v8 }
  0x2c   :  { %3147 = vmatmul.mubr.f32.gmra.mrb[4].mxu1 %v2686_v46  ;;  %3094 = vmatmul.mubr.f32.gmra.mrb[4].mxu0 %v47_v47  ;;  %v191_v46 = vld [vmem:[%s5086_s2] sm:$0xff]  ;;  %v193_v47 = vld [vmem:[%s5086_s2 + $0x10] sm:$0xff] }
  0x2d   :  { %3149 = vmatprep.mubr.f32.mxu1 %v2687_v48  ;;  %3096 = vmatprep.mubr.f32.mxu0 %v48_v49  ;;  %v196_v48 = vld [vmem:[%s5086_s2 + $0x28] sm:$0xff]  ;;  %v198_v49 = vld [vmem:[%s5086_s2 + $0x38] sm:$0xff] }
  0x2e   :  { %3497 = vmatpush3.bf16.msra.mxu1 %v3911_v8 }
  0x2f   :  { %3499 = vmatprep.subr.bf16.mxu1 %v3926_v12 }
  0x30   :  { %3150 = vmatmul.mubr.f32.gmra.mrb[6].mxu1 %v2688_v50  ;;  %3097 = vmatmul.mubr.f32.gmra.mrb[6].mxu0 %v49_v51  ;;  %v3480_v50 = vpack.c.bf16 %v193_v47, %v191_v46  ;;  %v2749_v47 = vld [vmem:[%s5086_s2 + $0xa0] sm:$0xff] }
  0x31   :  { %3152 = vmatprep.mubr.f32.mxu1 %v2689_v52  ;;  %3099 = vmatprep.mubr.f32.mxu0 %v50_v53  ;;  %v3482_v52 = vpack.c.bf16 %v198_v49, %v196_v48  ;;  %v195_v53 = vld [vmem:[%s5086_s2 + $0x20] sm:$0xff]  ;;  %v2751_v48 = vld [vmem:[%s5086_s2 + $0xb0] sm:$0xff]  ;;  %v2782_v49 = vld [vmem:[%s5086_s2 + $0xc8] sm:$0xff] }
  0x32   :  { %3501 = vmatpush3.bf16.msra.mxu1 %v3926_v12 }
  0x33   :  { %3503 = vmatprep.subr.bf16.mxu1 %v3941_v16 }
  0x34   :  { %3153 = vmatmul.mubr.f32.gmra.mrb[8].mxu1 %v2690_v54  ;;  %3100 = vmatmul.mubr.f32.gmra.mrb[8].mxu0 %v51_v55  ;;  %v197_v54 = vld [vmem:[%s5086_s2 + $0x30] sm:$0xff] }
  0x35   :  { %3155 = vmatprep.mubr.f32.mxu1 %v2691_v56  ;;  %3102 = vmatprep.mubr.f32.mxu0 %v52_v57 }
  0x36   :  { %3505 = vmatpush3.bf16.msra.mxu1 %v3941_v16 }
  0x37   :  { %3507 = vmatprep.subr.bf16.mxu1 %v3953_v19 }
  0x38   :  { %3156 = vmatmul.mubr.f32.gmra.mrb[10].mxu1 %v2692_v58  ;;  %3103 = vmatmul.mubr.f32.gmra.mrb[10].mxu0 %v53_v59  ;;  %v2746_v58 = vld [vmem:[%s5086_s2 + $0x88] sm:$0xff]  ;;  %v2748_v59 = vld [vmem:[%s5086_s2 + $0x98] sm:$0xff] }
  0x39   :  { %3158 = vmatprep.mubr.f32.mxu1 %v2693_v60  ;;  %3105 = vmatprep.mubr.f32.mxu0 %v54_v61  ;;  %v3484_v60 = vpack.c.bf16 %v197_v54, %v195_v53  ;;  %v3524_v53 = vpack.c.bf16 %v2751_v48, %v2749_v47 }
  0x3a   :  { %3509 = vmatpush3.bf16.msra.mxu1 %v3953_v19 }
  0x3b   :  { %3511 = vmatprep.subr.bf16.mxu1 %v3965_v22 }
  0x3c   :  { %3159 = vmatmul.mubr.f32.gmra.mrb[12].mxu1 %v2694_v62  ;;  %3106 = vmatmul.mubr.f32.gmra.mrb[12].mxu0 %v55_v63  ;;  %v3518_v62 = vpack.c.bf16 %v2748_v59, %v2746_v58  ;;  %v2821_v59 = vld [vmem:[%s5086_s2 + $0x120] sm:$0xff] }
  0x3d   :  { %3193 = vmatprep.mubr.f32.mxu1 %v2731_v0  ;;  %465 = vmatprep.mubr.f32.mxu0 %v3828_v31 }
  0x3e   :  { %3513 = vmatpush3.bf16.msra.mxu1 %v3965_v22 }
  0x3f   :  { %3515 = vmatprep.subr.bf16.mxu1 %v3977_v25 }
  0x42   :  { %3517 = vmatpush3.bf16.msra.mxu1 %v3977_v25 }
  0x43   :  { %3527 = vmatprep.subr.bf16.mxu1 %v3893_v3 }
  0x45   :  { %3194 = vmatmul.mubr.f32.vlgmr.msra.gmra.mrb[14].mxu1 %v2732_v1 }
  0x46   :  { %3196 = vmatprep.mubr.f32.mxu1 %v2733_v2  ;;  %3529 = vmatpush3.bf16.msra.mxu1 %v3893_v3 }
  0x47   :  { %3531 = vmatprep.subr.bf16.mxu1 %v3898_v5 }
  0x49   :  { %3197 = vmatmul.mubr.f32.gmra.mrb[16].mxu1 %v2734_v4 }
  0x4a   :  { %3533 = vmatpush3.bf16.msra.mxu1 %v3898_v5  ;;  %3199 = vmatprep.mubr.f32.mxu1 %v2735_v6 }
  0x4b   :  { %3535 = vmatprep.subr.bf16.mxu1 %v3911_v8 }
  0x4d   :  { %3200 = vmatmul.mubr.f32.gmra.mrb[18].mxu1 %v2736_v7 }
  0x4e   :  { %3537 = vmatpush3.bf16.msra.mxu1 %v3911_v8  ;;  %3202 = vmatprep.mubr.f32.mxu1 %v2737_v9 }
  0x4f   :  { %3539 = vmatprep.subr.bf16.mxu1 %v3926_v12 }
  0x51   :  { %3203 = vmatmul.mubr.f32.gmra.mrb[20].mxu1 %v2738_v10 }
  0x52   :  { %3541 = vmatpush3.bf16.msra.mxu1 %v3926_v12  ;;  %3205 = vmatprep.mubr.f32.mxu1 %v2739_v11 }
  0x53   :  { %3543 = vmatprep.subr.bf16.mxu1 %v3941_v16 }
  0x55   :  { %3206 = vmatmul.mubr.f32.gmra.mrb[22].mxu1 %v2740_v13 }
  0x56   :  { %3545 = vmatpush3.bf16.msra.mxu1 %v3941_v16  ;;  %3208 = vmatprep.mubr.f32.mxu1 %v2741_v14 }
  0x57   :  { %3547 = vmatprep.subr.bf16.mxu1 %v3953_v19 }
  0x59   :  { %3209 = vmatmul.mubr.f32.gmra.mrb[24].mxu1 %v2742_v15 }
  0x5a   :  { %3549 = vmatpush3.bf16.msra.mxu1 %v3953_v19  ;;  %3211 = vmatprep.mubr.f32.mxu1 %v2743_v17 }
  0x5b   :  { %3551 = vmatprep.subr.bf16.mxu1 %v3965_v22 }
  0x5d   :  { %3212 = vmatmul.mubr.f32.gmra.mrb[26].mxu1 %v2744_v18 }
  0x5e   :  { %3553 = vmatpush3.bf16.msra.mxu1 %v3965_v22  ;;  %3246 = vmatprep.mubr.f32.mxu1 %v2767_v20 }
  0x5f   :  { %3555 = vmatprep.subr.bf16.mxu1 %v3977_v25 }
  0x62   :  { %3557 = vmatpush3.bf16.msra.mxu1 %v3977_v25 }
  0x63   :  { %3567 = vmatprep.subr.bf16.mxu1 %v3893_v3 }
  0x65   :  { %3247 = vmatmul.mubr.f32.vlgmr.msra.gmra.mrb[28].mxu1 %v2768_v21 }
  0x66   :  { %3569 = vmatpush3.bf16.msra.mxu1 %v3893_v3  ;;  %3249 = vmatprep.mubr.f32.mxu1 %v2769_v23  ;;  %v2773_v3 = vld [vmem:[%s5085_s1 + $0x180] sm:$0xff] }
  0x67   :  { %3571 = vmatprep.subr.bf16.mxu1 %v3898_v5 }
  0x69   :  { %3250 = vmatmul.mubr.f32.gmra.mrb[30].mxu1 %v2770_v24 }
  0x6a   :  { %3573 = vmatpush3.bf16.msra.mxu1 %v3898_v5  ;;  %3252 = vmatprep.mubr.f32.mxu1 %v2771_v26  ;;  %v2775_v5 = vld [vmem:[%s5085_s1 + $0x190] sm:$0xff] }
  0x6b   :  { %3575 = vmatprep.subr.bf16.mxu1 %v3911_v8 }
  0x6d   :  { %3253 = vmatmul.mubr.f32.gmra.mrb[32].mxu1 %v2772_v27 }
  0x6e   :  { %3577 = vmatpush3.bf16.msra.mxu1 %v3911_v8  ;;  %3255 = vmatprep.mubr.f32.mxu1 %v2773_v3  ;;  %v2777_v8 = vld [vmem:[%s5085_s1 + $0x1a0] sm:$0xff] }
  0x6f   :  { %3579 = vmatprep.subr.bf16.mxu1 %v3926_v12 }
  0x71   :  { %3256 = vmatmul.mubr.f32.gmra.mrb[34].mxu1 %v2774_v28 }
  0x72   :  { %3581 = vmatpush3.bf16.msra.mxu1 %v3926_v12  ;;  %3258 = vmatprep.mubr.f32.mxu1 %v2775_v5  ;;  %v2779_v12 = vld [vmem:[%s5085_s1 + $0x1b0] sm:$0xff] }
  0x73   :  { %3583 = vmatprep.subr.bf16.mxu1 %v3941_v16 }
  0x75   :  { %3259 = vmatmul.mubr.f32.gmra.mrb[36].mxu1 %v2776_v29 }
  0x76   :  { %3585 = vmatpush3.bf16.msra.mxu1 %v3941_v16  ;;  %3261 = vmatprep.mubr.f32.mxu1 %v2777_v8  ;;  %v194_v16 = vld [vmem:[%s5086_s2 + $0x18] sm:$0xff] }
  0x77   :  { %3587 = vmatprep.subr.bf16.mxu1 %v3953_v19  ;;  %v3478_v34 = vpack.c.bf16 %v194_v16, %v192_v32  ;;  %v2818_v16 = vld [vmem:[%s5086_s2 + $0x108] sm:$0xff] }
  0x79   :  { %3262 = vmatmul.mubr.f32.gmra.mrb[38].mxu1 %v2778_v30  ;;  %3479 = vmatprep.subr.bf16.mxu0 %v3478_v34  ;;  %v2817_v34 = vld [vmem:[%s5086_s2 + $0x100] sm:$0xff] }
  0x7a   :  { %3589 = vmatpush3.bf16.msra.mxu1 %v3953_v19  ;;  %3264 = vmatprep.mubr.f32.mxu1 %v2779_v12  ;;  %v2804_v19 = vld [vmem:[%s5085_s1 + $0x1c8] sm:$0xff] }
  0x7b   :  { %3591 = vmatprep.subr.bf16.mxu1 %v3965_v22 }
  0x7d   :  { %3265 = vmatmul.mubr.f32.gmra.mrb[40].mxu1 %v2780_v33  ;;  %v2820_v33 = vld [vmem:[%s5086_s2 + $0x118] sm:$0xff] }
  0x7e   :  { %3593 = vmatpush3.bf16.msra.mxu1 %v3965_v22  ;;  %3299 = vmatprep.mubr.f32.mxu1 %v2803_v35  ;;  %v2807_v22 = vld [vmem:[%s5085_s1 + $0x1e0] sm:$0xff]  ;;  %v4365_v35 = vpack.c.bf16 %v2820_v33, %v2818_v16 }
  0x7f   :  { %3595 = vmatprep.subr.bf16.mxu1 %v3977_v25 }
  0x82   :  { %3597 = vmatpush3.bf16.msra.mxu1 %v3977_v25  ;;  %v2808_v25 = vld [vmem:[%s5085_s1 + $0x1e8] sm:$0xff]  ;;  %s3834_s1 = smov 12  }
  0x83   :  { %3694 = vmatprep.subr.bf16.mxu1 %v4365_v35 }
  0x85   :  { %3300 = vmatmul.mubr.f32.vlgmr.msra.gmra.mrb[42].mxu1 %v2804_v19  ;;  %v2819_v19 = vld [vmem:[%s5086_s2 + $0x110] sm:$0xff] }
  0x86   :  { %3302 = vmatprep.mubr.f32.mxu1 %v2805_v36  ;;  %v4370_v36 = vpack.c.bf16 %v2819_v19, %v2817_v34 }
  0x88   :  { %3696 = vmatpush1.bf16.msra.mxu1 %v4370_v36 }
  0x89   :  { %3303 = vmatmul.mubr.f32.gmra.mrb[44].mxu1 %v2806_v37 }
  0x8a   :  { %3305 = vmatprep.mubr.f32.mxu1 %v2807_v22 }
  0x8d   :  { %3306 = vmatmul.mubr.f32.gmra.mrb[46].mxu1 %v2808_v25 }
  0x8e   :  { %3308 = vmatprep.mubr.f32.mxu1 %v2809_v38 }
  0x91   :  { %3309 = vmatmul.mubr.f32.gmra.mrb[48].mxu1 %v2810_v39  ;;  %v2745_v39 = vld [vmem:[%s5086_s2 + $0x80] sm:$0xff] }
  0x92   :  { %3311 = vmatprep.mubr.f32.mxu1 %v2811_v40  ;;  %v2747_v40 = vld [vmem:[%s5086_s2 + $0x90] sm:$0xff] }
  0x95   :  { %3312 = vmatmul.mubr.f32.gmra.mrb[50].mxu1 %v2812_v41  ;;  %v2750_v41 = vld [vmem:[%s5086_s2 + $0xa8] sm:$0xff] }
  0x96   :  { %3314 = vmatprep.mubr.f32.mxu1 %v2813_v42  ;;  %v2752_v42 = vld [vmem:[%s5086_s2 + $0xb8] sm:$0xff] }
  0x97   :  { %v3522_v46 = vpack.c.bf16 %v2752_v42, %v2750_v41 }
  0x99   :  { %3315 = vmatmul.mubr.f32.gmra.mrb[52].mxu1 %v2814_v43 }
  0x9a   :  { %3317 = vmatprep.mubr.f32.mxu1 %v2815_v44 }
  0x9d   :  { %3318 = vmatmul.mubr.f32.gmra.mrb[54].mxu1 %v2816_v45  ;;  %v3520_v45 = vpack.c.bf16 %v2747_v40, %v2745_v39  ;;  %v2785_v39 = vld [vmem:[%s5086_s2 + $0xe0] sm:$0xff]  ;;  %v2787_v40 = vld [vmem:[%s5086_s2 + $0xf0] sm:$0xff] }
  0x9e   :  { %1804 = vmatprep.mubr.f32.mxu1 %v3828_v31  ;;  %v3564_v42 = vpack.c.bf16 %v2787_v40, %v2785_v39 }
  0xf7   :  { %v3142_v51 = vpop.f32.mrb[0].mxu1  ;;  %v4288_v55 = vpop.f32.mrb[0].mxu0 }
  0xf8   :  { %v280_v56 = vpop.f32.mrb[1].mxu1  ;;  %v4290_v57 = vpop.f32.mrb[1].mxu0 }
  0xf9   :  { %2703 = vmatmul.mubr.msk.f32.vlgmr.msra.gmra.mrb[14].mxu0 %vm358_vm0, %v280_v56  ;;  %v2822_v56 = vld [vmem:[%s5086_s2 + $0x128] sm:$0xff] }
  0xfa   :  { %3481 = vmatpush1.bf16.msra.mxu0 %v3480_v50  ;;  %471 = vmatprep.mubr.f32.mxu0 %v3828_v31  ;;  %v2784_v50 = vld [vmem:[%s5086_s2 + $0xd8] sm:$0xff] }
  0xfb   :  { %v3145_v61 = vpop.f32.mrb[2].mxu1  ;;  %3483 = vmatprep.subr.bf16.mxu0 %v3482_v52  ;;  %v4300_v63 = vpop.f32.mrb[2].mxu0  ;;  %v3558_v54 = vpack.c.bf16 %v2784_v50, %v2782_v49  ;;  %v1877_v49 = vlaneseq }
  0xfc   :  { %v290_v0 = vpop.f32.mrb[3].mxu1  ;;  %v4302_v1 = vpop.f32.mrb[3].mxu0 }
  0xfd   :  { %2704 = vmatmul.mubr.msk.f32.gmra.mrb[16].mxu0 %vm358_vm0, %v3142_v51  ;;  %v1878_v50 = vshrl.u32 %v1877_v49, 7 }
  0xfe   :  { %477 = vmatprep.mubr.f32.mxu0 %v3828_v31  ;;  %3485 = vmatpush1.bf16.msra.mxu0 %v3484_v60 }
  0xff   :  { %v3148_v2 = vpop.f32.mrb[4].mxu1  ;;  %3519 = vmatprep.subr.bf16.mxu0 %v3518_v62  ;;  %v4306_v4 = vpop.f32.mrb[4].mxu0 }
 0x100   :  { %v300_v6 = vpop.f32.mrb[5].mxu1  ;;  %v4308_v7 = vpop.f32.mrb[5].mxu0 }
 0x101   :  { %2705 = vmatmul.mubr.msk.f32.gmra.mrb[18].mxu0 %vm358_vm0, %v290_v0 }
 0x102   :  { %483 = vmatprep.mubr.f32.mxu0 %v3828_v31 }
 0x103   :  { %v3151_v9 = vpop.f32.mrb[6].mxu1  ;;  %v4312_v10 = vpop.f32.mrb[6].mxu0 }
 0x104   :  { %v310_v11 = vpop.f32.mrb[7].mxu1  ;;  %v4314_v13 = vpop.f32.mrb[7].mxu0 }
 0x105   :  { %2706 = vmatmul.mubr.msk.f32.gmra.mrb[20].mxu0 %vm358_vm0, %v3145_v61 }
 0x106   :  { %489 = vmatprep.mubr.f32.mxu0 %v3828_v31 }
 0x107   :  { %v3154_v14 = vpop.f32.mrb[8].mxu1  ;;  %v4318_v15 = vpop.f32.mrb[8].mxu0 }
 0x108   :  { %v320_v17 = vpop.f32.mrb[9].mxu1  ;;  %v4320_v18 = vpop.f32.mrb[9].mxu0 }
 0x109   :  { %2707 = vmatmul.mubr.msk.f32.gmra.mrb[22].mxu0 %vm358_vm0, %v300_v6 }
 0x10a   :  { %495 = vmatprep.mubr.f32.mxu0 %v3828_v31 }
 0x10b   :  { %v3157_v20 = vpop.f32.mrb[10].mxu1  ;;  %v4324_v21 = vpop.f32.mrb[10].mxu0 }
 0x10c   :  { %v330_v23 = vpop.f32.mrb[11].mxu1  ;;  %v4326_v24 = vpop.f32.mrb[11].mxu0 }
 0x10d   :  { %2708 = vmatmul.mubr.msk.f32.gmra.mrb[24].mxu0 %vm358_vm0, %v3148_v2 }
 0x10e   :  { %501 = vmatprep.mubr.f32.mxu0 %v3828_v31 }
 0x10f   :  { %v3160_v26 = vpop.f32.mrb[12].mxu1  ;;  %v4330_v27 = vpop.f32.mrb[12].mxu0 }
 0x110   :  { %v340_v3 = vpop.f32.mrb[13].mxu1  ;;  %v4332_v28 = vpop.f32.mrb[13].mxu0 }
 0x111   :  { %2709 = vmatmul.mubr.msk.f32.gmra.mrb[26].mxu0 %vm358_vm0, %v310_v11 }
 0x112   :  { %507 = vmatprep.mubr.f32.mxu0 %v3828_v31 }
 0x115   :  { %2710 = vmatmul.mubr.msk.f32.gmra.mrb[28].mxu0 %vm358_vm0, %v3151_v9 }
 0x116   :  { %513 = vmatprep.mubr.f32.mxu0 %v3828_v31 }
 0x118   :  { %v4338_v5 = vpop.f32.mrb[14].mxu1 }
 0x119   :  { %2711 = vmatmul.mubr.msk.f32.gmra.mrb[30].mxu0 %vm358_vm0, %v320_v17  ;;  %v4341_v29 = vpop.f32.mrb[15].mxu1 }
 0x11a   :  { %519 = vmatprep.mubr.f32.mxu0 %v3828_v31 }
 0x11c   :  { %v4344_v8 = vpop.f32.mrb[16].mxu1 }
 0x11d   :  { %2712 = vmatmul.mubr.msk.f32.gmra.mrb[32].mxu0 %vm358_vm0, %v3154_v14  ;;  %v4347_v30 = vpop.f32.mrb[17].mxu1 }
 0x11e   :  { %525 = vmatprep.mubr.f32.mxu0 %v3828_v31 }
 0x120   :  { %v4350_v12 = vpop.f32.mrb[18].mxu1 }
 0x121   :  { %2713 = vmatmul.mubr.msk.f32.gmra.mrb[34].mxu0 %vm358_vm0, %v330_v23  ;;  %v4353_v32 = vpop.f32.mrb[19].mxu1 }
 0x122   :  { %531 = vmatprep.mubr.f32.mxu0 %v3828_v31 }
 0x124   :  { %v4372_v37 = vpop.f32.mrb[20].mxu1 }
 0x125   :  { %2714 = vmatmul.mubr.msk.f32.gmra.mrb[36].mxu0 %vm358_vm0, %v3157_v20  ;;  %v4376_v22 = vpop.f32.mrb[21].mxu1 }
 0x126   :  { %537 = vmatprep.mubr.f32.mxu0 %v3828_v31 }
 0x128   :  { %v4380_v25 = vpop.f32.mrb[22].mxu1 }
 0x129   :  { %2715 = vmatmul.mubr.msk.f32.gmra.mrb[38].mxu0 %vm358_vm0, %v340_v3  ;;  %v4383_v38 = vpop.f32.mrb[23].mxu1  ;;  %v2786_v3 = vld [vmem:[%s5086_s2 + $0xe8] sm:$0xff] }
 0x12a   :  { %543 = vmatprep.mubr.f32.mxu0 %v3828_v31 }
 0x12c   :  { %v4398_v43 = vpop.f32.mrb[24].mxu1 }
 0x12d   :  { %2716 = vmatmul.mubr.msk.f32.gmra.mrb[40].mxu0 %vm358_vm0, %v3160_v26  ;;  %v4401_v44 = vpop.f32.mrb[25].mxu1 }
 0x12e   :  { %656 = vmatprep.mubr.f32.mxu0 %v3828_v31 }
 0x130   :  { %v4416_v51 = vpop.f32.mrb[26].mxu1 }
 0x131   :  { %2717 = vmatmul.mubr.msk.f32.vlgmr.msra.gmra.mrb[14].mxu0 %vm358_vm0, %v4290_v57  ;;  %v4420_v52 = vpop.f32.mrb[27].mxu1  ;;  %v2824_v57 = vld [vmem:[%s5086_s2 + $0x138] sm:$0xff] }
 0x132   :  { %3521 = vmatpush1.bf16.msra.mxu0 %v3520_v45  ;;  %662 = vmatprep.mubr.f32.mxu0 %v3828_v31  ;;  %v4432_v58 = vpack.c.bf16 %v2824_v57, %v2822_v56  ;;  %v4666_v56 = vsub.s32 0, %v1878_v50  ;;  %v1875_v57 = vld [vmem:[%s5087_s3] sm:$0x3]  ;;  %s3838_s3 = smov 42  }
 0x133   :  { %3523 = vmatprep.subr.bf16.mxu0 %v3522_v46 }
 0x134   :  { %3695 = vmatprep.subr.bf16.mxu1 %v4432_v58 }
 0x135   :  { %2718 = vmatmul.mubr.msk.f32.gmra.mrb[16].mxu0 %vm358_vm0, %v4288_v55  ;;  %v2823_v55 = vld [vmem:[%s5086_s2 + $0x130] sm:$0xff] }
 0x136   :  { %668 = vmatprep.mubr.f32.mxu0 %v3828_v31  ;;  %3525 = vmatpush1.bf16.msra.mxu0 %v3524_v53  ;;  %v4442_v61 = vpack.c.bf16 %v2823_v55, %v2821_v59 }
 0x137   :  { %3559 = vmatprep.subr.bf16.mxu0 %v3558_v54 }
 0x138   :  { %v4440_v60 = vpop.f32.mrb[28].mxu1  ;;  %3697 = vmatpush1.bf16.msra.mxu1 %v4442_v61 }
 0x139   :  { %2719 = vmatmul.mubr.msk.f32.gmra.mrb[18].mxu0 %vm358_vm0, %v4302_v1  ;;  %v4446_v62 = vpop.f32.mrb[29].mxu1 }
 0x13a   :  { %674 = vmatprep.mubr.f32.mxu0 %v3828_v31 }
 0x13c   :  { %v4451_v0 = vpop.f32.mrb[30].mxu1 }
 0x13d   :  { %2720 = vmatmul.mubr.msk.f32.gmra.mrb[20].mxu0 %vm358_vm0, %v4300_v63  ;;  %v4455_v2 = vpop.f32.mrb[31].mxu1 }
 0x13e   :  { %680 = vmatprep.mubr.f32.mxu0 %v3828_v31 }
 0x140   :  { %v4458_v6 = vpop.f32.mrb[32].mxu1 }
 0x141   :  { %2721 = vmatmul.mubr.msk.f32.gmra.mrb[22].mxu0 %vm358_vm0, %v4308_v7  ;;  %v4462_v1 = vpop.f32.mrb[33].mxu1 }
 0x142   :  { %686 = vmatprep.mubr.f32.mxu0 %v3828_v31 }
 0x144   :  { %v4465_v9 = vpop.f32.mrb[34].mxu1 }
 0x145   :  { %2722 = vmatmul.mubr.msk.f32.gmra.mrb[24].mxu0 %vm358_vm0, %v4306_v4  ;;  %v4469_v11 = vpop.f32.mrb[35].mxu1 }
 0x146   :  { %692 = vmatprep.mubr.f32.mxu0 %v3828_v31 }
 0x148   :  { %v4472_v63 = vpop.f32.mrb[36].mxu1 }
 0x149   :  { %2723 = vmatmul.mubr.msk.f32.gmra.mrb[26].mxu0 %vm358_vm0, %v4314_v13  ;;  %v4476_v14 = vpop.f32.mrb[37].mxu1 }
 0x14a   :  { %698 = vmatprep.mubr.f32.mxu0 %v3828_v31 }
 0x14c   :  { %v4479_v7 = vpop.f32.mrb[38].mxu1 }
 0x14d   :  { %2724 = vmatmul.mubr.msk.f32.gmra.mrb[28].mxu0 %vm358_vm0, %v4312_v10  ;;  %v4483_v17 = vpop.f32.mrb[39].mxu1 }
 0x14e   :  { %704 = vmatprep.mubr.f32.mxu0 %v3828_v31 }
 0x150   :  { %v4486_v4 = vpop.f32.mrb[40].mxu1 }
 0x151   :  { %2725 = vmatmul.mubr.msk.f32.gmra.mrb[30].mxu0 %vm358_vm0, %v4320_v18  ;;  %v4490_v20 = vpop.f32.mrb[41].mxu1 }
 0x152   :  { %710 = vmatprep.mubr.f32.mxu0 %v3828_v31 }
 0x155   :  { %2726 = vmatmul.mubr.msk.f32.gmra.mrb[32].mxu0 %vm358_vm0, %v4318_v15 }
 0x156   :  { %716 = vmatprep.mubr.f32.mxu0 %v3828_v31 }
 0x158   :  { %v4496_v13 = vpop.f32.mrb[42].mxu1 }
 0x159   :  { %2727 = vmatmul.mubr.msk.f32.gmra.mrb[34].mxu0 %vm358_vm0, %v4326_v24  ;;  %v4500_v10 = vpop.f32.mrb[43].mxu1  ;;  %v2781_v24 = vld [vmem:[%s5086_s2 + $0xc0] sm:$0xff] }
 0x15a   :  { %722 = vmatprep.mubr.f32.mxu0 %v3828_v31 }
 0x15c   :  { %v4503_v23 = vpop.f32.mrb[44].mxu1 }
 0x15d   :  { %2728 = vmatmul.mubr.msk.f32.gmra.mrb[36].mxu0 %vm358_vm0, %v4324_v21  ;;  %v4507_v18 = vpop.f32.mrb[45].mxu1  ;;  %v2783_v21 = vld [vmem:[%s5086_s2 + $0xd0] sm:$0xff] }
 0x15e   :  { %728 = vmatprep.mubr.f32.mxu0 %v3828_v31  ;;  %v3560_v34 = vpack.c.bf16 %v2783_v21, %v2781_v24 }
 0x160   :  { %v4510_v15 = vpop.f32.mrb[46].mxu1 }
 0x161   :  { %2729 = vmatmul.mubr.msk.f32.gmra.mrb[38].mxu0 %vm358_vm0, %v4332_v28  ;;  %v4514_v26 = vpop.f32.mrb[47].mxu1  ;;  %v2788_v28 = vld [vmem:[%s5086_s2 + $0xf8] sm:$0xff]  ;;  %s3836_s2 = smov 30  }
 0x162   :  { %734 = vmatprep.mubr.f32.mxu0 %v3828_v31  ;;  %v3562_v19 = vpack.c.bf16 %v2788_v28, %v2786_v3 }
 0x164   :  { %v3310_v16 = vpop.f32.mrb[48].mxu1 }
 0x165   :  { %2730 = vmatmul.mubr.msk.f32.gmra.mrb[40].mxu0 %vm358_vm0, %v4330_v27  ;;  %2832 = vmatmul.mubr.msk.f32.vlgmr.msra.gmra.mrb[56].mxu1 %vm358_vm0, %v3310_v16  ;;  %v4532_v33 = vpop.f32.mrb[49].mxu1 }
 0x166   :  { %1006 = vmatprep.mubr.f32.mxu0 %v3828_v31  ;;  %1810 = vmatprep.mubr.f32.mxu1 %v3828_v31 }
 0x168   :  { %v3313_v41 = vpop.f32.mrb[50].mxu1 }
 0x169   :  { %2753 = vmatmul.mubr.msk.f32.vlgmr.msra.gmra.mrb[14].mxu0 %vm358_vm0, %v4341_v29  ;;  %v1618_v27 = vpop.f32.mrb[51].mxu1 }
 0x16a   :  { %3561 = vmatpush1.bf16.msra.mxu0 %v3560_v34  ;;  %1012 = vmatprep.mubr.f32.mxu0 %v3828_v31 }
 0x16b   :  { %3563 = vmatprep.subr.bf16.mxu0 %v3562_v19  ;;  %2833 = vmatmul.mubr.msk.f32.gmra.mrb[58].mxu1 %vm358_vm0, %v1618_v27 }
 0x16c   :  { %1816 = vmatprep.mubr.f32.mxu1 %v3828_v31  ;;  %v3316_v45 = vpop.f32.mrb[52].mxu1 }
 0x16d   :  { %2754 = vmatmul.mubr.msk.f32.gmra.mrb[16].mxu0 %vm358_vm0, %v4338_v5  ;;  %v1628_v46 = vpop.f32.mrb[53].mxu1 }
 0x16e   :  { %1018 = vmatprep.mubr.f32.mxu0 %v3828_v31  ;;  %3565 = vmatpush1.bf16.msra.mxu0 %v3564_v42 }
 0x16f   :  { %3599 = vmatprep.subr.bf16.mxu0 %v4365_v35  ;;  %2834 = vmatmul.mubr.msk.f32.gmra.mrb[60].mxu1 %vm358_vm0, %v3313_v41 }
 0x170   :  { %1822 = vmatprep.mubr.f32.mxu1 %v3828_v31  ;;  %v3319_v29 = vpop.f32.mrb[54].mxu1 }
 0x171   :  { %2755 = vmatmul.mubr.msk.f32.gmra.mrb[18].mxu0 %vm358_vm0, %v4347_v30  ;;  %v1638_v47 = vpop.f32.mrb[55].mxu1 }
 0x172   :  { %1024 = vmatprep.mubr.f32.mxu0 %v3828_v31 }
 0x173   :  { %2835 = vmatmul.mubr.msk.f32.gmra.mrb[62].mxu1 %vm358_vm0, %v1628_v46 }
 0x174   :  { %1828 = vmatprep.mubr.f32.mxu1 %v3828_v31 }
 0x175   :  { %2756 = vmatmul.mubr.msk.f32.gmra.mrb[20].mxu0 %vm358_vm0, %v4344_v8 }
 0x176   :  { %1030 = vmatprep.mubr.f32.mxu0 %v3828_v31 }
 0x177   :  { %2836 = vmatmul.mubr.msk.f32.gmra.mrb[64].mxu1 %vm358_vm0, %v3316_v45 }
 0x178   :  { %1834 = vmatprep.mubr.f32.mxu1 %v3828_v31 }
 0x179   :  { %2757 = vmatmul.mubr.msk.f32.gmra.mrb[22].mxu0 %vm358_vm0, %v4353_v32 }
 0x17a   :  { %1036 = vmatprep.mubr.f32.mxu0 %v3828_v31 }
 0x17b   :  { %2837 = vmatmul.mubr.msk.f32.gmra.mrb[66].mxu1 %vm358_vm0, %v1638_v47 }
 0x17c   :  { %1840 = vmatprep.mubr.f32.mxu1 %v3828_v31 }
 0x17d   :  { %2758 = vmatmul.mubr.msk.f32.gmra.mrb[24].mxu0 %vm358_vm0, %v4350_v12 }
 0x17e   :  { %1042 = vmatprep.mubr.f32.mxu0 %v3828_v31 }
 0x17f   :  { %2838 = vmatmul.mubr.msk.f32.gmra.mrb[68].mxu1 %vm358_vm0, %v3319_v29 }
 0x180   :  { %2036 = vmatprep.mubr.f32.mxu1 %v3828_v31 }
 0x181   :  { %2759 = vmatmul.mubr.msk.f32.gmra.mrb[26].mxu0 %vm358_vm0, %v4376_v22 }
 0x182   :  { %1048 = vmatprep.mubr.f32.mxu0 %v3828_v31 }
 0x185   :  { %2760 = vmatmul.mubr.msk.f32.gmra.mrb[28].mxu0 %vm358_vm0, %v4372_v37 }
 0x186   :  { %1054 = vmatprep.mubr.f32.mxu0 %v3828_v31 }
 0x189   :  { %2761 = vmatmul.mubr.msk.f32.gmra.mrb[30].mxu0 %vm358_vm0, %v4383_v38 }
 0x18a   :  { %1060 = vmatprep.mubr.f32.mxu0 %v3828_v31 }
 0x18d   :  { %2762 = vmatmul.mubr.msk.f32.gmra.mrb[32].mxu0 %vm358_vm0, %v4380_v25 }
 0x18e   :  { %1066 = vmatprep.mubr.f32.mxu0 %v3828_v31 }
 0x191   :  { %2763 = vmatmul.mubr.msk.f32.gmra.mrb[34].mxu0 %vm358_vm0, %v4401_v44 }
 0x192   :  { %1072 = vmatprep.mubr.f32.mxu0 %v3828_v31 }
 0x195   :  { %2764 = vmatmul.mubr.msk.f32.gmra.mrb[36].mxu0 %vm358_vm0, %v4398_v43 }
 0x196   :  { %1078 = vmatprep.mubr.f32.mxu0 %v3828_v31 }
 0x199   :  { %2765 = vmatmul.mubr.msk.f32.gmra.mrb[38].mxu0 %vm358_vm0, %v4420_v52 }
 0x19a   :  { %1084 = vmatprep.mubr.f32.mxu0 %v3828_v31 }
 0x19d   :  { %2766 = vmatmul.mubr.msk.f32.gmra.mrb[40].mxu0 %vm358_vm0, %v4416_v51 }
 0x19e   :  { %1384 = vmatprep.mubr.f32.mxu0 %v3828_v31 }
 0x1a1   :  { %2789 = vmatmul.mubr.msk.f32.vlgmr.msra.gmra.mrb[14].mxu0 %vm358_vm0, %v4446_v62  ;;  %v4672_v62 = vrot.slane %v1875_v57, %v4666_v56 }
 0x1a2   :  { %3601 = vmatpush1.bf16.msra.mxu0 %v4370_v36  ;;  %1390 = vmatprep.mubr.f32.mxu0 %v3828_v31 }
 0x1a3   :  { %3603 = vmatprep.subr.bf16.mxu0 %v4432_v58  ;;  %v1883_v58 = vsub.s32 1, %v1878_v50 }
 0x1a5   :  { %2790 = vmatmul.mubr.msk.f32.gmra.mrb[16].mxu0 %vm358_vm0, %v4440_v60 }
 0x1a6   :  { %1396 = vmatprep.mubr.f32.mxu0 %v3828_v31  ;;  %3605 = vmatpush1.bf16.msra.mxu0 %v4442_v61 }
 0x1a9   :  { %2791 = vmatmul.mubr.msk.f32.gmra.mrb[18].mxu0 %vm358_vm0, %v4455_v2 }
 0x1aa   :  { %1402 = vmatprep.mubr.f32.mxu0 %v3828_v31 }
 0x1ad   :  { %2792 = vmatmul.mubr.msk.f32.gmra.mrb[20].mxu0 %vm358_vm0, %v4451_v0  ;;  %v4674_v0 = vrot.slane %v1875_v57, %v1883_v58 }
 0x1ae   :  { %1408 = vmatprep.mubr.f32.mxu0 %v3828_v31 }
 0x1b1   :  { %2793 = vmatmul.mubr.msk.f32.gmra.mrb[22].mxu0 %vm358_vm0, %v4462_v1 }
 0x1b2   :  { %1414 = vmatprep.mubr.f32.mxu0 %v3828_v31 }
 0x1b5   :  { %2794 = vmatmul.mubr.msk.f32.gmra.mrb[24].mxu0 %vm358_vm0, %v4458_v6 }
 0x1b6   :  { %1420 = vmatprep.mubr.f32.mxu0 %v3828_v31 }
 0x1b9   :  { %2795 = vmatmul.mubr.msk.f32.gmra.mrb[26].mxu0 %vm358_vm0, %v4469_v11 }
 0x1ba   :  { %1426 = vmatprep.mubr.f32.mxu0 %v3828_v31 }
 0x1bd   :  { %2796 = vmatmul.mubr.msk.f32.gmra.mrb[28].mxu0 %vm358_vm0, %v4465_v9 }
 0x1be   :  { %1432 = vmatprep.mubr.f32.mxu0 %v3828_v31 }
 0x1c1   :  { %2797 = vmatmul.mubr.msk.f32.gmra.mrb[30].mxu0 %vm358_vm0, %v4476_v14 }
 0x1c2   :  { %1438 = vmatprep.mubr.f32.mxu0 %v3828_v31 }
 0x1c5   :  { %2798 = vmatmul.mubr.msk.f32.gmra.mrb[32].mxu0 %vm358_vm0, %v4472_v63 }
 0x1c6   :  { %1444 = vmatprep.mubr.f32.mxu0 %v3828_v31 }
 0x1c9   :  { %2799 = vmatmul.mubr.msk.f32.gmra.mrb[34].mxu0 %vm358_vm0, %v4483_v17 }
 0x1ca   :  { %1450 = vmatprep.mubr.f32.mxu0 %v3828_v31 }
 0x1cd   :  { %2800 = vmatmul.mubr.msk.f32.gmra.mrb[36].mxu0 %vm358_vm0, %v4479_v7 }
 0x1ce   :  { %1456 = vmatprep.mubr.f32.mxu0 %v3828_v31 }
 0x1d1   :  { %2801 = vmatmul.mubr.msk.f32.gmra.mrb[38].mxu0 %vm358_vm0, %v4490_v20 }
 0x1d2   :  { %1462 = vmatprep.mubr.f32.mxu0 %v3828_v31 }
 0x1d5   :  { %2802 = vmatmul.mubr.msk.f32.gmra.mrb[40].mxu0 %vm358_vm0, %v4486_v4 }
 0x1d6   :  { %1762 = vmatprep.mubr.f32.mxu0 %v3828_v31 }
 0x1d9   :  { %2825 = vmatmul.mubr.msk.f32.vlgmr.msra.gmra.mrb[14].mxu0 %vm358_vm0, %v4500_v10 }
 0x1da   :  { %1768 = vmatprep.mubr.f32.mxu0 %v3828_v31 }
 0x1dd   :  { %2826 = vmatmul.mubr.msk.f32.gmra.mrb[16].mxu0 %vm358_vm0, %v4496_v13 }
 0x1de   :  { %1774 = vmatprep.mubr.f32.mxu0 %v3828_v31 }
 0x1e1   :  { %2827 = vmatmul.mubr.msk.f32.gmra.mrb[18].mxu0 %vm358_vm0, %v4507_v18 }
 0x1e2   :  { %1780 = vmatprep.mubr.f32.mxu0 %v3828_v31 }
 0x1e5   :  { %2828 = vmatmul.mubr.msk.f32.gmra.mrb[20].mxu0 %vm358_vm0, %v4503_v23 }
 0x1e6   :  { %1786 = vmatprep.mubr.f32.mxu0 %v3828_v31 }
 0x1e9   :  { %2829 = vmatmul.mubr.msk.f32.gmra.mrb[22].mxu0 %vm358_vm0, %v4514_v26 }
 0x1ea   :  { %1792 = vmatprep.mubr.f32.mxu0 %v3828_v31 }
 0x1ed   :  { %2830 = vmatmul.mubr.msk.f32.gmra.mrb[24].mxu0 %vm358_vm0, %v4510_v15 }
 0x1ee   :  { %1798 = vmatprep.mubr.f32.mxu0 %v3828_v31 }
 0x1f1   :  { %2831 = vmatmul.mubr.msk.f32.gmra.mrb[26].mxu0 %vm358_vm0, %v4532_v33  ;;  %vm2439_vm0 = vcmask 539648  }
 0x238   :  { %v1806_v5 = vpop.f32.mrb[56].mxu1 }
 0x239   :  { %v1808_v8 = vpop.f32.mrb[57].mxu1 }
 0x23e   :  { %v1812_v30 = vpop.f32.mrb[58].mxu1 }
 0x23f   :  { %v1814_v12 = vpop.f32.mrb[59].mxu1 }
 0x242   :  { %v1818_v32 = vpop.f32.mrb[60].mxu1 }
 0x243   :  { %v1820_v35 = vpop.f32.mrb[61].mxu1 }
 0x246   :  { %v1824_v36 = vpop.f32.mrb[62].mxu1 }
 0x247   :  { %v1826_v37 = vpop.f32.mrb[63].mxu1 }
 0x24a   :  { %v1830_v22 = vpop.f32.mrb[64].mxu1 }
 0x24b   :  { %v1832_v25 = vpop.f32.mrb[65].mxu1 }
 0x24e   :  { %v1836_v38 = vpop.f32.mrb[66].mxu1 }
 0x24f   :  { %v1838_v43 = vpop.f32.mrb[67].mxu1 }
 0x252   :  { %v1842_v44 = vpop.f32.mrb[68].mxu1 }
 0x253   :  { %v1844_v48 = vpop.f32.mrb[69].mxu1 }
 0x290   :  { %v1428_v51 = vpop.f32.mrb[28].mxu0 }
 0x291   :  { %v4662_v52 = vadd.f32 %v1806_v5, %v1428_v51  ;;  %v1430_v53 = vpop.f32.mrb[29].mxu0 }
 0x292   :  { %v4664_v54 = vadd.f32 %v1808_v8, %v1430_v53 }
 0x294   :  { %v1434_v59 = vpop.f32.mrb[30].mxu0 }
 0x295   :  { %v3700_v55 = vadd.f32 %v1812_v30, %v1434_v59  ;;  %v1436_v60 = vpop.f32.mrb[31].mxu0 }
 0x296   :  { %v3701_v61 = vadd.f32 %v1814_v12, %v1436_v60 }
 0x297   :  { %v1903_v6 = vadd.f32 %v3700_v55, %v4672_v62 }
 0x298   :  { %v1440_v2 = vpop.f32.mrb[32].mxu0  ;;  %v1904_v11 = vadd.f32 %v3701_v61, %v4674_v0 }
 0x299   :  { %v3702_v1 = vadd.f32 %v1818_v32, %v1440_v2  ;;  %v1442_v9 = vpop.f32.mrb[33].mxu0  ;;  %v1931_v4 = vmax.f32 %v1903_v6, 0.0 }
 0x29a   :  { %v3703_v63 = vadd.f32 %v1820_v35, %v1442_v9  ;;  %v1932_v23 = vmax.f32 %v1904_v11, 0.0 }
 0x29b   :  { %v1905_v14 = vadd.f32 %v3702_v1, %v4672_v62 }
 0x29c   :  { %v1906_v7 = vadd.f32 %v3703_v63, %v4674_v0  ;;  %v1446_v17 = vpop.f32.mrb[34].mxu0 }
 0x29d   :  { %v1933_v20 = vmax.f32 %v1905_v14, 0.0  ;;  %v3704_v13 = vadd.f32 %v1824_v36, %v1446_v17  ;;  %v1448_v10 = vpop.f32.mrb[35].mxu0 }
 0x29e   :  { %v1934_v18 = vmax.f32 %v1906_v7, 0.0  ;;  %v3705_v15 = vadd.f32 %v1826_v37, %v1448_v10 }
 0x29f   :  { %v4680_v26 = vpack.c.bf16 %v1933_v20, %v1931_v4  ;;  %v1907_v3 = vadd.f32 %v3704_v13, %v4672_v62 }
 0x2a0   :  { %v1452_v24 = vpop.f32.mrb[36].mxu0  ;;  %v4682_v21 = vpack.c.bf16 %v1934_v18, %v1932_v23  ;;  %v1908_v33 = vadd.f32 %v3705_v15, %v4674_v0 }
 0x2a1   :  { %v3706_v28 = vadd.f32 %v1830_v22, %v1452_v24  ;;  %v1454_v16 = vpop.f32.mrb[37].mxu0  ;;  %v1935_v41 = vmax.f32 %v1907_v3, 0.0 }
 0x2a2   :  { %v3707_v34 = vadd.f32 %v1832_v25, %v1454_v16  ;;  %v1936_v46 = vmax.f32 %v1908_v33, 0.0 }
 0x2a3   :  { %v1909_v19 = vadd.f32 %v3706_v28, %v4672_v62 }
 0x2a4   :  { %v1910_v39 = vadd.f32 %v3707_v34, %v4674_v0  ;;  %v1458_v40 = vpop.f32.mrb[38].mxu0 }
 0x2a5   :  { %v1937_v27 = vmax.f32 %v1909_v19, 0.0  ;;  %v3708_v42 = vadd.f32 %v1836_v38, %v1458_v40  ;;  %v1460_v45 = vpop.f32.mrb[39].mxu0 }
 0x2a6   :  { %v1938_v29 = vmax.f32 %v1910_v39, 0.0  ;;  %v3709_v47 = vadd.f32 %v1838_v43, %v1460_v45  ;;  %v1901_v45 = vadd.f32 %v4662_v52, %v4672_v62 }
 0x2a7   :  { %v4688_v5 = vpack.c.bf16 %v1937_v27, %v1935_v41  ;;  %v1911_v12 = vadd.f32 %v3708_v42, %v4672_v62 }
 0x2a8   :  { %v1464_v8 = vpop.f32.mrb[40].mxu0  ;;  %v4690_v30 = vpack.c.bf16 %v1938_v29, %v1936_v46  ;;  %v1912_v36 = vadd.f32 %v3709_v47, %v4674_v0  ;;  %v1902_v47 = vadd.f32 %v4664_v54, %v4674_v0  ;;  %v2079_v54 = vld [vmem:[%s5088_s5] sm:$0xff] }
 0x2a9   :  { %v3710_v32 = vadd.f32 %v1842_v44, %v1464_v8  ;;  %v1466_v35 = vpop.f32.mrb[41].mxu0  ;;  %v1939_v49 = vmax.f32 %v1911_v12, 0.0 }
 0x2aa   :  { %v3711_v37 = vadd.f32 %v1844_v48, %v1466_v35  ;;  %v1940_v51 = vmax.f32 %v1912_v36, 0.0 }
 0x2ab   :  { %v1913_v22 = vadd.f32 %v3710_v32, %v4672_v62 }
 0x2ac   :  { %v1914_v25 = vadd.f32 %v3711_v37, %v4674_v0  ;;  %v1764_v38 = vpop.f32.mrb[14].mxu0 }
 0x2ad   :  { %v1941_v50 = vmax.f32 %v1913_v22, 0.0  ;;  %v1766_v43 = vpop.f32.mrb[15].mxu0  ;;  %v1887_v58 = vadd.f32 %v4672_v62, %v1764_v38  ;;  %v1929_v38 = vmax.f32 %v1901_v45, 0.0  ;;  %v2224_v45 = vld [vmem:[%s5090_s6 + $0x10] sm:$0xff] }
 0x2ae   :  { %v1942_v53 = vmax.f32 %v1914_v25, 0.0  ;;  %v1888_v44 = vadd.f32 %v4674_v0, %v1766_v43 }
 0x2af   :  { %v4696_v57 = vpack.c.bf16 %v1941_v50, %v1939_v49  ;;  %v1915_v2 = vmax.f32 %v1887_v58, 0.0  ;;  %v1930_v50 = vmax.f32 %v1902_v47, 0.0  ;;  %v2083_v58 = vld [vmem:[%s5088_s5 + $0x20] sm:$0xff] }
 0x2b0   :  { %v1770_v59 = vpop.f32.mrb[16].mxu0  ;;  %v3630_v55 = vpack.c.bf16 %v1942_v53, %v1940_v51  ;;  %v1916_v1 = vmax.f32 %v1888_v44, 0.0  ;;  %v1944_v53 = vld [vmem:[%s5089_s4 + $0x8] sm:$0xff] }
 0x2b1   :  { %v1889_v48 = vadd.f32 %v4672_v62, %v1770_v59  ;;  %v1772_v60 = vpop.f32.mrb[17].mxu0  ;;  %v2084_v44 = vld [vmem:[%s5088_s5 + $0x28] sm:$0xff]  ;;  %v1945_v59 = vld [vmem:[%s5089_s4 + $0x10] sm:$0xff] }
 0x2b2   :  { %v1890_v61 = vadd.f32 %v4674_v0, %v1772_v60  ;;  %v2086_v60 = vld [vmem:[%s5088_s5 + $0x38] sm:$0xff] }
 0x2b3   :  { %v1917_v6 = vmax.f32 %v1889_v48, 0.0  ;;  %v2085_v48 = vld [vmem:[%s5088_s5 + $0x30] sm:$0xff] }
 0x2b4   :  { %v1918_v9 = vmax.f32 %v1890_v61, 0.0  ;;  %v1776_v11 = vpop.f32.mrb[18].mxu0  ;;  %v1946_v61 = vld [vmem:[%s5089_s4 + $0x18] sm:$0xff] }
 0x2b5   :  { %v3608_v63 = vpack.c.bf16 %v1917_v6, %v1915_v2  ;;  %v1778_v14 = vpop.f32.mrb[19].mxu0  ;;  %v1891_v17 = vadd.f32 %v4672_v62, %v1776_v11  ;;  %v3644_v2 = vpack.c.bf16 %v2086_v60, %v2085_v48  ;;  %v2087_v6 = vld [vmem:[%s5088_s5 + $0x40] sm:$0xff] }
 0x2b6   :  { %v3606_v7 = vpack.c.bf16 %v1918_v9, %v1916_v1  ;;  %v1892_v4 = vadd.f32 %v4674_v0, %v1778_v14  ;;  %v2088_v1 = vld [vmem:[%s5088_s5 + $0x48] sm:$0xff]  ;;  %v1947_v9 = vld [vmem:[%s5089_s4 + $0x20] sm:$0xff]  ;;  %v2090_v14 = vld [vmem:[%s5088_s5 + $0x58] sm:$0xff] }
 0x2b7   :  { %v1919_v18 = vmax.f32 %v1891_v17, 0.0  ;;  %v3647_v11 = vpack.c.bf16 %v2088_v1, %v2087_v6 }
 0x2b8   :  { %v1782_v20 = vpop.f32.mrb[20].mxu0  ;;  %3607 = vmatprep.subr.bf16.mxu1 %v3606_v7  ;;  %v1920_v24 = vmax.f32 %v1892_v4, 0.0  ;;  %v1948_v7 = vld [vmem:[%s5089_s4 + $0x28] sm:$0xff]  ;;  %v2091_v4 = vld [vmem:[%s5088_s5 + $0x60] sm:$0xff] }
 0x2b9   :  { %v1893_v13 = vadd.f32 %v4672_v62, %v1782_v20  ;;  %v1784_v10 = vpop.f32.mrb[21].mxu0  ;;  %3609 = vmatpush1.bf16.msra.mxu1 %v3608_v63  ;;  %v2089_v63 = vld [vmem:[%s5088_s5 + $0x50] sm:$0xff]  ;;  %v2092_v20 = vld [vmem:[%s5088_s5 + $0x68] sm:$0xff] }
 0x2ba   :  { %v1894_v23 = vadd.f32 %v4674_v0, %v1784_v10  ;;  %v3650_v17 = vpack.c.bf16 %v2090_v14, %v2089_v63  ;;  %v3653_v10 = vpack.c.bf16 %v2092_v20, %v2091_v4 }
 0x2bb   :  { %v1921_v15 = vmax.f32 %v1893_v13, 0.0  ;;  %v1949_v13 = vld [vmem:[%s5089_s4 + $0x30] sm:$0xff] }
 0x2bc   :  { %v1922_v3 = vmax.f32 %v1894_v23, 0.0  ;;  %v1788_v28 = vpop.f32.mrb[22].mxu0  ;;  %v2093_v23 = vld [vmem:[%s5088_s5 + $0x70] sm:$0xff] }
 0x2bd   :  { %v3612_v16 = vpack.c.bf16 %v1921_v15, %v1919_v18  ;;  %v1790_v33 = vpop.f32.mrb[23].mxu0  ;;  %v1895_v19 = vadd.f32 %v4672_v62, %v1788_v28  ;;  %v2094_v18 = vld [vmem:[%s5088_s5 + $0x78] sm:$0xff] }
 0x2be   :  { %v3610_v34 = vpack.c.bf16 %v1922_v3, %v1920_v24  ;;  %v1896_v39 = vadd.f32 %v4674_v0, %v1790_v33  ;;  %v3656_v15 = vpack.c.bf16 %v2094_v18, %v2093_v23  ;;  %v2095_v24 = vld [vmem:[%s5088_s5 + $0x80] sm:$0xff]  ;;  %v2096_v3 = vld [vmem:[%s5088_s5 + $0x88] sm:$0xff]  ;;  %v2098_v33 = vld [vmem:[%s5088_s5 + $0x98] sm:$0xff] }
 0x2bf   :  { %v1923_v46 = vmax.f32 %v1895_v19, 0.0  ;;  %v3659_v28 = vpack.c.bf16 %v2096_v3, %v2095_v24  ;;  %v2099_v19 = vld [vmem:[%s5088_s5 + $0xa0] sm:$0xff] }
 0x2c0   :  { %v1794_v40 = vpop.f32.mrb[24].mxu0  ;;  %3611 = vmatprep.subr.bf16.mxu1 %v3610_v34  ;;  %v1924_v8 = vmax.f32 %v1896_v39, 0.0  ;;  %v2222_v39 = vld [vmem:[%s5090_s6] sm:$0xff] }
 0x2c1   :  { %v1897_v41 = vadd.f32 %v4672_v62, %v1794_v40  ;;  %v1796_v27 = vpop.f32.mrb[25].mxu0  ;;  %3613 = vmatpush1.bf16.msra.mxu1 %v3612_v16  ;;  %v2097_v16 = vld [vmem:[%s5088_s5 + $0x90] sm:$0xff]  ;;  %v2223_v40 = vld [vmem:[%s5090_s6 + $0x8] sm:$0xff] }
 0x2c2   :  { %v1898_v42 = vadd.f32 %v4674_v0, %v1796_v27  ;;  %v3662_v34 = vpack.c.bf16 %v2098_v33, %v2097_v16  ;;  %v3665_v27 = vpack.c.bf16 %v2223_v40, %v2222_v39 }
 0x2c3   :  { %v1925_v29 = vmax.f32 %v1897_v41, 0.0 }
 0x2c4   :  { %v1926_v12 = vmax.f32 %v1898_v42, 0.0  ;;  %v1800_v32 = vpop.f32.mrb[26].mxu0 }
 0x2c5   :  { %v3616_v35 = vpack.c.bf16 %v1925_v29, %v1923_v46  ;;  %v1899_v36 = vadd.f32 %v4672_v62, %v1800_v32  ;;  %v1802_v37 = vpop.f32.mrb[27].mxu0  ;;  %v2080_v62 = vld [vmem:[%s5088_s5 + $0x8] sm:$0xff]  ;;  %v2225_v46 = vld [vmem:[%s5090_s6 + $0x18] sm:$0xff] }
 0x2c6   :  { %v3614_v22 = vpack.c.bf16 %v1926_v12, %v1924_v8  ;;  %v1900_v25 = vadd.f32 %v4674_v0, %v1802_v37  ;;  %v1943_v0 = vld [vmem:[%s5089_s4] sm:$0xff]  ;;  %v3668_v47 = vpack.c.bf16 %v2225_v46, %v2224_v45  ;;  %v2227_v32 = vld [vmem:[%s5090_s6 + $0x28] sm:$0xff] }
 0x2c7   :  { %v1927_v49 = vmax.f32 %v1899_v36, 0.0  ;;  %v2226_v12 = vld [vmem:[%s5090_s6 + $0x20] sm:$0xff] }
 0x2c8   :  { %v1928_v43 = vmax.f32 %v1900_v25, 0.0  ;;  %3615 = vmatprep.subr.bf16.mxu1 %v3614_v22  ;;  %v3671_v36 = vpack.c.bf16 %v2227_v32, %v2226_v12  ;;  %v2228_v22 = vld [vmem:[%s5090_s6 + $0x30] sm:$0xff]  ;;  %v2229_v25 = vld [vmem:[%s5090_s6 + $0x38] sm:$0xff] }
 0x2c9   :  { %v3620_v52 = vpack.c.bf16 %v1929_v38, %v1927_v49  ;;  %3617 = vmatpush1.bf16.msra.mxu1 %v3616_v35  ;;  %v3674_v49 = vpack.c.bf16 %v2229_v25, %v2228_v22 }
 0x2ca   :  { %v3618_v51 = vpack.c.bf16 %v1930_v50, %v1928_v43  ;;  %v2230_v43 = vld [vmem:[%s5090_s6 + $0x40] sm:$0xff] }
 0x2cc   :  { %3619 = vmatprep.subr.bf16.mxu1 %v3618_v51 }
 0x2cd   :  { %3621 = vmatpush1.bf16.msra.mxu1 %v3620_v52  ;;  %v2231_v52 = vld [vmem:[%s5090_s6 + $0x48] sm:$0xff] }
 0x2ce   :  { %3623 = vmatprep.subr.bf16.mxu1 %v4682_v21  ;;  %v3829_v21 = vmov 0.0|0.0  }
 0x2d1   :  { %3625 = vmatpush1.bf16.msra.mxu1 %v4680_v26  ;;  %v3635_v26 = vpack.c.bf16 %v2080_v62, %v2079_v54  ;;  %v3677_v54 = vpack.c.bf16 %v2231_v52, %v2230_v43 }
 0x2d2   :  { %3627 = vmatprep.subr.bf16.mxu1 %v4690_v30  ;;  %v2082_v30 = vld [vmem:[%s5088_s5 + $0x18] sm:$0xff] }
 0x2d5   :  { %3629 = vmatpush1.bf16.msra.mxu1 %v4688_v5  ;;  %v2081_v5 = vld [vmem:[%s5088_s5 + $0x10] sm:$0xff] }
 0x2d6   :  { %3631 = vmatprep.subr.bf16.mxu1 %v3630_v55  ;;  %v3641_v55 = vpack.c.bf16 %v2084_v44, %v2083_v58 }
 0x2d9   :  { %3633 = vmatpush1.bf16.msra.mxu1 %v4696_v57  ;;  %v3638_v57 = vpack.c.bf16 %v2082_v30, %v2081_v5  ;;  %v2232_v5 = vld [vmem:[%s5090_s6 + $0x50] sm:$0xf]  ;;  %s3831_s6 = smov 18  }
 0x2da   :  { %3634 = vmatprep.subr.bf16.mxu1 %v3829_v21 }
 0x2dc   :  { %2839 = vmatmul.mubr.msk.f32.vlgmr.msra.gmra.mrb[70].mxu1 %vm1950_vm1, %v1943_v0 }
 0x2dd   :  { %2042 = vmatprep.mubr.f32.mxu1 %v3828_v31  ;;  %3636 = vmatpush1.bf16.msra.mxu1 %v3635_v26 }
 0x2de   :  { %3637 = vmatprep.subr.bf16.mxu1 %v3829_v21 }
 0x2e0   :  { %2840 = vmatmul.mubr.msk.f32.gmra.mrb[72].mxu1 %vm1950_vm1, %v1944_v53 }
 0x2e1   :  { %2048 = vmatprep.mubr.f32.mxu1 %v3828_v31  ;;  %3639 = vmatpush1.bf16.msra.mxu1 %v3638_v57 }
 0x2e2   :  { %3640 = vmatprep.subr.bf16.mxu1 %v3829_v21 }
 0x2e4   :  { %2841 = vmatmul.mubr.msk.f32.gmra.mrb[74].mxu1 %vm1950_vm1, %v1945_v59 }
 0x2e5   :  { %2054 = vmatprep.mubr.f32.mxu1 %v3828_v31  ;;  %3642 = vmatpush1.bf16.msra.mxu1 %v3641_v55 }
 0x2e6   :  { %3643 = vmatprep.subr.bf16.mxu1 %v3829_v21 }
 0x2e8   :  { %2842 = vmatmul.mubr.msk.f32.gmra.mrb[76].mxu1 %vm1950_vm1, %v1946_v61 }
 0x2e9   :  { %2060 = vmatprep.mubr.f32.mxu1 %v3828_v31  ;;  %3645 = vmatpush1.bf16.msra.mxu1 %v3644_v2 }
 0x2ea   :  { %3646 = vmatprep.subr.bf16.mxu1 %v3829_v21 }
 0x2ec   :  { %2843 = vmatmul.mubr.msk.f32.gmra.mrb[78].mxu1 %vm1950_vm1, %v1947_v9 }
 0x2ed   :  { %2066 = vmatprep.mubr.f32.mxu1 %v3828_v31  ;;  %3648 = vmatpush1.bf16.msra.mxu1 %v3647_v11 }
 0x2ee   :  { %3649 = vmatprep.subr.bf16.mxu1 %v3829_v21 }
 0x2f0   :  { %2844 = vmatmul.mubr.msk.f32.gmra.mrb[80].mxu1 %vm1950_vm1, %v1948_v7 }
 0x2f1   :  { %2072 = vmatprep.mubr.f32.mxu1 %v3828_v31  ;;  %3651 = vmatpush1.bf16.msra.mxu1 %v3650_v17 }
 0x2f2   :  { %3652 = vmatprep.subr.bf16.mxu1 %v3829_v21 }
 0x2f4   :  { %2845 = vmatmul.mubr.msk.f32.gmra.mrb[82].mxu1 %vm1950_vm1, %v1949_v13  ;;  %vm2441_vm1 = vcmask 588800  }
 0x2f5   :  { %3654 = vmatpush1.bf16.msra.mxu1 %v3653_v10 }
 0x2f6   :  { %3655 = vmatprep.subr.bf16.mxu1 %v3829_v21 }
 0x2f9   :  { %3657 = vmatpush1.bf16.msra.mxu1 %v3656_v15 }
 0x2fa   :  { %3658 = vmatprep.subr.bf16.mxu1 %v3829_v21 }
 0x2fd   :  { %3660 = vmatpush1.bf16.msra.mxu1 %v3659_v28 }
 0x2fe   :  { %3661 = vmatprep.subr.bf16.mxu1 %v3829_v21 }
 0x301   :  { %3663 = vmatpush1.bf16.msra.mxu1 %v3662_v34 }
 0x302   :  { %2162 = vmatprep.subr.mxu1 %v3828_v31 }
 0x305   :  { %2163 = vmatpush1.msra.mxu1 %v2099_v19 }
 0x306   :  { %3664 = vmatprep.subr.bf16.mxu1 %v3829_v21 }
 0x3af   :  { %v2038_v41 = vpop.f32.mrb[70].mxu1 }
 0x3b0   :  { %v2040_v42 = vpop.f32.mrb[71].mxu1 }
 0x3b1   :  { %2846 = vmatprep.mubr.msk.f32.mxu1 %vm2100_vm2, %v2040_v42 }
 0x3b2   :  { %2187 = vmatmul.mubr.f32.vlgmr.msra.gmra.mrb[84].mxu1 %v2038_v41 }
 0x3b3   :  { %v2044_v29 = vpop.f32.mrb[72].mxu1  ;;  %3666 = vmatpush3.bf16.msra.mxu1 %v3665_v27 }
 0x3b4   :  { %v2046_v8 = vpop.f32.mrb[73].mxu1  ;;  %3667 = vmatprep.subr.bf16.mxu1 %v3829_v21 }
 0x3b5   :  { %2847 = vmatprep.mubr.msk.f32.mxu1 %vm2100_vm2, %v2046_v8 }
 0x3b6   :  { %2192 = vmatmul.mubr.f32.gmra.mrb[86].mxu1 %v2044_v29 }
 0x3b7   :  { %v2050_v35 = vpop.f32.mrb[74].mxu1  ;;  %3669 = vmatpush3.bf16.msra.mxu1 %v3668_v47 }
 0x3b8   :  { %v2052_v37 = vpop.f32.mrb[75].mxu1  ;;  %3670 = vmatprep.subr.bf16.mxu1 %v3829_v21 }
 0x3b9   :  { %2848 = vmatprep.mubr.msk.f32.mxu1 %vm2100_vm2, %v2052_v37 }
 0x3ba   :  { %2197 = vmatmul.mubr.f32.gmra.mrb[88].mxu1 %v2050_v35 }
 0x3bb   :  { %v2056_v38 = vpop.f32.mrb[76].mxu1  ;;  %3672 = vmatpush3.bf16.msra.mxu1 %v3671_v36 }
 0x3bc   :  { %v2058_v50 = vpop.f32.mrb[77].mxu1  ;;  %3673 = vmatprep.subr.bf16.mxu1 %v3829_v21 }
 0x3bd   :  { %2849 = vmatprep.mubr.msk.f32.mxu1 %vm2100_vm2, %v2058_v50 }
 0x3be   :  { %2202 = vmatmul.mubr.f32.gmra.mrb[90].mxu1 %v2056_v38 }
 0x3bf   :  { %v2062_v51 = vpop.f32.mrb[78].mxu1  ;;  %3675 = vmatpush3.bf16.msra.mxu1 %v3674_v49 }
 0x3c0   :  { %v2064_v62 = vpop.f32.mrb[79].mxu1  ;;  %3676 = vmatprep.subr.bf16.mxu1 %v3829_v21 }
 0x3c1   :  { %2850 = vmatprep.mubr.msk.f32.mxu1 %vm2100_vm2, %v2064_v62 }
 0x3c2   :  { %2207 = vmatmul.mubr.f32.gmra.mrb[92].mxu1 %v2062_v51 }
 0x3c3   :  { %v2068_v0 = vpop.f32.mrb[80].mxu1  ;;  %3678 = vmatpush3.bf16.msra.mxu1 %v3677_v54 }
 0x3c4   :  { %v2070_v26 = vpop.f32.mrb[81].mxu1  ;;  %3340 = vmatprep.subr.mxu1 %v3828_v31 }
 0x3c5   :  { %2851 = vmatprep.mubr.msk.f32.mxu1 %vm2100_vm2, %v2070_v26 }
 0x3c6   :  { %2212 = vmatmul.mubr.f32.gmra.mrb[94].mxu1 %v2068_v0 }
 0x3c7   :  { %v2074_v30 = vpop.f32.mrb[82].mxu1  ;;  %3341 = vmatpush3.msk.msra.mxu1 %vm2255_vm3, %v2232_v5 }
 0x3c8   :  { %v2076_v53 = vpop.f32.mrb[83].mxu1  ;;  %3679 = vmatprep.subr.bf16.mxu1 %v3829_v21 }
 0x3c9   :  { %2852 = vmatprep.mubr.msk.f32.mxu1 %vm2100_vm2, %v2076_v53  ;;  %vm2443_vm2 = vcmask 637952  }
 0x3ca   :  { %2217 = vmatmul.mubr.f32.gmra.mrb[96].mxu1 %v2074_v30 }
 0x3cb   :  { %3342 = vmatprep.mubr.msk.f32.mxu1 %vm3830_vm4, %v3828_v31 }
 0x485   :  { %v4879_v57 = vpop.f32.mrb[84].mxu1 }
 0x486   :  { %v2190_v58 = vpop.f32.mrb[85].mxu1  ;;  %3343 = vmatmul.mubr.msk.f32.vlgmr.msra.gmra.mrb[98].mxu1 %vm2233_vm5, %v4879_v57 }
 0x487   :  { %3345 = vmatprep.mubr.msk.f32.mxu1 %vm3830_vm4, %v3828_v31  ;;  %3681 = vmatpush3.bf16.msra.mxu1 %v3665_v27 }
 0x488   :  { %3682 = vmatprep.subr.bf16.mxu1 %v3829_v21 }
 0x489   :  { %v4886_v44 = vpop.f32.mrb[86].mxu1 }
 0x48a   :  { %v2195_v59 = vpop.f32.mrb[87].mxu1  ;;  %3346 = vmatmul.mubr.msk.f32.gmra.mrb[100].mxu1 %vm2233_vm5, %v4886_v44 }
 0x48b   :  { %3348 = vmatprep.mubr.msk.f32.mxu1 %vm3830_vm4, %v3828_v31  ;;  %3684 = vmatpush3.bf16.msra.mxu1 %v3668_v47 }
 0x48c   :  { %3685 = vmatprep.subr.bf16.mxu1 %v3829_v21 }
 0x48d   :  { %v4893_v55 = vpop.f32.mrb[88].mxu1 }
 0x48e   :  { %v2200_v48 = vpop.f32.mrb[89].mxu1  ;;  %3349 = vmatmul.mubr.msk.f32.gmra.mrb[102].mxu1 %vm2233_vm5, %v4893_v55 }
 0x48f   :  { %3351 = vmatprep.mubr.msk.f32.mxu1 %vm3830_vm4, %v3828_v31  ;;  %3687 = vmatpush3.bf16.msra.mxu1 %v3671_v36 }
 0x490   :  { %3688 = vmatprep.subr.bf16.mxu1 %v3829_v21 }
 0x491   :  { %v4900_v60 = vpop.f32.mrb[90].mxu1 }
 0x492   :  { %v2205_v61 = vpop.f32.mrb[91].mxu1  ;;  %3352 = vmatmul.mubr.msk.f32.gmra.mrb[104].mxu1 %vm2233_vm5, %v4900_v60 }
 0x493   :  { %3354 = vmatprep.mubr.msk.f32.mxu1 %vm3830_vm4, %v3828_v31  ;;  %3690 = vmatpush3.bf16.msra.mxu1 %v3674_v49 }
 0x494   :  { %3691 = vmatprep.subr.bf16.mxu1 %v3829_v21 }
 0x495   :  { %v4907_v2 = vpop.f32.mrb[92].mxu1 }
 0x496   :  { %v2210_v6 = vpop.f32.mrb[93].mxu1  ;;  %3355 = vmatmul.mubr.msk.f32.gmra.mrb[106].mxu1 %vm2233_vm5, %v4907_v2 }
 0x497   :  { %3357 = vmatprep.mubr.msk.f32.mxu1 %vm3830_vm4, %v3828_v31  ;;  %3693 = vmatpush3.bf16.msra.mxu1 %v3677_v54 }
 0x498   :  { %3383 = vmatprep.subr.mxu1 %v3828_v31 }
 0x499   :  { %v4914_v1 = vpop.f32.mrb[94].mxu1 }
 0x49a   :  { %v2215_v9 = vpop.f32.mrb[95].mxu1  ;;  %3358 = vmatmul.mubr.msk.f32.gmra.mrb[108].mxu1 %vm2233_vm5, %v4914_v1 }
 0x49b   :  { %3360 = vmatprep.mubr.msk.f32.mxu1 %vm3830_vm4, %v3828_v31  ;;  %3384 = vmatpush3.msk.msra.mxu1 %vm2255_vm3, %v2232_v5 }
 0x49d   :  { %v4921_v21 = vpop.f32.mrb[96].mxu1 }
 0x49e   :  { %v2220_v11 = vpop.f32.mrb[97].mxu1  ;;  %3361 = vmatmul.mubr.msk.f32.gmra.mrb[110].mxu1 %vm2233_vm5, %v4921_v21 }
 0x49f   :  { %3385 = vmatprep.mubr.msk.f32.mxu1 %vm3830_vm4, %v3828_v31 }
 0x559   :  { %v2325_v63 = vpop.f32.mrb[98].mxu1 }
 0x55a   :  { %v3344_v14 = vpop.f32.mrb[99].mxu1  ;;  %v2360_v17 = vsel %vm2359_vm6, %v2325_v63, 0.0 }
 0x55d   :  { %v2330_v7 = vpop.f32.mrb[100].mxu1 }
 0x55e   :  { %v2361_v4 = vsel %vm2359_vm6, %v2330_v7, 0.0  ;;  %v3347_v20 = vpop.f32.mrb[101].mxu1 }
 0x55f   :  { %v2362_v13 = vadd.f32 %v2361_v4, %v2360_v17 }
 0x561   :  { %v2335_v10 = vpop.f32.mrb[102].mxu1 }
 0x562   :  { %v2363_v23 = vsel %vm2359_vm6, %v2335_v10, 0.0  ;;  %v3350_v18 = vpop.f32.mrb[103].mxu1 }
 0x563   :  { %v2364_v15 = vadd.f32 %v2363_v23, %v2362_v13 }
 0x565   :  { %v2340_v24 = vpop.f32.mrb[104].mxu1 }
 0x566   :  { %v2365_v3 = vsel %vm2359_vm6, %v2340_v24, 0.0  ;;  %v3353_v28 = vpop.f32.mrb[105].mxu1 }
 0x567   :  { %v2366_v16 = vadd.f32 %v2365_v3, %v2364_v15 }
 0x569   :  { %v2345_v33 = vpop.f32.mrb[106].mxu1 }
 0x56a   :  { %v2367_v34 = vsel %vm2359_vm6, %v2345_v33, 0.0  ;;  %v3356_v19 = vpop.f32.mrb[107].mxu1 }
 0x56b   :  { %v2368_v39 = vadd.f32 %v2367_v34, %v2366_v16 }
 0x56d   :  { %v2350_v40 = vpop.f32.mrb[108].mxu1 }
 0x56e   :  { %v2369_v41 = vsel %vm2359_vm6, %v2350_v40, 0.0  ;;  %v3359_v27 = vpop.f32.mrb[109].mxu1 }
 0x56f   :  { %v2370_v42 = vadd.f32 %v2369_v41, %v2368_v39 }
 0x571   :  { %v2355_v45 = vpop.f32.mrb[110].mxu1 }
 0x572   :  { %v2371_v46 = vsel %vm2359_vm6, %v2355_v45, 0.0  ;;  %v3362_v29 = vpop.f32.mrb[111].mxu1 }
 0x573   :  { %v2372_v47 = vadd.f32 %v2371_v46, %v2370_v42 }
 0x575   :  { %v2373_v8 = vrot.slane %v2372_v47, 4 }
 0x577   :  { %v2374_v12 = vadd.f32 %v2373_v8, %v2372_v47 }
 0x579   :  { %v2375_v32 = vrot.slane %v2374_v12, 2 }
 0x57b   :  { %v2376_v35 = vadd.f32 %v2375_v32, %v2374_v12 }
 0x57d   :  { %v2377_v36 = vrot.slane %v2376_v35, 1 }
 0x57f   :  { %v2378_v37 = vadd.f32 %v2377_v36, %v2376_v35 }
 0x581   :  { %v2379_v22 = vmul.f32 0.0012755102, %v2378_v37 }
 0x583   :  { %2387 = vrot.lane.b32.xlu1 %v2379_v22, %s3831_s6  ;;  %2381 = vrot.lane.b32.xlu0 %v2379_v22, %s3832_s8 }
 0x587   :  { %2390 = vrot.lane.b32.xlu1 %v2379_v22, %s3833_s9  ;;  %2384 = vrot.lane.b32.xlu0 %v2379_v22, %s3834_s1 }
 0x58b   :  { %2396 = vrot.lane.b32.xlu1 %v2379_v22, %s3835_s10  ;;  %2393 = vrot.lane.b32.xlu0 %v2379_v22, %s3836_s2 }
 0x58f   :  { %2402 = vrot.lane.b32.xlu1 %v2379_v22, %s3837_s11  ;;  %2399 = vrot.lane.b32.xlu0 %v2379_v22, %s3838_s3 }
 0x593   :  { %2408 = vrot.lane.b32.xlu1 %v2379_v22, %s3839_s12  ;;  %2405 = vrot.lane.b32.xlu0 %v2379_v22, %s3840_s13 }
 0x597   :  { %2414 = vrot.lane.b32.xlu1 %v2379_v22, %s3841_s14  ;;  %2411 = vrot.lane.b32.xlu0 %v2379_v22, %s3842_s15 }
 0x59b   :  { %2417 = vrot.lane.b32.xlu0 %v2379_v22, %s3843_s16 }
 0x5f5   :  { %v2388_v25 = vpop.permute.xlu1 %2387  ;;  %v2382_v38 = vpop.permute.xlu0 %2381 }
 0x5f6   :  { %v2420_v49 = vsel %vm2359_vm6, %v2379_v22, %v2382_v38 }
 0x5f9   :  { %v2391_v50 = vpop.permute.xlu1 %2390  ;;  %v2385_v43 = vpop.permute.xlu0 %2384 }
 0x5fa   :  { %v2422_v52 = vsel %vm2421_vm7, %v2420_v49, %v2385_v43 }
 0x5fb   :  { %v2424_v51 = vsel %vm2423_vm8, %v2422_v52, %v2388_v25 }
 0x5fc   :  { %v2426_v54 = vsel %vm2425_vm9, %v2424_v51, %v2391_v50 }
 0x5fd   :  { %v2397_v62 = vpop.permute.xlu1 %2396  ;;  %v2394_v0 = vpop.permute.xlu0 %2393 }
 0x5fe   :  { %v2428_v26 = vsel %vm2427_vm10, %v2426_v54, %v2394_v0 }
 0x5ff   :  { %v2430_v30 = vsel %vm2429_vm11, %v2428_v26, %v2397_v62 }
 0x601   :  { %v2403_v5 = vpop.permute.xlu1 %2402  ;;  %v2400_v53 = vpop.permute.xlu0 %2399 }
 0x602   :  { %v2432_v58 = vsel %vm2431_vm12, %v2430_v30, %v2400_v53 }
 0x603   :  { %v2434_v48 = vsel %vm2433_vm13, %v2432_v58, %v2403_v5 }
 0x605   :  { %v2409_v59 = vpop.permute.xlu1 %2408  ;;  %v2406_v61 = vpop.permute.xlu0 %2405 }
 0x606   :  { %v2436_v6 = vsel %vm2435_vm14, %v2434_v48, %v2406_v61 }
 0x607   :  { %v2438_v9 = vsel %vm2437_vm15, %v2436_v6, %v2409_v59 }
 0x609   :  { %v2412_v11 = vpop.permute.xlu0 %2411  ;;  %v2415_v63 = vpop.permute.xlu1 %2414 }
 0x60a   :  { %v2440_v14 = vsel %vm2439_vm0, %v2438_v9, %v2412_v11 }
 0x60b   :  { %v2442_v7 = vsel %vm2441_vm1, %v2440_v14, %v2415_v63 }
 0x60d   :  { %v2418_v17 = vpop.permute.xlu0 %2417 }
 0x60e   :  { %v2444_v4 = vsel %vm2443_vm2, %v2442_v7, %v2418_v17 }
 0x60f   :  { %v2448_v20 = vrot.slane %v2444_v4, %v4666_v56 }
 0x611   :  { %v4962_v13 = vsub.f32 %v4879_v57, %v2448_v20  ;;  %v4967_v23 = vsub.f32 %v4886_v44, %v2448_v20  ;;  %v4975_v15 = vsub.f32 %v4893_v55, %v2448_v20  ;;  %v4983_v44 = vsub.f32 %v4900_v60, %v2448_v20 }
 0x612   :  { %v4991_v24 = vsub.f32 %v4907_v2, %v2448_v20  ;;  %v4999_v3 = vsub.f32 %v4914_v1, %v2448_v20  ;;  %v5007_v28 = vsub.f32 %v4921_v21, %v2448_v20 }
 0x613   :  { %v2456_v10 = vmul.f32 %v4962_v13, %v4962_v13  ;;  %v2457_v18 = vmul.f32 %v4967_v23, %v4967_v23  ;;  %v2458_v57 = vmul.f32 %v4975_v15, %v4975_v15  ;;  %v2459_v55 = vmul.f32 %v4983_v44, %v4983_v44 }
 0x614   :  { %v2460_v60 = vmul.f32 %v4991_v24, %v4991_v24  ;;  %v2461_v2 = vmul.f32 %v4999_v3, %v4999_v3  ;;  %v2462_v1 = vmul.f32 %v5007_v28, %v5007_v28 }
 0x615   :  { %3386 = vmatmul.mubr.msk.f32.vlgmr.msra.gmra.mrb[112].mxu1 %vm2233_vm5, %v2456_v10 }
 0x616   :  { %3388 = vmatprep.mubr.msk.f32.mxu1 %vm3830_vm4, %v3828_v31 }
 0x619   :  { %3389 = vmatmul.mubr.msk.f32.gmra.mrb[114].mxu1 %vm2233_vm5, %v2457_v18 }
 0x61a   :  { %3391 = vmatprep.mubr.msk.f32.mxu1 %vm3830_vm4, %v3828_v31 }
 0x61d   :  { %3392 = vmatmul.mubr.msk.f32.gmra.mrb[116].mxu1 %vm2233_vm5, %v2458_v57 }
 0x61e   :  { %3394 = vmatprep.mubr.msk.f32.mxu1 %vm3830_vm4, %v3828_v31 }
 0x621   :  { %3395 = vmatmul.mubr.msk.f32.gmra.mrb[118].mxu1 %vm2233_vm5, %v2459_v55 }
 0x622   :  { %3397 = vmatprep.mubr.msk.f32.mxu1 %vm3830_vm4, %v3828_v31 }
 0x625   :  { %3398 = vmatmul.mubr.msk.f32.gmra.mrb[120].mxu1 %vm2233_vm5, %v2460_v60 }
 0x626   :  { %3400 = vmatprep.mubr.msk.f32.mxu1 %vm3830_vm4, %v3828_v31 }
 0x629   :  { %3401 = vmatmul.mubr.msk.f32.gmra.mrb[122].mxu1 %vm2233_vm5, %v2461_v2 }
 0x62a   :  { %3403 = vmatprep.mubr.msk.f32.mxu1 %vm3830_vm4, %v3828_v31 }
 0x62d   :  { %3404 = vmatmul.mubr.msk.f32.gmra.mrb[124].mxu1 %vm2233_vm5, %v2462_v1 }
 0x6e8   :  { %v2550_v16 = vpop.f32.mrb[112].mxu1 }
 0x6e9   :  { %v3387_v33 = vpop.f32.mrb[113].mxu1  ;;  %v2584_v19 = vsel %vm2359_vm6, %v2550_v16, 0.0 }
 0x6ec   :  { %v2555_v34 = vpop.f32.mrb[114].mxu1 }
 0x6ed   :  { %v2585_v39 = vsel %vm2359_vm6, %v2555_v34, 0.0  ;;  %v3390_v40 = vpop.f32.mrb[115].mxu1 }
 0x6ee   :  { %v2586_v21 = vadd.f32 %v2585_v39, %v2584_v19 }
 0x6f0   :  { %v2560_v41 = vpop.f32.mrb[116].mxu1 }
 0x6f1   :  { %v2587_v27 = vsel %vm2359_vm6, %v2560_v41, 0.0  ;;  %v3393_v42 = vpop.f32.mrb[117].mxu1 }
 0x6f2   :  { %v2588_v45 = vadd.f32 %v2587_v27, %v2586_v21 }
 0x6f4   :  { %v2565_v31 = vpop.f32.mrb[118].mxu1 }
 0x6f5   :  { %v2589_v46 = vsel %vm2359_vm6, %v2565_v31, 0.0  ;;  %v3396_v29 = vpop.f32.mrb[119].mxu1 }
 0x6f6   :  { %v2590_v47 = vadd.f32 %v2589_v46, %v2588_v45 }
 0x6f8   :  { %v2570_v8 = vpop.f32.mrb[120].mxu1 }
 0x6f9   :  { %v2591_v12 = vsel %vm2359_vm6, %v2570_v8, 0.0  ;;  %v3399_v32 = vpop.f32.mrb[121].mxu1 }
 0x6fa   :  { %v2592_v35 = vadd.f32 %v2591_v12, %v2590_v47 }
 0x6fc   :  { %v2575_v36 = vpop.f32.mrb[122].mxu1 }
 0x6fd   :  { %v2593_v37 = vsel %vm2359_vm6, %v2575_v36, 0.0  ;;  %v3402_v22 = vpop.f32.mrb[123].mxu1 }
 0x6fe   :  { %v2594_v25 = vadd.f32 %v2593_v37, %v2592_v35 }
 0x700   :  { %v2580_v38 = vpop.f32.mrb[124].mxu1 }
 0x701   :  { %v2595_v49 = vsel %vm2359_vm6, %v2580_v38, 0.0  ;;  %v3405_v50 = vpop.f32.mrb[125].mxu1 }
 0x702   :  { %v2596_v43 = vadd.f32 %v2595_v49, %v2594_v25 }
 0x704   :  { %v2597_v52 = vrot.slane %v2596_v43, 4 }
 0x706   :  { %v2598_v51 = vadd.f32 %v2597_v52, %v2596_v43 }
 0x708   :  { %v2599_v54 = vrot.slane %v2598_v51, 2 }
 0x70a   :  { %v2600_v62 = vadd.f32 %v2599_v54, %v2598_v51 }
 0x70c   :  { %v2601_v0 = vrot.slane %v2600_v62, 1 }
 0x70e   :  { %v2602_v26 = vadd.f32 %v2601_v0, %v2600_v62 }
 0x710   :  { %v2603_v5 = vmul.f32 0.0012755102, %v2602_v26 }
 0x712   :  { %v2604_v30 = vadd.f32 1e-05, %v2603_v5 }
 0x714   :  { %3826 = vrsqrt.f32 %v2604_v30 }
 0x71e   :  { %v3827_v53 = vpop.eup %3826 }
 0x71f   :  { %2610 = vrot.lane.b32.xlu0 %v3827_v53, %s3834_s1  ;;  %2607 = vrot.lane.b32.xlu1 %v3827_v53, %s3832_s8 }
 0x723   :  { %2616 = vrot.lane.b32.xlu0 %v3827_v53, %s3833_s9  ;;  %2613 = vrot.lane.b32.xlu1 %v3827_v53, %s3831_s6 }
 0x727   :  { %2622 = vrot.lane.b32.xlu0 %v3827_v53, %s3835_s10  ;;  %2619 = vrot.lane.b32.xlu1 %v3827_v53, %s3836_s2 }
 0x72b   :  { %2628 = vrot.lane.b32.xlu0 %v3827_v53, %s3837_s11  ;;  %2625 = vrot.lane.b32.xlu1 %v3827_v53, %s3838_s3 }
 0x72f   :  { %2634 = vrot.lane.b32.xlu0 %v3827_v53, %s3839_s12  ;;  %2631 = vrot.lane.b32.xlu1 %v3827_v53, %s3840_s13 }
 0x733   :  { %2640 = vrot.lane.b32.xlu0 %v3827_v53, %s3841_s14  ;;  %2637 = vrot.lane.b32.xlu1 %v3827_v53, %s3842_s15 }
 0x737   :  { %2643 = vrot.lane.b32.xlu1 %v3827_v53, %s3843_s16 }
 0x791   :  { %v2611_v58 = vpop.permute.xlu0 %2610  ;;  %v2608_v59 = vpop.permute.xlu1 %2607 }
 0x792   :  { %v2646_v48 = vsel %vm2359_vm6, %v3827_v53, %v2608_v59 }
 0x793   :  { %v2647_v6 = vsel %vm2421_vm7, %v2646_v48, %v2611_v58 }
 0x795   :  { %v2617_v61 = vpop.permute.xlu0 %2616  ;;  %v2614_v9 = vpop.permute.xlu1 %2613 }
 0x796   :  { %v2648_v11 = vsel %vm2423_vm8, %v2647_v6, %v2614_v9 }
 0x797   :  { %v2649_v14 = vsel %vm2425_vm9, %v2648_v11, %v2617_v61 }
 0x799   :  { %v2623_v63 = vpop.permute.xlu0 %2622  ;;  %v2620_v7 = vpop.permute.xlu1 %2619 }
 0x79a   :  { %v2650_v17 = vsel %vm2427_vm10, %v2649_v14, %v2620_v7 }
 0x79b   :  { %v2651_v20 = vsel %vm2429_vm11, %v2650_v17, %v2623_v63 }
 0x79d   :  { %v2629_v4 = vpop.permute.xlu0 %2628  ;;  %v2626_v10 = vpop.permute.xlu1 %2625 }
 0x79e   :  { %v2652_v18 = vsel %vm2431_vm12, %v2651_v20, %v2626_v10 }
 0x79f   :  { %v2653_v55 = vsel %vm2433_vm13, %v2652_v18, %v2629_v4 }
 0x7a1   :  { %v2635_v57 = vpop.permute.xlu0 %2634  ;;  %v2632_v60 = vpop.permute.xlu1 %2631 }
 0x7a2   :  { %v2654_v2 = vsel %vm2435_vm14, %v2653_v55, %v2632_v60 }
 0x7a3   :  { %v2655_v1 = vsel %vm2437_vm15, %v2654_v2, %v2635_v57 }
 0x7a5   :  { %v2638_v16 = vpop.permute.xlu1 %2637  ;;  %v2641_v33 = vpop.permute.xlu0 %2640 }
 0x7a6   :  { %v2656_v34 = vsel %vm2439_vm0, %v2655_v1, %v2638_v16 }
 0x7a7   :  { %v2657_v19 = vsel %vm2441_vm1, %v2656_v34, %v2641_v33 }
 0x7a9   :  { %v2644_v39 = vpop.permute.xlu1 %2643 }
 0x7aa   :  { %v2658_v40 = vsel %vm2443_vm2, %v2657_v19, %v2644_v39 }
 0x7ab   :  { %v2662_v21 = vrot.slane %v2658_v40, %v4666_v56 }
 0x7ad   :  { %v2663_v41 = vmul.f32 %v2662_v21, %v4962_v13  ;;  %v2664_v27 = vmul.f32 %v2662_v21, %v4967_v23  ;;  %v2665_v42 = vmul.f32 %v2662_v21, %v4975_v15  ;;  %v2666_v45 = vmul.f32 %v2662_v21, %v4983_v44 }
 0x7ae   :  { %v2667_v31 = vmul.f32 %v2662_v21, %v4991_v24  ;;  %v2668_v46 = vmul.f32 %v2662_v21, %v4999_v3  ;;  %v2669_v29 = vmul.f32 %v2662_v21, %v5007_v28 }
 0x7af   :  { %2670 = vst.msk [vmem:[%s5091_s7] sm:$0xff] %vm2233_vm5, %v2663_v41  ;;  %2671 = vst.msk [vmem:[%s5091_s7 + $0x8] sm:$0xff] %vm2233_vm5, %v2664_v27 }
 0x7b0   :  { %2672 = vst.msk [vmem:[%s5091_s7 + $0x10] sm:$0xff] %vm2233_vm5, %v2665_v42  ;;  %2673 = vst.msk [vmem:[%s5091_s7 + $0x18] sm:$0xff] %vm2233_vm5, %v2666_v45 }
 0x7b1   :  { %2674 = vst.msk [vmem:[%s5091_s7 + $0x20] sm:$0xff] %vm2233_vm5, %v2667_v31  ;;  %2675 = vst.msk [vmem:[%s5091_s7 + $0x28] sm:$0xff] %vm2233_vm5, %v2668_v46 }
 0x7b2   :  { %2676 = vst.msk [vmem:[%s5091_s7 + $0x30] sm:$0xff] %vm2233_vm5, %v2669_v29 }

// kernel: forward.5
= control target key start
LH: loop header
LB: loop body
LE: loop exit
PB: predicated region body
PF: predicated region fallthrough
CT: control target
= control target key end

     0   :  { %v891_v2 = vmov 0.0|0.0   ;;  %vm98_vm0 = vcmask 130048   ;;  %vm893_vm1 = vmmov 0   ;;  %vm242_vm2 = vcmask 977920   ;;  %s1269_s1 = inlined_call_operand.vmem [shape: f32[400,120], index: 1, kind: input, shape index: {}]   ;;  %s1270_s0 = inlined_call_operand.vmem [shape: f32[4,400], index: 0, kind: input, shape index: {}]   ;;  %s1271_s3 = inlined_call_operand.vmem [shape: f32[120,84], index: 3, kind: input, shape index: {}]   ;;  %s1272_s2 = inlined_call_operand.vmem [shape: f32[1,120], index: 2, kind: input, shape index: {}]   ;;  %s1273_s5 = inlined_call_operand.vmem [shape: f32[84,84], index: 5, kind: input, shape index: {}]   ;;  %s1274_s4 = inlined_call_operand.vmem [shape: f32[1,84], index: 4, kind: input, shape index: {}]   ;;  %s1275_s7 = inlined_call_operand.vmem [shape: f32[84,1], index: 7, kind: input, shape index: {}]   ;;  %s1276_s8 = inlined_call_operand.<no memory space> [shape: f32[1,1], index: 8, kind: input, shape index: {}]   ;;  %s1277_s6 = inlined_call_operand.vmem [shape: f32[1,84], index: 6, kind: input, shape index: {}]   ;;  %s1278_s9 = inlined_call_operand.vmem [shape: f32[4,1], index: 9, kind: output, shape index: {}]  }
   0x1   :  { %v52_v0 = vld [vmem:[%s1269_s1 + $0x80] sm:$0xff]  ;;  %v53_v1 = vld [vmem:[%s1269_s1 + $0x88] sm:$0xff]  ;;  %802 = vmatprep.subr.bf16.mxu1 %v891_v2  ;;  %v54_v10 = vld [vmem:[%s1269_s1 + $0x90] sm:$0xff]  ;;  %vm287_vm3 = vcmask 982016   ;;  %vm406_vm4 = vcmask 1043456   ;;  %vm362_vm5 = vcmask 683008  }
   0x2   :  { %v36_v3 = vld [vmem:[%s1269_s1] sm:$0xff]  ;;  %v770_v4 = vpack.c.bf16 %v53_v1, %v52_v0  ;;  %v37_v5 = vld [vmem:[%s1269_s1 + $0x8] sm:$0xff]  ;;  %v55_v11 = vld [vmem:[%s1269_s1 + $0x98] sm:$0xff]  ;;  %vm402_vm6 = vcmask 687104   ;;  %vm596_vm7 = vcmask 3072  }
   0x3   :  { %v68_v6 = vld [vmem:[%s1269_s1 + $0x100] sm:$0xff]  ;;  %v69_v7 = vld [vmem:[%s1269_s1 + $0x108] sm:$0xff]  ;;  %v772_v8 = vpack.c.bf16 %v37_v5, %v36_v3  ;;  %v38_v12 = vld [vmem:[%s1269_s1 + $0x10] sm:$0xff]  ;;  %v774_v13 = vpack.c.bf16 %v55_v11, %v54_v10 }
   0x4   :  { %v803_v9 = vpack.c.bf16 %v69_v7, %v68_v6  ;;  %771 = vmatprep.subr.bf16.mxu0 %v770_v4  ;;  %v39_v14 = vld [vmem:[%s1269_s1 + $0x18] sm:$0xff]  ;;  %v70_v15 = vld [vmem:[%s1269_s1 + $0x110] sm:$0xff]  ;;  %v56_v19 = vld [vmem:[%s1269_s1 + $0xa0] sm:$0xff] }
   0x5   :  { %v71_v16 = vld [vmem:[%s1269_s1 + $0x118] sm:$0xff]  ;;  %773 = vmatpush3.bf16.msra.mxu0 %v772_v8  ;;  %v776_v17 = vpack.c.bf16 %v39_v14, %v38_v12  ;;  %v57_v20 = vld [vmem:[%s1269_s1 + $0xa8] sm:$0xff]  ;;  %v40_v21 = vld [vmem:[%s1269_s1 + $0x20] sm:$0xff] }
   0x6   :  { %804 = vmatpush1.bf16.msra.mxu1 %v803_v9  ;;  %v806_v18 = vpack.c.bf16 %v71_v16, %v70_v15  ;;  %775 = vmatprep.subr.bf16.mxu0 %v774_v13  ;;  %v778_v22 = vpack.c.bf16 %v57_v20, %v56_v19  ;;  %v41_v23 = vld [vmem:[%s1269_s1 + $0x28] sm:$0xff]  ;;  %v72_v24 = vld [vmem:[%s1269_s1 + $0x120] sm:$0xff]  ;;  %v58_v26 = vld [vmem:[%s1269_s1 + $0xb0] sm:$0xff] }
   0x7   :  { %805 = vmatprep.subr.bf16.mxu1 %v891_v2  ;;  %v73_v25 = vld [vmem:[%s1269_s1 + $0x128] sm:$0xff]  ;;  %v59_v27 = vld [vmem:[%s1269_s1 + $0xb8] sm:$0xff]  ;;  %v780_v28 = vpack.c.bf16 %v41_v23, %v40_v21  ;;  %v42_v30 = vld [vmem:[%s1269_s1 + $0x30] sm:$0xff] }
   0x8   :  { %v809_v29 = vpack.c.bf16 %v73_v25, %v72_v24  ;;  %v782_v31 = vpack.c.bf16 %v59_v27, %v58_v26  ;;  %v43_v32 = vld [vmem:[%s1269_s1 + $0x38] sm:$0xff]  ;;  %v74_v33 = vld [vmem:[%s1269_s1 + $0x130] sm:$0xff]  ;;  %v60_v35 = vld [vmem:[%s1269_s1 + $0xc0] sm:$0xff] }
   0x9   :  { %777 = vmatpush3.bf16.msra.mxu0 %v776_v17  ;;  %v75_v34 = vld [vmem:[%s1269_s1 + $0x138] sm:$0xff]  ;;  %v61_v36 = vld [vmem:[%s1269_s1 + $0xc8] sm:$0xff]  ;;  %v784_v37 = vpack.c.bf16 %v43_v32, %v42_v30  ;;  %v44_v39 = vld [vmem:[%s1269_s1 + $0x40] sm:$0xff] }
   0xa   :  { %807 = vmatpush1.bf16.msra.mxu1 %v806_v18  ;;  %779 = vmatprep.subr.bf16.mxu0 %v778_v22  ;;  %v812_v38 = vpack.c.bf16 %v75_v34, %v74_v33  ;;  %v786_v40 = vpack.c.bf16 %v61_v36, %v60_v35  ;;  %v45_v41 = vld [vmem:[%s1269_s1 + $0x48] sm:$0xff]  ;;  %v76_v42 = vld [vmem:[%s1269_s1 + $0x140] sm:$0xff]  ;;  %v62_v44 = vld [vmem:[%s1269_s1 + $0xd0] sm:$0xff] }
   0xb   :  { %808 = vmatprep.subr.bf16.mxu1 %v891_v2  ;;  %v77_v43 = vld [vmem:[%s1269_s1 + $0x148] sm:$0xff]  ;;  %v63_v45 = vld [vmem:[%s1269_s1 + $0xd8] sm:$0xff]  ;;  %v788_v46 = vpack.c.bf16 %v45_v41, %v44_v39  ;;  %v46_v48 = vld [vmem:[%s1269_s1 + $0x50] sm:$0xff] }
   0xc   :  { %v815_v47 = vpack.c.bf16 %v77_v43, %v76_v42  ;;  %v47_v49 = vld [vmem:[%s1269_s1 + $0x58] sm:$0xff]  ;;  %v34_v50 = vld [vmem:[%s1270_s0] sm:$0xff]  ;;  %v790_v51 = vpack.c.bf16 %v63_v45, %v62_v44  ;;  %v78_v52 = vld [vmem:[%s1269_s1 + $0x150] sm:$0xff] }
   0xd   :  { %781 = vmatpush3.bf16.msra.mxu0 %v780_v28  ;;  %v79_v53 = vld [vmem:[%s1269_s1 + $0x158] sm:$0xff]  ;;  %v95_v54 = vcombine.high %v34_v50, %v34_v50  ;;  %v35_v55 = vld [vmem:[%s1270_s0 + $0x8] sm:$0xff]  ;;  %v64_v56 = vld [vmem:[%s1269_s1 + $0xe0] sm:$0xff]  ;;  %v792_v59 = vpack.c.bf16 %v47_v49, %v46_v48 }
   0xe   :  { %810 = vmatpush1.bf16.msra.mxu1 %v809_v29  ;;  %783 = vmatprep.subr.bf16.mxu0 %v782_v31  ;;  %v65_v57 = vld [vmem:[%s1269_s1 + $0xe8] sm:$0xff]  ;;  %v96_v58 = vcombine.high %v35_v55, %v35_v55  ;;  %v818_v60 = vpack.c.bf16 %v79_v53, %v78_v52  ;;  %v48_v61 = vld [vmem:[%s1269_s1 + $0x60] sm:$0xff]  ;;  %v66_v3 = vld [vmem:[%s1269_s1 + $0xf0] sm:$0xff] }
   0xf   :  { %811 = vmatprep.subr.bf16.mxu1 %v891_v2  ;;  %165 = vmatprep.mubr.f32.mxu0 %v95_v54  ;;  %v794_v62 = vpack.c.bf16 %v65_v57, %v64_v56  ;;  %v49_v63 = vld [vmem:[%s1269_s1 + $0x68] sm:$0xff]  ;;  %v80_v0 = vld [vmem:[%s1269_s1 + $0x160] sm:$0xff]  ;;  %v67_v4 = vld [vmem:[%s1269_s1 + $0xf8] sm:$0xff] }
  0x10   :  { %v81_v1 = vld [vmem:[%s1269_s1 + $0x168] sm:$0xff]  ;;  %603 = vmatprep.mubr.msk.f32.mxu1 %vm98_vm0, %v96_v58  ;;  %v796_v5 = vpack.c.bf16 %v49_v63, %v48_v61  ;;  %v50_v7 = vld [vmem:[%s1269_s1 + $0x70] sm:$0xff]  ;;  %v798_v8 = vpack.c.bf16 %v67_v4, %v66_v3  ;;  %v51_v9 = vld [vmem:[%s1269_s1 + $0x78] sm:$0xff] }
  0x11   :  { %785 = vmatpush3.bf16.msra.mxu0 %v784_v37  ;;  %v821_v6 = vpack.c.bf16 %v81_v1, %v80_v0  ;;  %v82_v10 = vld [vmem:[%s1269_s1 + $0x170] sm:$0xff]  ;;  %v83_v11 = vld [vmem:[%s1269_s1 + $0x178] sm:$0xff]  ;;  %v800_v12 = vpack.c.bf16 %v51_v9, %v50_v7  ;;  %v84_v14 = vld [vmem:[%s1269_s1 + $0x180] sm:$0xff] }
  0x12   :  { %813 = vmatpush1.bf16.msra.mxu1 %v812_v38  ;;  %787 = vmatprep.subr.bf16.mxu0 %v786_v40  ;;  %v824_v13 = vpack.c.bf16 %v83_v11, %v82_v10  ;;  %v85_v15 = vld [vmem:[%s1269_s1 + $0x188] sm:$0xff]  ;;  %v265_v17 = vld [vmem:[%s1271_s3] sm:$0xff]  ;;  %v267_v20 = vld [vmem:[%s1271_s3 + $0x10] sm:$0xff]  ;;  %v892_v38 = vmov 0.0  }
  0x13   :  { %814 = vmatprep.subr.bf16.mxu1 %v891_v2  ;;  %v827_v16 = vpack.c.bf16 %v85_v15, %v84_v14  ;;  %v266_v18 = vld [vmem:[%s1271_s3 + $0x8] sm:$0xff]  ;;  %v268_v21 = vld [vmem:[%s1271_s3 + $0x18] sm:$0xff]  ;;  %v269_v23 = vld [vmem:[%s1271_s3 + $0x20] sm:$0xff] }
  0x14   :  { %v830_v19 = vpack.c.bf16 %v266_v18, %v265_v17  ;;  %v833_v22 = vpack.c.bf16 %v268_v21, %v267_v20  ;;  %v270_v24 = vld [vmem:[%s1271_s3 + $0x28] sm:$0xff]  ;;  %v271_v26 = vld [vmem:[%s1271_s3 + $0x30] sm:$0xff]  ;;  %v272_v27 = vld [vmem:[%s1271_s3 + $0x38] sm:$0xff] }
  0x15   :  { %789 = vmatpush3.bf16.msra.mxu0 %v788_v46  ;;  %v836_v25 = vpack.c.bf16 %v270_v24, %v269_v23  ;;  %v839_v28 = vpack.c.bf16 %v272_v27, %v271_v26  ;;  %v273_v29 = vld [vmem:[%s1271_s3 + $0x40] sm:$0xff]  ;;  %v274_v30 = vld [vmem:[%s1271_s3 + $0x48] sm:$0xff]  ;;  %v275_v32 = vld [vmem:[%s1271_s3 + $0x50] sm:$0xff] }
  0x16   :  { %816 = vmatpush1.bf16.msra.mxu1 %v815_v47  ;;  %791 = vmatprep.subr.bf16.mxu0 %v790_v51  ;;  %v842_v31 = vpack.c.bf16 %v274_v30, %v273_v29  ;;  %v276_v33 = vld [vmem:[%s1271_s3 + $0x58] sm:$0xff]  ;;  %v277_v35 = vld [vmem:[%s1271_s3 + $0x60] sm:$0xff]  ;;  %v278_v36 = vld [vmem:[%s1271_s3 + $0x68] sm:$0xff] }
  0x17   :  { %817 = vmatprep.subr.bf16.mxu1 %v891_v2  ;;  %v845_v34 = vpack.c.bf16 %v276_v33, %v275_v32  ;;  %v848_v37 = vpack.c.bf16 %v278_v36, %v277_v35  ;;  %v279_v39 = vld [vmem:[%s1271_s3 + $0x70] sm:$0xff]  ;;  %v602_v42 = vld [vmem:[%s1272_s2] ss:$0 sm:$0xff]  ;;  %v387_v11 = vld [vmem:[%s1273_s5 + $0x18] sm:$0xff] }
  0x18   :  { %v384_v7 = vld [vmem:[%s1273_s5] sm:$0xff]  ;;  %v386_v10 = vld [vmem:[%s1273_s5 + $0x10] sm:$0xff]  ;;  %v389_v14 = vld [vmem:[%s1273_s5 + $0x28] sm:$0xff] }
  0x19   :  { %793 = vmatpush3.bf16.msra.mxu0 %v792_v59  ;;  %v391_v17 = vld [vmem:[%s1273_s5 + $0x38] sm:$0xff]  ;;  %v393_v20 = vld [vmem:[%s1273_s5 + $0x48] sm:$0xff]  ;;  %v604_v23 = vld [vmem:[%s1274_s4] ss:$0 sm:$0xff] }
  0x1a   :  { %819 = vmatpush1.bf16.msra.mxu1 %v818_v60  ;;  %795 = vmatprep.subr.bf16.mxu0 %v794_v62 }
  0x1b   :  { %820 = vmatprep.subr.bf16.mxu1 %v891_v2 }
  0x1d   :  { %797 = vmatpush3.bf16.msra.mxu0 %v796_v5 }
  0x1e   :  { %822 = vmatpush1.bf16.msra.mxu1 %v821_v6  ;;  %799 = vmatprep.subr.bf16.mxu0 %v798_v8  ;;  %v385_v8 = vld [vmem:[%s1273_s5 + $0x8] sm:$0xff] }
  0x1f   :  { %823 = vmatprep.subr.bf16.mxu1 %v891_v2  ;;  %v851_v9 = vpack.c.bf16 %v385_v8, %v384_v7 }
  0x21   :  { %801 = vmatpush3.bf16.msra.mxu0 %v800_v12  ;;  %v854_v12 = vpack.c.bf16 %v387_v11, %v386_v10 }
  0x22   :  { %825 = vmatpush1.bf16.msra.mxu1 %v824_v13  ;;  %829 = vmatprep.subr.bf16.mxu0 %v891_v2  ;;  %v388_v13 = vld [vmem:[%s1273_s5 + $0x20] sm:$0xff] }
  0x23   :  { %826 = vmatprep.subr.bf16.mxu1 %v891_v2  ;;  %v857_v15 = vpack.c.bf16 %v389_v14, %v388_v13 }
  0x24   :  { %166 = vmatmul.mubr.f32.vlgmr.msra.gmra.mrb[0].mxu0 %v34_v50 }
  0x25   :  { %831 = vmatpush3.bf16.msra.mxu0 %v830_v19  ;;  %717 = vmatprep.mubr.msk.f32.mxu0 %vm893_vm1, %v892_v38  ;;  %v392_v19 = vld [vmem:[%s1273_s5 + $0x40] sm:$0xff] }
  0x26   :  { %828 = vmatpush1.bf16.msra.mxu1 %v827_v16  ;;  %832 = vmatprep.subr.bf16.mxu0 %v891_v2  ;;  %v390_v16 = vld [vmem:[%s1273_s5 + $0x30] sm:$0xff]  ;;  %v863_v21 = vpack.c.bf16 %v393_v20, %v392_v19 }
  0x27   :  { %850 = vmatprep.subr.bf16.mxu1 %v891_v2  ;;  %v860_v18 = vpack.c.bf16 %v391_v17, %v390_v16 }
  0x29   :  { %236 = vmatmul.mubr.f32.vlgmr.msra.gmra.mrb[0].mxu1 %v35_v55  ;;  %834 = vmatpush3.bf16.msra.mxu0 %v833_v22  ;;  %v394_v22 = vld [vmem:[%s1273_s5 + $0x50] sm:$0xf] }
  0x2a   :  { %835 = vmatprep.subr.bf16.mxu0 %v891_v2  ;;  %742 = vmatprep.mubr.msk.f32.mxu1 %vm893_vm1, %v892_v38 }
  0x2b   :  { %852 = vmatpush3.bf16.msra.mxu1 %v851_v9 }
  0x2c   :  { %853 = vmatprep.subr.bf16.mxu1 %v891_v2 }
  0x2d   :  { %837 = vmatpush3.bf16.msra.mxu0 %v836_v25 }
  0x2e   :  { %838 = vmatprep.subr.bf16.mxu0 %v891_v2 }
  0x2f   :  { %855 = vmatpush3.bf16.msra.mxu1 %v854_v12 }
  0x30   :  { %856 = vmatprep.subr.bf16.mxu1 %v891_v2 }
  0x31   :  { %840 = vmatpush3.bf16.msra.mxu0 %v839_v28 }
  0x32   :  { %841 = vmatprep.subr.bf16.mxu0 %v891_v2 }
  0x33   :  { %858 = vmatpush3.bf16.msra.mxu1 %v857_v15 }
  0x34   :  { %859 = vmatprep.subr.bf16.mxu1 %v891_v2 }
  0x35   :  { %843 = vmatpush3.bf16.msra.mxu0 %v842_v31 }
  0x36   :  { %844 = vmatprep.subr.bf16.mxu0 %v891_v2 }
  0x37   :  { %861 = vmatpush3.bf16.msra.mxu1 %v860_v18 }
  0x38   :  { %862 = vmatprep.subr.bf16.mxu1 %v891_v2 }
  0x39   :  { %846 = vmatpush3.bf16.msra.mxu0 %v845_v34 }
  0x3a   :  { %847 = vmatprep.subr.bf16.mxu0 %v891_v2 }
  0x3b   :  { %864 = vmatpush3.bf16.msra.mxu1 %v863_v21 }
  0x3c   :  { %740 = vmatprep.subr.mxu1 %v892_v38 }
  0x3d   :  { %849 = vmatpush3.bf16.msra.mxu0 %v848_v37 }
  0x3e   :  { %715 = vmatprep.subr.mxu0 %v892_v38 }
  0x3f   :  { %741 = vmatpush3.msk.msra.mxu1 %vm406_vm4, %v394_v22 }
  0x40   :  { %865 = vmatprep.subr.bf16.mxu1 %v891_v2 }
  0x41   :  { %716 = vmatpush3.msra.mxu0 %v279_v39 }
  0xf7   :  { %v644_v40 = vpop.f32.mrb[0].mxu0 }
  0xf8   :  { %v645_v41 = vpop.f32.mrb[1].mxu0 }
  0xf9   :  { %v646_v43 = vadd.f32 %v645_v41, %v644_v40 }
  0xfb   :  { %v168_v44 = vadd.f32 %v646_v43, %v602_v42 }
  0xfc   :  { %v237_v45 = vpop.f32.mrb[0].mxu1 }
  0xfd   :  { %v239_v46 = vpop.f32.mrb[1].mxu1  ;;  %v238_v47 = vadd.f32 %v237_v45, %v168_v44 }
  0xff   :  { %v241_v48 = vmax.f32 %v238_v47, 0.0 }
 0x101   :  { %v243_v49 = vsel %vm242_vm2, %v241_v48, 0.0 }
 0x102   :  { %v244_v50 = vrot.slane %v243_v49, 4 }
 0x104   :  { %v245_v51 = vadd.f32 %v244_v50, %v243_v49  ;;  %v502_v50 = vld [vmem:[%s1275_s7] sm:$0xff] }
 0x106   :  { %v246_v52 = vrot.slane %v245_v51, 2 }
 0x108   :  { %v247_v53 = vadd.f32 %v246_v52, %v245_v51  ;;  %v503_v51 = vld [vmem:[%s1275_s7 + $0x8] sm:$0xff] }
 0x109   :  { %v866_v52 = vpack.c.bf16 %v503_v51, %v502_v50 }
 0x10a   :  { %v248_v54 = vrot.slane %v247_v53, 1 }
 0x10c   :  { %v249_v55 = vadd.f32 %v248_v54, %v247_v53  ;;  %v504_v53 = vld [vmem:[%s1275_s7 + $0x10] sm:$0xff]  ;;  %v505_v54 = vld [vmem:[%s1275_s7 + $0x18] sm:$0xff] }
 0x10e   :  { %v251_v56 = vmul.f32 0.25, %v249_v55  ;;  %v869_v55 = vpack.c.bf16 %v505_v54, %v504_v53 }
 0x110   :  { %v252_v57 = vsub.f32 %v241_v48, %v251_v56  ;;  %v506_v56 = vld [vmem:[%s1275_s7 + $0x20] sm:$0xff] }
 0x112   :  { %v253_v58 = vmul.f32 %v252_v57, %v252_v57 }
 0x114   :  { %v254_v59 = vsel %vm242_vm2, %v253_v58, 0.0 }
 0x115   :  { %v255_v60 = vrot.slane %v254_v59, 4 }
 0x117   :  { %v256_v61 = vadd.f32 %v255_v60, %v254_v59  ;;  %v508_v59 = vld [vmem:[%s1275_s7 + $0x30] sm:$0xff]  ;;  %v509_v60 = vld [vmem:[%s1275_s7 + $0x38] sm:$0xff] }
 0x119   :  { %v257_v62 = vrot.slane %v256_v61, 2 }
 0x11b   :  { %v258_v63 = vadd.f32 %v257_v62, %v256_v61  ;;  %v875_v61 = vpack.c.bf16 %v509_v60, %v508_v59  ;;  %v510_v62 = vld [vmem:[%s1275_s7 + $0x40] sm:$0xff] }
 0x11d   :  { %v259_v0 = vrot.slane %v258_v63, 1 }
 0x11f   :  { %v260_v1 = vadd.f32 %v259_v0, %v258_v63  ;;  %v511_v63 = vld [vmem:[%s1275_s7 + $0x48] sm:$0xff] }
 0x120   :  { %v878_v0 = vpack.c.bf16 %v511_v63, %v510_v62 }
 0x121   :  { %v261_v3 = vmul.f32 0.25, %v260_v1  ;;  %v512_v1 = vld [vmem:[%s1275_s7 + $0x50] sm:$0xf] }
 0x123   :  { %v262_v4 = vadd.f32 1e-05, %v261_v3  ;;  %v606_v3 = vld [vmem:[%s1277_s6] ss:$0 sm:$0xff] }
 0x125   :  { %885 = vrsqrt.f32 %v262_v4 }
 0x12f   :  { %v886_v5 = vpop.eup %885 }
 0x130   :  { %v264_v6 = vmul.f32 %v886_v5, %v252_v57  ;;  %v507_v57 = vld [vmem:[%s1275_s7 + $0x28] sm:$0xff] }
 0x131   :  { %v872_v58 = vpack.c.bf16 %v507_v57, %v506_v56 }
 0x132   :  { %718 = vmatmul.mubr.msk.f32.vlgmr.msra.gmra.mrb[2].mxu0 %vm287_vm3, %v264_v6 }
 0x205   :  { %v357_v24 = vpop.f32.mrb[2].mxu0 }
 0x206   :  { %v358_v25 = vadd.f32 %v604_v23, %v357_v24  ;;  %v719_v26 = vpop.f32.mrb[3].mxu0 }
 0x208   :  { %v361_v27 = vmax.f32 %v358_v25, 0.0 }
 0x20a   :  { %v363_v28 = vsel %vm362_vm5, %v361_v27, 0.0 }
 0x20b   :  { %v364_v29 = vrot.slane %v363_v28, 4 }
 0x20d   :  { %v365_v30 = vadd.f32 %v364_v29, %v363_v28 }
 0x20f   :  { %v366_v31 = vrot.slane %v365_v30, 2 }
 0x211   :  { %v367_v32 = vadd.f32 %v366_v31, %v365_v30 }
 0x213   :  { %v368_v33 = vrot.slane %v367_v32, 1 }
 0x215   :  { %v369_v34 = vadd.f32 %v368_v33, %v367_v32 }
 0x217   :  { %v370_v35 = vmul.f32 0.25, %v369_v34 }
 0x219   :  { %v371_v36 = vsub.f32 %v361_v27, %v370_v35 }
 0x21b   :  { %v372_v37 = vmul.f32 %v371_v36, %v371_v36 }
 0x21d   :  { %v373_v39 = vsel %vm362_vm5, %v372_v37, 0.0 }
 0x21e   :  { %v374_v40 = vrot.slane %v373_v39, 4 }
 0x220   :  { %v375_v41 = vadd.f32 %v374_v40, %v373_v39 }
 0x222   :  { %v376_v42 = vrot.slane %v375_v41, 2 }
 0x224   :  { %v377_v43 = vadd.f32 %v376_v42, %v375_v41 }
 0x226   :  { %v378_v44 = vrot.slane %v377_v43, 1 }
 0x228   :  { %v379_v45 = vadd.f32 %v378_v44, %v377_v43 }
 0x22a   :  { %v380_v46 = vmul.f32 0.25, %v379_v45 }
 0x22c   :  { %v381_v47 = vadd.f32 1e-05, %v380_v46 }
 0x22e   :  { %887 = vrsqrt.f32 %v381_v47 }
 0x238   :  { %v888_v48 = vpop.eup %887 }
 0x239   :  { %v383_v49 = vmul.f32 %v888_v48, %v371_v36 }
 0x23b   :  { %743 = vmatmul.mubr.msk.f32.vlgmr.msra.gmra.mrb[2].mxu1 %vm402_vm6, %v383_v49 }
 0x23c   :  { %767 = vmatprep.mubr.msk.f32.mxu1 %vm893_vm1, %v892_v38  ;;  %867 = vmatpush3.bf16.msra.mxu1 %v866_v52 }
 0x23d   :  { %868 = vmatprep.subr.bf16.mxu1 %v891_v2 }
 0x240   :  { %870 = vmatpush3.bf16.msra.mxu1 %v869_v55 }
 0x241   :  { %871 = vmatprep.subr.bf16.mxu1 %v891_v2 }
 0x244   :  { %873 = vmatpush3.bf16.msra.mxu1 %v872_v58 }
 0x245   :  { %874 = vmatprep.subr.bf16.mxu1 %v891_v2 }
 0x248   :  { %876 = vmatpush3.bf16.msra.mxu1 %v875_v61 }
 0x249   :  { %877 = vmatprep.subr.bf16.mxu1 %v891_v2  ;;  %v14_v2 = vstv %s1276_s8 }
 0x24a   :  { %15 = vst [vmem:[#allocation2] sm:$0x1] %v14_v2 }
 0x24c   :  { %879 = vmatpush3.bf16.msra.mxu1 %v878_v0 }
 0x24d   :  { %765 = vmatprep.subr.mxu1 %v892_v38 }
 0x250   :  { %766 = vmatpush3.msk.msra.mxu1 %vm406_vm4, %v512_v1 }
 0x251   :  { %v609_v28 = vld [vmem:[#allocation2] ss:$0 sm:$0xff] }
 0x30e   :  { %v476_v4 = vpop.f32.mrb[2].mxu1 }
 0x30f   :  { %v477_v5 = vadd.f32 %v606_v3, %v476_v4  ;;  %v744_v6 = vpop.f32.mrb[3].mxu1 }
 0x311   :  { %v480_v7 = vmax.f32 %v477_v5, 0.0 }
 0x313   :  { %v481_v38 = vsel %vm362_vm5, %v480_v7, 0.0 }
 0x314   :  { %v482_v8 = vrot.slane %v481_v38, 4 }
 0x316   :  { %v483_v9 = vadd.f32 %v482_v8, %v481_v38 }
 0x318   :  { %v484_v10 = vrot.slane %v483_v9, 2 }
 0x31a   :  { %v485_v11 = vadd.f32 %v484_v10, %v483_v9 }
 0x31c   :  { %v486_v12 = vrot.slane %v485_v11, 1 }
 0x31e   :  { %v487_v13 = vadd.f32 %v486_v12, %v485_v11 }
 0x320   :  { %v488_v14 = vmul.f32 0.25, %v487_v13 }
 0x322   :  { %v489_v15 = vsub.f32 %v480_v7, %v488_v14 }
 0x324   :  { %v490_v16 = vmul.f32 %v489_v15, %v489_v15 }
 0x326   :  { %v491_v17 = vsel %vm362_vm5, %v490_v16, 0.0 }
 0x327   :  { %v492_v18 = vrot.slane %v491_v17, 4 }
 0x329   :  { %v493_v19 = vadd.f32 %v492_v18, %v491_v17 }
 0x32b   :  { %v494_v20 = vrot.slane %v493_v19, 2 }
 0x32d   :  { %v495_v21 = vadd.f32 %v494_v20, %v493_v19 }
 0x32f   :  { %v496_v22 = vrot.slane %v495_v21, 1 }
 0x331   :  { %v497_v23 = vadd.f32 %v496_v22, %v495_v21 }
 0x333   :  { %v498_v24 = vmul.f32 0.25, %v497_v23 }
 0x335   :  { %v499_v25 = vadd.f32 1e-05, %v498_v24 }
 0x337   :  { %889 = vrsqrt.f32 %v499_v25 }
 0x341   :  { %v890_v26 = vpop.eup %889 }
 0x342   :  { %v501_v27 = vmul.f32 %v890_v26, %v489_v15 }
 0x344   :  { %768 = vmatmul.mubr.msk.f32.vlgmr.msra.gmra.mrb[4].mxu1 %vm402_vm6, %v501_v27 }
 0x417   :  { %v592_v29 = vpop.f32.mrb[4].mxu1 }
 0x418   :  { %v593_v30 = vadd.f32 %v609_v28, %v592_v29  ;;  %v769_v31 = vpop.f32.mrb[5].mxu1 }
 0x41a   :  { %597 = vst.msk [vmem:[%s1278_s9] sm:$0xf] %vm596_vm7, %v593_v30 }

// kernel: forward.4
= control target key start
LH: loop header
LB: loop body
LE: loop exit
PB: predicated region body
PF: predicated region fallthrough
CT: control target
= control target key end

     0   :  { %v2561_v0 = vmov 0.0|0.0   ;;  %vm2562_vm0 = vmmov 0   ;;  %v2563_v4 = vmov 0.0   ;;  %vm38_vm1 = vcmask 457728   ;;  %s2565_s22 = smov 16   ;;  %s2566_s23 = smov 64   ;;  %s3452_s0 = inlined_call_operand.vmem [shape: f32[56,84], index: 0, kind: input, shape index: {}]   ;;  %s3453_s2 = inlined_call_operand.vmem [shape: f32[5,84,160], index: 2, kind: input, shape index: {}]   ;;  %s3454_s1 = inlined_call_operand.vmem [shape: f32[5,40,56], index: 1, kind: input, shape index: {}]   ;;  %s3455_s3 = inlined_call_operand.vmem [shape: f32[1,160], index: 3, kind: input, shape index: {}]   ;;  %s3456_s5 = inlined_call_operand.vmem [shape: f32[160,80], index: 5, kind: input, shape index: {}]   ;;  %s3457_s4 = inlined_call_operand.vmem [shape: f32[20,40], index: 4, kind: input, shape index: {}]   ;;  %s3458_s6 = inlined_call_operand.vmem [shape: f32[80,16], index: 6, kind: input, shape index: {}]   ;;  %s3459_s7 = inlined_call_operand.vmem [shape: f32[20,80], index: 7, kind: output, shape index: {}]  }
   0x1   :  { %2308 = vmatprep.subr.bf16.mxu1 %v2561_v0  ;;  %v26_v1 = vld [vmem:[%s3452_s0] sm:$0xff]  ;;  %v27_v2 = vld [vmem:[%s3452_s0 + $0x8] sm:$0xff]  ;;  %v28_v3 = vld [vmem:[%s3452_s0 + $0x10] sm:$0xff]  ;;  %2139 = vmatprep.mubr.msk.f32.mxu1 %vm2562_vm0, %v2563_v4  ;;  %vm316_vm2 = vcmask 1043456   ;;  %vm300_vm3 = vcmask 687104   ;;  %vm1349_vm4 = vcmask 326656  }
   0x2   :  { %v2620_v5 = vpack.c.bf16 %v27_v2, %v26_v1  ;;  %v29_v6 = vld [vmem:[%s3452_s0 + $0x18] sm:$0xff]  ;;  %2299 = vmatprep.subr.bf16.mxu0 %v2561_v0  ;;  %2110 = vmatprep.mubr.msk.f32.mxu0 %vm2562_vm0, %v2563_v4  ;;  %v30_v8 = vld [vmem:[%s3452_s0 + $0x20] sm:$0xff]  ;;  %v31_v9 = vld [vmem:[%s3452_s0 + $0x28] sm:$0xff]  ;;  %vm1462_vm5 = vcmask 261120   ;;  %vm1562_vm6 = vcmask 654336   ;;  %vm1652_vm7 = vcmask 130048  }
   0x3   :  { %v2629_v7 = vpack.c.bf16 %v29_v6, %v28_v3  ;;  %v2641_v10 = vpack.c.bf16 %v31_v9, %v30_v8  ;;  %v1846_v11 = vld [vmem:[%s3453_s2 + $0xb8] sm:$0xff]  ;;  %v1848_v12 = vld [vmem:[%s3453_s2 + $0xc8] sm:$0xff]  ;;  %v2658_v13 = vld [vmem:[%s3452_s0 + $0x30] sm:$0xff]  ;;  %vm1656_vm8 = vcmask 125952   ;;  %s2567_s24 = smov 32   ;;  %vm1681_vm9 = vcmask 392192  }
   0x4   :  { %2310 = vmatpush3.bf16.msra.mxu1 %v2620_v5  ;;  %2301 = vmatpush3.bf16.msra.mxu0 %v2620_v5  ;;  %v1845_v14 = vld [vmem:[%s3453_s2 + $0xb0] sm:$0xff]  ;;  %v1847_v15 = vld [vmem:[%s3453_s2 + $0xc0] sm:$0xff]  ;;  %v1835_v16 = vld [vmem:[%s3454_s1 + $0x28] sm:$0xff]  ;;  %v2317_v18 = vpack.c.bf16 %v1848_v12, %v1846_v11  ;;  %vm1683_vm10 = vcmask 523264   ;;  %vm1824_vm11 = vcmask 650240  }
   0x5   :  { %2311 = vmatprep.subr.bf16.mxu1 %v2561_v0  ;;  %2302 = vmatprep.subr.bf16.mxu0 %v2561_v0  ;;  %v33_v17 = vld [vmem:[%s3454_s1] sm:$0xff]  ;;  %v2319_v19 = vpack.c.bf16 %v1847_v15, %v1845_v14  ;;  %v1850_v20 = vld [vmem:[%s3453_s2 + $0xd8] sm:$0xff]  ;;  %v1852_v21 = vld [vmem:[%s3453_s2 + $0xe8] sm:$0xff] }
   0x6   :  { %v1849_v22 = vld [vmem:[%s3453_s2 + $0xd0] sm:$0xff]  ;;  %v1851_v23 = vld [vmem:[%s3453_s2 + $0xe0] sm:$0xff]  ;;  %v34_v25 = vld [vmem:[%s3454_s1 + $0x8] sm:$0xff]  ;;  %v2321_v26 = vpack.c.bf16 %v1852_v21, %v1850_v20 }
   0x7   :  { %v1836_v24 = vld [vmem:[%s3454_s1 + $0x30] sm:$0xff]  ;;  %v2323_v27 = vpack.c.bf16 %v1851_v23, %v1849_v22  ;;  %v1854_v28 = vld [vmem:[%s3453_s2 + $0xf8] sm:$0xff]  ;;  %v1856_v29 = vld [vmem:[%s3453_s2 + $0x108] sm:$0xff] }
   0x8   :  { %2313 = vmatpush3.bf16.msra.mxu1 %v2629_v7  ;;  %2304 = vmatpush3.bf16.msra.mxu0 %v2629_v7  ;;  %v1853_v30 = vld [vmem:[%s3453_s2 + $0xf0] sm:$0xff]  ;;  %v1855_v31 = vld [vmem:[%s3453_s2 + $0x100] sm:$0xff]  ;;  %v1837_v32 = vld [vmem:[%s3454_s1 + $0x38] sm:$0xff]  ;;  %v2325_v34 = vpack.c.bf16 %v1856_v29, %v1854_v28 }
   0x9   :  { %2314 = vmatprep.subr.bf16.mxu1 %v2561_v0  ;;  %2305 = vmatprep.subr.bf16.mxu0 %v2561_v0  ;;  %v35_v33 = vld [vmem:[%s3454_s1 + $0x10] sm:$0xff]  ;;  %v2327_v35 = vpack.c.bf16 %v1855_v31, %v1853_v30  ;;  %v1858_v36 = vld [vmem:[%s3453_s2 + $0x118] sm:$0xff]  ;;  %v1860_v37 = vld [vmem:[%s3453_s2 + $0x128] sm:$0xff] }
   0xa   :  { %v1857_v38 = vld [vmem:[%s3453_s2 + $0x110] sm:$0xff]  ;;  %v1859_v39 = vld [vmem:[%s3453_s2 + $0x120] sm:$0xff]  ;;  %v36_v41 = vld [vmem:[%s3454_s1 + $0x18] sm:$0xff]  ;;  %v2329_v42 = vpack.c.bf16 %v1860_v37, %v1858_v36 }
   0xb   :  { %v1838_v40 = vld [vmem:[%s3454_s1 + $0x40] sm:$0xff]  ;;  %v2331_v43 = vpack.c.bf16 %v1859_v39, %v1857_v38  ;;  %v1862_v44 = vld [vmem:[%s3453_s2 + $0x138] sm:$0xff]  ;;  %v1864_v45 = vld [vmem:[%s3453_s2 + $0x148] sm:$0xff] }
   0xc   :  { %2316 = vmatpush3.bf16.msra.mxu1 %v2641_v10  ;;  %2307 = vmatpush3.bf16.msra.mxu0 %v2641_v10  ;;  %v1861_v46 = vld [vmem:[%s3453_s2 + $0x130] sm:$0xff]  ;;  %v1863_v47 = vld [vmem:[%s3453_s2 + $0x140] sm:$0xff]  ;;  %v1839_v48 = vld [vmem:[%s3454_s1 + $0x48] sm:$0xff]  ;;  %v2333_v50 = vpack.c.bf16 %v1864_v45, %v1862_v44 }
   0xd   :  { %2137 = vmatprep.subr.mxu1 %v2563_v4  ;;  %2108 = vmatprep.subr.mxu0 %v2563_v4  ;;  %v37_v49 = vld [vmem:[%s3454_s1 + $0x20] sm:$0xff]  ;;  %v2335_v51 = vpack.c.bf16 %v1863_v47, %v1861_v46  ;;  %v1881_v52 = vld [vmem:[%s3454_s1 + $0x50] sm:$0xff]  ;;  %v1866_v53 = vld [vmem:[%s3453_s2 + $0x158] sm:$0xf] }
   0xe   :  { %v1865_v54 = vld [vmem:[%s3453_s2 + $0x150] sm:$0xf]  ;;  %v1882_v55 = vld [vmem:[%s3454_s1 + $0x58] sm:$0xff]  ;;  %v1883_v56 = vld [vmem:[%s3454_s1 + $0x60] sm:$0xff] }
   0xf   :  { %v1884_v57 = vld [vmem:[%s3454_s1 + $0x68] sm:$0xff]  ;;  %v1885_v58 = vld [vmem:[%s3454_s1 + $0x70] sm:$0xff]  ;;  %v1920_v59 = vld [vmem:[%s3454_s1 + $0x78] sm:$0xff] }
  0x10   :  { %2138 = vmatpush3.msra.mxu1 %v2658_v13  ;;  %2109 = vmatpush3.msra.mxu0 %v2658_v13  ;;  %v1921_v60 = vld [vmem:[%s3454_s1 + $0x80] sm:$0xff]  ;;  %v1922_v61 = vld [vmem:[%s3454_s1 + $0x88] sm:$0xff]  ;;  %v1923_v62 = vld [vmem:[%s3454_s1 + $0x90] sm:$0xff] }
  0x11   :  { %2140 = vmatmul.mubr.msk.f32.vlgmr.msra.gmra.mrb[0].mxu1 %vm38_vm1, %v1835_v16  ;;  %2111 = vmatmul.mubr.msk.f32.vlgmr.msra.gmra.mrb[0].mxu0 %vm38_vm1, %v33_v17  ;;  %v1924_v63 = vld [vmem:[%s3454_s1 + $0x98] sm:$0xff]  ;;  %v1959_v1 = vld [vmem:[%s3454_s1 + $0xa0] sm:$0xff]  ;;  %v1960_v2 = vld [vmem:[%s3454_s1 + $0xa8] sm:$0xff] }
  0x12   :  { %2142 = vmatprep.mubr.msk.f32.mxu1 %vm2562_vm0, %v2563_v4  ;;  %2113 = vmatprep.mubr.msk.f32.mxu0 %vm2562_vm0, %v2563_v4  ;;  %v1961_v3 = vld [vmem:[%s3454_s1 + $0xb0] sm:$0xff]  ;;  %v1963_v6 = vld [vmem:[%s3454_s1 + $0xc0] sm:$0xff]  ;;  %v147_v8 = vld [vmem:[%s3453_s2 + $0x18] sm:$0xff] }
  0x13   :  { %2357 = vmatprep.subr.bf16.mxu1 %v2561_v0  ;;  %2318 = vmatprep.subr.bf16.mxu0 %v2317_v18  ;;  %v146_v11 = vld [vmem:[%s3453_s2 + $0x10] sm:$0xff]  ;;  %v149_v12 = vld [vmem:[%s3453_s2 + $0x28] sm:$0xff]  ;;  %v148_v16 = vld [vmem:[%s3453_s2 + $0x20] sm:$0xff] }
  0x14   :  { %2359 = vmatpush3.bf16.msra.mxu1 %v2620_v5  ;;  %2320 = vmatpush1.bf16.msra.mxu0 %v2319_v19  ;;  %v150_v17 = vld [vmem:[%s3453_s2 + $0x30] sm:$0xff]  ;;  %v153_v19 = vld [vmem:[%s3453_s2 + $0x48] sm:$0xff]  ;;  %v155_v20 = vld [vmem:[%s3453_s2 + $0x58] sm:$0xff] }
  0x15   :  { %2143 = vmatmul.mubr.msk.f32.gmra.mrb[2].mxu1 %vm38_vm1, %v1836_v24  ;;  %2114 = vmatmul.mubr.msk.f32.gmra.mrb[2].mxu0 %vm38_vm1, %v34_v25  ;;  %v2343_v24 = vpack.c.bf16 %v150_v17, %v148_v16  ;;  %v2345_v25 = vpack.c.bf16 %v155_v20, %v153_v19  ;;  %v157_v29 = vld [vmem:[%s3453_s2 + $0x68] sm:$0xff]  ;;  %v159_v30 = vld [vmem:[%s3453_s2 + $0x78] sm:$0xff]  ;;  %v156_v36 = vld [vmem:[%s3453_s2 + $0x60] sm:$0xff] }
  0x16   :  { %2145 = vmatprep.mubr.msk.f32.mxu1 %vm2562_vm0, %v2563_v4  ;;  %2116 = vmatprep.mubr.msk.f32.mxu0 %vm2562_vm0, %v2563_v4  ;;  %v158_v37 = vld [vmem:[%s3453_s2 + $0x70] sm:$0xff]  ;;  %v161_v39 = vld [vmem:[%s3453_s2 + $0x88] sm:$0xff]  ;;  %v160_v46 = vld [vmem:[%s3453_s2 + $0x80] sm:$0xff] }
  0x17   :  { %2360 = vmatprep.subr.bf16.mxu1 %v2561_v0  ;;  %2322 = vmatprep.subr.bf16.mxu0 %v2321_v26  ;;  %v152_v26 = vld [vmem:[%s3453_s2 + $0x40] sm:$0xff]  ;;  %v2351_v44 = vpack.c.bf16 %v158_v37, %v156_v36  ;;  %v162_v47 = vld [vmem:[%s3453_s2 + $0x90] sm:$0xff]  ;;  %v1906_v19 = vld [vmem:[%s3453_s2 + $0x1d8] sm:$0xff] }
  0x18   :  { %2362 = vmatpush3.bf16.msra.mxu1 %v2629_v7  ;;  %2324 = vmatpush1.bf16.msra.mxu0 %v2323_v27  ;;  %v154_v27 = vld [vmem:[%s3453_s2 + $0x50] sm:$0xff]  ;;  %v1912_v37 = vld [vmem:[%s3453_s2 + $0x208] sm:$0xf] }
  0x19   :  { %2146 = vmatmul.mubr.msk.f32.gmra.mrb[4].mxu1 %vm38_vm1, %v1837_v32  ;;  %2117 = vmatmul.mubr.msk.f32.gmra.mrb[4].mxu0 %vm38_vm1, %v35_v33  ;;  %v1901_v16 = vld [vmem:[%s3453_s2 + $0x1b0] sm:$0xff] }
  0x1a   :  { %2148 = vmatprep.mubr.msk.f32.mxu1 %vm2562_vm0, %v2563_v4  ;;  %2119 = vmatprep.mubr.msk.f32.mxu0 %vm2562_vm0, %v2563_v4 }
  0x1b   :  { %2363 = vmatprep.subr.bf16.mxu1 %v2561_v0  ;;  %2326 = vmatprep.subr.bf16.mxu0 %v2325_v34  ;;  %v2347_v34 = vpack.c.bf16 %v154_v27, %v152_v26  ;;  %v1908_v26 = vld [vmem:[%s3453_s2 + $0x1e8] sm:$0xff]  ;;  %v1910_v27 = vld [vmem:[%s3453_s2 + $0x1f8] sm:$0xff] }
  0x1c   :  { %2365 = vmatpush3.bf16.msra.mxu1 %v2641_v10  ;;  %2328 = vmatpush1.bf16.msra.mxu0 %v2327_v35  ;;  %v2349_v35 = vpack.c.bf16 %v159_v30, %v157_v29  ;;  %v2382_v30 = vpack.c.bf16 %v1910_v27, %v1908_v26  ;;  %v1950_v26 = vld [vmem:[%s3453_s2 + $0x2b0] sm:$0xf] }
  0x1d   :  { %2149 = vmatmul.mubr.msk.f32.gmra.mrb[6].mxu1 %vm38_vm1, %v1838_v40  ;;  %2120 = vmatmul.mubr.msk.f32.gmra.mrb[6].mxu0 %vm38_vm1, %v36_v41  ;;  %v163_v40 = vld [vmem:[%s3453_s2 + $0x98] sm:$0xff] }
  0x1e   :  { %2151 = vmatprep.mubr.msk.f32.mxu1 %vm2562_vm0, %v2563_v4  ;;  %2122 = vmatprep.mubr.msk.f32.mxu0 %vm2562_vm0, %v2563_v4  ;;  %v2353_v45 = vpack.c.bf16 %v163_v40, %v161_v39  ;;  %v1933_v39 = vld [vmem:[%s3453_s2 + $0x228] sm:$0xff]  ;;  %v1930_v40 = vld [vmem:[%s3453_s2 + $0x210] sm:$0xff] }
  0x1f   :  { %2166 = vmatprep.subr.mxu1 %v2563_v4  ;;  %2330 = vmatprep.subr.bf16.mxu0 %v2329_v42 }
  0x20   :  { %2167 = vmatpush3.msra.mxu1 %v2658_v13  ;;  %2332 = vmatpush1.bf16.msra.mxu0 %v2331_v43 }
  0x21   :  { %2152 = vmatmul.mubr.msk.f32.gmra.mrb[8].mxu1 %vm38_vm1, %v1839_v48  ;;  %2123 = vmatmul.mubr.msk.f32.gmra.mrb[8].mxu0 %vm38_vm1, %v37_v49 }
  0x22   :  { %2168 = vmatprep.mubr.msk.f32.mxu1 %vm2562_vm0, %v2563_v4  ;;  %2386 = vmatprep.subr.bf16.mxu1 %v2561_v0 }
  0x23   :  { %2334 = vmatprep.subr.bf16.mxu0 %v2333_v50  ;;  %387 = vmatprep.mubr.f32.mxu0 %v2563_v4 }
  0x24   :  { %2336 = vmatpush1.bf16.msra.mxu0 %v2335_v51 }
  0x25   :  { %2169 = vmatmul.mubr.msk.f32.vlgmr.msra.gmra.mrb[10].mxu1 %vm38_vm1, %v1881_v52  ;;  %1867 = vmatprep.subr.msk.mxu0 %vm316_vm2, %v1866_v53  ;;  %v2355_v52 = vpack.c.bf16 %v162_v47, %v160_v46 }
  0x26   :  { %2171 = vmatprep.mubr.msk.f32.mxu1 %vm2562_vm0, %v2563_v4  ;;  %2388 = vmatpush3.bf16.msra.mxu1 %v2620_v5 }
  0x27   :  { %2389 = vmatprep.subr.bf16.mxu1 %v2561_v0 }
  0x28   :  { %1868 = vmatpush1.msk.msra.mxu0 %vm316_vm2, %v1865_v54  ;;  %v165_v54 = vld [vmem:[%s3453_s2 + $0xa8] sm:$0xf] }
  0x29   :  { %2172 = vmatmul.mubr.msk.f32.gmra.mrb[12].mxu1 %vm38_vm1, %v1882_v55  ;;  %v1892_v55 = vld [vmem:[%s3453_s2 + $0x168] sm:$0xff] }
  0x2a   :  { %2174 = vmatprep.mubr.msk.f32.mxu1 %vm2562_vm0, %v2563_v4  ;;  %2391 = vmatpush3.bf16.msra.mxu1 %v2629_v7 }
  0x2b   :  { %2392 = vmatprep.subr.bf16.mxu1 %v2561_v0 }
  0x2d   :  { %2175 = vmatmul.mubr.msk.f32.gmra.mrb[14].mxu1 %vm38_vm1, %v1883_v56  ;;  %v1894_v56 = vld [vmem:[%s3453_s2 + $0x178] sm:$0xff] }
  0x2e   :  { %2177 = vmatprep.mubr.msk.f32.mxu1 %vm2562_vm0, %v2563_v4  ;;  %2394 = vmatpush3.bf16.msra.mxu1 %v2641_v10 }
  0x2f   :  { %2195 = vmatprep.subr.mxu1 %v2563_v4 }
  0x31   :  { %2178 = vmatmul.mubr.msk.f32.gmra.mrb[16].mxu1 %vm38_vm1, %v1884_v57 }
  0x32   :  { %2180 = vmatprep.mubr.msk.f32.mxu1 %vm2562_vm0, %v2563_v4  ;;  %2196 = vmatpush3.msra.mxu1 %v2658_v13 }
  0x33   :  { %2415 = vmatprep.subr.bf16.mxu1 %v2561_v0 }
  0x35   :  { %2181 = vmatmul.mubr.msk.f32.gmra.mrb[18].mxu1 %vm38_vm1, %v1885_v58 }
  0x36   :  { %2197 = vmatprep.mubr.msk.f32.mxu1 %vm2562_vm0, %v2563_v4 }
  0x39   :  { %2198 = vmatmul.mubr.msk.f32.vlgmr.msra.gmra.mrb[20].mxu1 %vm38_vm1, %v1920_v59  ;;  %v1891_v59 = vld [vmem:[%s3453_s2 + $0x160] sm:$0xff] }
  0x3a   :  { %2200 = vmatprep.mubr.msk.f32.mxu1 %vm2562_vm0, %v2563_v4  ;;  %2417 = vmatpush3.bf16.msra.mxu1 %v2620_v5  ;;  %v1962_v5 = vld [vmem:[%s3454_s1 + $0xb8] sm:$0xff] }
  0x3b   :  { %2418 = vmatprep.subr.bf16.mxu1 %v2561_v0 }
  0x3d   :  { %2201 = vmatmul.mubr.msk.f32.gmra.mrb[22].mxu1 %vm38_vm1, %v1921_v60  ;;  %v1893_v60 = vld [vmem:[%s3453_s2 + $0x170] sm:$0xff] }
  0x3e   :  { %2203 = vmatprep.mubr.msk.f32.mxu1 %vm2562_vm0, %v2563_v4  ;;  %2420 = vmatpush3.bf16.msra.mxu1 %v2629_v7  ;;  %v145_v7 = vld [vmem:[%s3453_s2 + $0x8] sm:$0xff] }
  0x3f   :  { %2421 = vmatprep.subr.bf16.mxu1 %v2561_v0  ;;  %v2337_v9 = vpack.c.bf16 %v147_v8, %v145_v7  ;;  %v1895_v7 = vld [vmem:[%s3453_s2 + $0x180] sm:$0xff]  ;;  %v1897_v8 = vld [vmem:[%s3453_s2 + $0x190] sm:$0xff] }
  0x41   :  { %2204 = vmatmul.mubr.msk.f32.gmra.mrb[24].mxu1 %vm38_vm1, %v1922_v61  ;;  %2338 = vmatprep.subr.bf16.mxu0 %v2337_v9 }
  0x42   :  { %2206 = vmatprep.mubr.msk.f32.mxu1 %vm2562_vm0, %v2563_v4  ;;  %2423 = vmatpush3.bf16.msra.mxu1 %v2641_v10  ;;  %v144_v10 = vld [vmem:[%s3453_s2] sm:$0xff] }
  0x43   :  { %2224 = vmatprep.subr.mxu1 %v2563_v4  ;;  %v2339_v14 = vpack.c.bf16 %v146_v11, %v144_v10  ;;  %v1900_v10 = vld [vmem:[%s3453_s2 + $0x1a8] sm:$0xff]  ;;  %v1902_v11 = vld [vmem:[%s3453_s2 + $0x1b8] sm:$0xff] }
  0x45   :  { %2207 = vmatmul.mubr.msk.f32.gmra.mrb[26].mxu1 %vm38_vm1, %v1923_v62  ;;  %v1896_v62 = vld [vmem:[%s3453_s2 + $0x188] sm:$0xff] }
  0x46   :  { %2209 = vmatprep.mubr.msk.f32.mxu1 %vm2562_vm0, %v2563_v4  ;;  %2225 = vmatpush3.msra.mxu1 %v2658_v13  ;;  %v151_v13 = vld [vmem:[%s3453_s2 + $0x38] sm:$0xff] }
  0x47   :  { %v2341_v15 = vpack.c.bf16 %v151_v13, %v149_v12  ;;  %v2372_v12 = vpack.c.bf16 %v1897_v8, %v1895_v7  ;;  %v1949_v7 = vld [vmem:[%s3453_s2 + $0x2a8] sm:$0xff] }
  0x49   :  { %2210 = vmatmul.mubr.msk.f32.gmra.mrb[28].mxu1 %vm38_vm1, %v1924_v63  ;;  %v1898_v63 = vld [vmem:[%s3453_s2 + $0x198] sm:$0xff] }
  0x4a   :  { %2226 = vmatprep.mubr.msk.f32.mxu1 %vm2562_vm0, %v2563_v4 }
  0x4d   :  { %2227 = vmatmul.mubr.msk.f32.vlgmr.msra.gmra.mrb[30].mxu1 %vm38_vm1, %v1959_v1  ;;  %v164_v1 = vld [vmem:[%s3453_s2 + $0xa0] sm:$0xf] }
  0x4e   :  { %2229 = vmatprep.mubr.msk.f32.mxu1 %vm2562_vm0, %v2563_v4 }
  0x51   :  { %2230 = vmatmul.mubr.msk.f32.gmra.mrb[32].mxu1 %vm38_vm1, %v1960_v2  ;;  %v2366_v2 = vpack.c.bf16 %v1894_v56, %v1892_v55 }
  0x52   :  { %2232 = vmatprep.mubr.msk.f32.mxu1 %vm2562_vm0, %v2563_v4 }
  0x55   :  { %2233 = vmatmul.mubr.msk.f32.gmra.mrb[34].mxu1 %vm38_vm1, %v1961_v3  ;;  %v2368_v3 = vpack.c.bf16 %v1893_v60, %v1891_v59  ;;  %v1940_v59 = vld [vmem:[%s3453_s2 + $0x260] sm:$0xff]  ;;  %v1943_v60 = vld [vmem:[%s3453_s2 + $0x278] sm:$0xff] }
  0x56   :  { %2235 = vmatprep.mubr.msk.f32.mxu1 %vm2562_vm0, %v2563_v4 }
  0x59   :  { %2236 = vmatmul.mubr.msk.f32.gmra.mrb[36].mxu1 %vm38_vm1, %v1962_v5 }
  0x5a   :  { %2238 = vmatprep.mubr.msk.f32.mxu1 %vm2562_vm0, %v2563_v4 }
  0x5d   :  { %2239 = vmatmul.mubr.msk.f32.gmra.mrb[38].mxu1 %vm38_vm1, %v1963_v6  ;;  %v2370_v6 = vpack.c.bf16 %v1898_v63, %v1896_v62 }
  0x5e   :  { %1423 = vmatprep.mubr.f32.mxu1 %v2563_v4 }
  0xe4   :  { %v253_v18 = vpop.f32.mrb[0].mxu1  ;;  %v2927_v21 = vpop.f32.mrb[0].mxu0 }
  0xe5   :  { %v2141_v22 = vpop.f32.mrb[1].mxu1  ;;  %1869 = vmatmul.mubr.msk.f32.vlgmr.msra.gmra.mrb[10].mxu0 %vm300_vm3, %v253_v18  ;;  %v2112_v23 = vpop.f32.mrb[1].mxu0  ;;  %v1904_v18 = vld [vmem:[%s3453_s2 + $0x1c8] sm:$0xff] }
  0xe6   :  { %2340 = vmatpush1.bf16.msra.mxu0 %v2339_v14  ;;  %393 = vmatprep.mubr.f32.mxu0 %v2563_v4  ;;  %v2374_v14 = vpack.c.bf16 %v1902_v11, %v1900_v10  ;;  %v2378_v22 = vpack.c.bf16 %v1906_v19, %v1904_v18  ;;  %v1903_v23 = vld [vmem:[%s3453_s2 + $0x1c0] sm:$0xff]  ;;  %v1970_v18 = vld [vmem:[%s3453_s2 + $0x2c8] sm:$0xff]  ;;  %v1972_v19 = vld [vmem:[%s3453_s2 + $0x2d8] sm:$0xff] }
  0xe7   :  { %2342 = vmatprep.subr.bf16.mxu0 %v2341_v15  ;;  %v1899_v15 = vld [vmem:[%s3453_s2 + $0x1a0] sm:$0xff]  ;;  %v2424_v27 = vpack.c.bf16 %v1972_v19, %v1970_v18 }
  0xe8   :  { %v258_v28 = vpop.f32.mrb[2].mxu1  ;;  %v2943_v31 = vpop.f32.mrb[2].mxu0  ;;  %v2376_v20 = vpack.c.bf16 %v1901_v16, %v1899_v15 }
  0xe9   :  { %v2144_v32 = vpop.f32.mrb[3].mxu1  ;;  %1870 = vmatmul.mubr.msk.f32.gmra.mrb[12].mxu0 %vm300_vm3, %v258_v28  ;;  %v2115_v33 = vpop.f32.mrb[3].mxu0 }
  0xea   :  { %2344 = vmatpush1.bf16.msra.mxu0 %v2343_v24  ;;  %399 = vmatprep.mubr.f32.mxu0 %v2563_v4  ;;  %v1905_v24 = vld [vmem:[%s3453_s2 + $0x1d0] sm:$0xff] }
  0xeb   :  { %2346 = vmatprep.subr.bf16.mxu0 %v2345_v25  ;;  %v2380_v28 = vpack.c.bf16 %v1905_v24, %v1903_v23  ;;  %v1909_v32 = vld [vmem:[%s3453_s2 + $0x1f0] sm:$0xff]  ;;  %v1974_v24 = vld [vmem:[%s3453_s2 + $0x2e8] sm:$0xff] }
  0xec   :  { %v263_v38 = vpop.f32.mrb[4].mxu1  ;;  %v2959_v41 = vpop.f32.mrb[4].mxu0 }
  0xed   :  { %v2147_v42 = vpop.f32.mrb[5].mxu1  ;;  %1871 = vmatmul.mubr.msk.f32.gmra.mrb[14].mxu0 %vm300_vm3, %v263_v38  ;;  %v2118_v43 = vpop.f32.mrb[5].mxu0  ;;  %v1931_v38 = vld [vmem:[%s3453_s2 + $0x218] sm:$0xff] }
  0xee   :  { %2348 = vmatpush1.bf16.msra.mxu0 %v2347_v34  ;;  %405 = vmatprep.mubr.f32.mxu0 %v2563_v4  ;;  %v1935_v42 = vld [vmem:[%s3453_s2 + $0x238] sm:$0xff]  ;;  %v1937_v43 = vld [vmem:[%s3453_s2 + $0x248] sm:$0xff]  ;;  %v2395_v46 = vpack.c.bf16 %v1933_v39, %v1931_v38  ;;  %v1977_v39 = vld [vmem:[%s3453_s2 + $0x300] sm:$0xff] }
  0xef   :  { %2350 = vmatprep.subr.bf16.mxu0 %v2349_v35 }
  0xf0   :  { %v268_v48 = vpop.f32.mrb[6].mxu1  ;;  %v2969_v49 = vpop.f32.mrb[6].mxu0 }
  0xf1   :  { %v2150_v50 = vpop.f32.mrb[7].mxu1  ;;  %1872 = vmatmul.mubr.msk.f32.gmra.mrb[16].mxu0 %vm300_vm3, %v268_v48  ;;  %v2121_v51 = vpop.f32.mrb[7].mxu0 }
  0xf2   :  { %2352 = vmatpush1.bf16.msra.mxu0 %v2351_v44  ;;  %411 = vmatprep.mubr.f32.mxu0 %v2563_v4  ;;  %v1934_v50 = vld [vmem:[%s3453_s2 + $0x230] sm:$0xff]  ;;  %v1936_v51 = vld [vmem:[%s3453_s2 + $0x240] sm:$0xff] }
  0xf3   :  { %2354 = vmatprep.subr.bf16.mxu0 %v2353_v45  ;;  %v1911_v45 = vld [vmem:[%s3453_s2 + $0x200] sm:$0xf]  ;;  %v2401_v56 = vpack.c.bf16 %v1936_v51, %v1934_v50  ;;  %v1986_v50 = vld [vmem:[%s3453_s2 + $0x348] sm:$0xff]  ;;  %v1988_v51 = vld [vmem:[%s3453_s2 + $0x358] sm:$0xff] }
  0xf4   :  { %v273_v53 = vpop.f32.mrb[8].mxu1  ;;  %v2982_v57 = vpop.f32.mrb[8].mxu0 }
  0xf5   :  { %v2153_v58 = vpop.f32.mrb[9].mxu1  ;;  %1873 = vmatmul.mubr.msk.f32.gmra.mrb[18].mxu0 %vm300_vm3, %v273_v53  ;;  %v2124_v61 = vpop.f32.mrb[9].mxu0  ;;  %v1941_v53 = vld [vmem:[%s3453_s2 + $0x268] sm:$0xff] }
  0xf6   :  { %2356 = vmatpush1.bf16.msra.mxu0 %v2355_v52  ;;  %503 = vmatprep.mubr.f32.mxu0 %v2563_v4  ;;  %v1939_v52 = vld [vmem:[%s3453_s2 + $0x258] sm:$0xff]  ;;  %v1938_v58 = vld [vmem:[%s3453_s2 + $0x250] sm:$0xff]  ;;  %v1945_v61 = vld [vmem:[%s3453_s2 + $0x288] sm:$0xff] }
  0xf7   :  { %1874 = vmatprep.subr.msk.mxu0 %vm316_vm2, %v165_v54 }
  0xf8   :  { %v3002_v5 = vpop.f32.mrb[10].mxu1 }
  0xf9   :  { %v2170_v9 = vpop.f32.mrb[11].mxu1 }
  0xfa   :  { %1875 = vmatpush1.msk.msra.mxu0 %vm316_vm2, %v164_v1  ;;  %v2405_v1 = vpack.c.bf16 %v1940_v59, %v1938_v58  ;;  %v1990_v59 = vld [vmem:[%s3453_s2 + $0x368] sm:$0xf] }
  0xfb   :  { %2367 = vmatprep.subr.bf16.mxu0 %v2366_v2  ;;  %1876 = vmatmul.mubr.msk.f32.vlgmr.msra.gmra.mrb[10].mxu0 %vm300_vm3, %v2927_v21  ;;  %v2407_v2 = vpack.c.bf16 %v1945_v61, %v1943_v60  ;;  %v1989_v60 = vld [vmem:[%s3453_s2 + $0x360] sm:$0xf]  ;;  %v1316_v61 = vlaneseq }
  0xfc   :  { %2369 = vmatpush1.bf16.msra.mxu0 %v2368_v3  ;;  %509 = vmatprep.mubr.f32.mxu0 %v2563_v4  ;;  %v3020_v13 = vpop.f32.mrb[12].mxu1  ;;  %v1942_v3 = vld [vmem:[%s3453_s2 + $0x270] sm:$0xff] }
  0xfd   :  { %2371 = vmatprep.subr.bf16.mxu0 %v2370_v6  ;;  %v2173_v17 = vpop.f32.mrb[13].mxu1  ;;  %v1947_v6 = vld [vmem:[%s3453_s2 + $0x298] sm:$0xff] }
  0xfe   :  { %v2411_v11 = vpack.c.bf16 %v1949_v7, %v1947_v6  ;;  %v1951_v17 = vld [vmem:[%s3453_s2 + $0x2b8] sm:$0xf] }
  0xff   :  { %1877 = vmatmul.mubr.msk.f32.gmra.mrb[12].mxu0 %vm300_vm3, %v2943_v31  ;;  %v1907_v31 = vld [vmem:[%s3453_s2 + $0x1e0] sm:$0xff] }
 0x100   :  { %2373 = vmatpush1.bf16.msra.mxu0 %v2372_v12  ;;  %515 = vmatprep.mubr.f32.mxu0 %v2563_v4  ;;  %v3037_v21 = vpop.f32.mrb[14].mxu1  ;;  %v2384_v34 = vpack.c.bf16 %v1909_v32, %v1907_v31  ;;  %v1946_v12 = vld [vmem:[%s3453_s2 + $0x290] sm:$0xff]  ;;  %v1973_v31 = vld [vmem:[%s3453_s2 + $0x2e0] sm:$0xff] }
 0x101   :  { %2375 = vmatprep.subr.bf16.mxu0 %v2374_v14  ;;  %v2176_v25 = vpop.f32.mrb[15].mxu1  ;;  %v1975_v32 = vld [vmem:[%s3453_s2 + $0x2f0] sm:$0xff] }
 0x102   :  { %v1976_v25 = vld [vmem:[%s3453_s2 + $0x2f8] sm:$0xff] }
 0x103   :  { %1878 = vmatmul.mubr.msk.f32.gmra.mrb[14].mxu0 %vm300_vm3, %v2959_v41  ;;  %v1932_v41 = vld [vmem:[%s3453_s2 + $0x220] sm:$0xff] }
 0x104   :  { %2377 = vmatpush1.bf16.msra.mxu0 %v2376_v20  ;;  %521 = vmatprep.mubr.f32.mxu0 %v2563_v4  ;;  %v3054_v29 = vpop.f32.mrb[16].mxu1  ;;  %v2397_v48 = vpack.c.bf16 %v1932_v41, %v1930_v40  ;;  %v1979_v40 = vld [vmem:[%s3453_s2 + $0x310] sm:$0xff] }
 0x105   :  { %2379 = vmatprep.subr.bf16.mxu0 %v2378_v22  ;;  %v2179_v33 = vpop.f32.mrb[17].mxu1  ;;  %v1971_v22 = vld [vmem:[%s3453_s2 + $0x2d0] sm:$0xff] }
 0x107   :  { %1879 = vmatmul.mubr.msk.f32.gmra.mrb[16].mxu0 %vm300_vm3, %v2969_v49  ;;  %v2399_v49 = vpack.c.bf16 %v1937_v43, %v1935_v42  ;;  %v1982_v42 = vld [vmem:[%s3453_s2 + $0x328] sm:$0xff]  ;;  %v1984_v43 = vld [vmem:[%s3453_s2 + $0x338] sm:$0xff] }
 0x108   :  { %2381 = vmatpush1.bf16.msra.mxu0 %v2380_v28  ;;  %527 = vmatprep.mubr.f32.mxu0 %v2563_v4  ;;  %v3065_v35 = vpop.f32.mrb[18].mxu1 }
 0x109   :  { %2383 = vmatprep.subr.bf16.mxu0 %v2382_v30  ;;  %v2182_v36 = vpop.f32.mrb[19].mxu1  ;;  %v2428_v30 = vpack.c.bf16 %v1976_v25, %v1974_v24 }
 0x10a   :  { %v2430_v36 = vpack.c.bf16 %v1975_v32, %v1973_v31 }
 0x10b   :  { %1880 = vmatmul.mubr.msk.f32.gmra.mrb[18].mxu0 %vm300_vm3, %v2982_v57  ;;  %v2403_v57 = vpack.c.bf16 %v1941_v53, %v1939_v52 }
 0x10c   :  { %2385 = vmatpush1.bf16.msra.mxu0 %v2384_v34  ;;  %753 = vmatprep.mubr.f32.mxu0 %v2563_v4  ;;  %v3091_v44 = vpop.f32.mrb[20].mxu1  ;;  %v1978_v34 = vld [vmem:[%s3453_s2 + $0x308] sm:$0xff] }
 0x10d   :  { %1913 = vmatprep.subr.msk.mxu0 %vm316_vm2, %v1912_v37  ;;  %v2199_v47 = vpop.f32.mrb[21].mxu1 }
 0x10e   :  { %v1981_v47 = vld [vmem:[%s3453_s2 + $0x320] sm:$0xff] }
 0x110   :  { %1914 = vmatpush1.msk.msra.mxu0 %vm316_vm2, %v1911_v45  ;;  %v3110_v54 = vpop.f32.mrb[22].mxu1 }
 0x111   :  { %2396 = vmatprep.subr.bf16.mxu0 %v2395_v46  ;;  %1915 = vmatmul.mubr.msk.f32.vlgmr.msra.gmra.mrb[10].mxu0 %vm300_vm3, %v3002_v5  ;;  %v2202_v55 = vpop.f32.mrb[23].mxu1  ;;  %v1944_v5 = vld [vmem:[%s3453_s2 + $0x280] sm:$0xff]  ;;  %v2436_v46 = vpack.c.bf16 %v1984_v43, %v1982_v42 }
 0x112   :  { %2398 = vmatpush1.bf16.msra.mxu0 %v2397_v48  ;;  %759 = vmatprep.mubr.f32.mxu0 %v2563_v4  ;;  %v2409_v10 = vpack.c.bf16 %v1944_v5, %v1942_v3  ;;  %v1983_v48 = vld [vmem:[%s3453_s2 + $0x330] sm:$0xff]  ;;  %v1985_v55 = vld [vmem:[%s3453_s2 + $0x340] sm:$0xff] }
 0x113   :  { %2400 = vmatprep.subr.bf16.mxu0 %v2399_v49  ;;  %v2438_v52 = vpack.c.bf16 %v1983_v48, %v1981_v47  ;;  %v1346_v42 = vld [vmem:[%s3457_s4] sm:$0xff] }
 0x114   :  { %v3127_v62 = vpop.f32.mrb[24].mxu1  ;;  %v1446_v48 = vld [vmem:[%s3456_s5 + $0x20] sm:$0xff] }
 0x115   :  { %1916 = vmatmul.mubr.msk.f32.gmra.mrb[12].mxu0 %vm300_vm3, %v3020_v13  ;;  %v2205_v63 = vpop.f32.mrb[25].mxu1  ;;  %v1948_v13 = vld [vmem:[%s3453_s2 + $0x2a0] sm:$0xff] }
 0x116   :  { %2402 = vmatpush1.bf16.msra.mxu0 %v2401_v56  ;;  %765 = vmatprep.mubr.f32.mxu0 %v2563_v4  ;;  %v2413_v16 = vpack.c.bf16 %v1948_v13, %v1946_v12  ;;  %v1987_v56 = vld [vmem:[%s3453_s2 + $0x350] sm:$0xff] }
 0x117   :  { %2404 = vmatprep.subr.bf16.mxu0 %v2403_v57  ;;  %v2442_v58 = vpack.c.bf16 %v1987_v56, %v1985_v55  ;;  %v1450_v55 = vld [vmem:[%s3456_s5 + $0x40] sm:$0xff]  ;;  %v1451_v56 = vld [vmem:[%s3456_s5 + $0x48] sm:$0xff] }
 0x118   :  { %v3144_v8 = vpop.f32.mrb[26].mxu1 }
 0x119   :  { %1917 = vmatmul.mubr.msk.f32.gmra.mrb[14].mxu0 %vm300_vm3, %v3037_v21  ;;  %v2208_v9 = vpop.f32.mrb[27].mxu1  ;;  %v1969_v21 = vld [vmem:[%s3453_s2 + $0x2c0] sm:$0xff] }
 0x11a   :  { %2406 = vmatpush1.bf16.msra.mxu0 %v2405_v1  ;;  %771 = vmatprep.mubr.f32.mxu0 %v2563_v4  ;;  %v2426_v28 = vpack.c.bf16 %v1971_v22, %v1969_v21  ;;  %v1314_v1 = vld [vmem:[%s3455_s3] sm:$0x3] }
 0x11b   :  { %2408 = vmatprep.subr.bf16.mxu0 %v2407_v2 }
 0x11c   :  { %v3155_v14 = vpop.f32.mrb[28].mxu1 }
 0x11d   :  { %1918 = vmatmul.mubr.msk.f32.gmra.mrb[16].mxu0 %vm300_vm3, %v3054_v29  ;;  %v2211_v15 = vpop.f32.mrb[29].mxu1 }
 0x11e   :  { %2410 = vmatpush1.bf16.msra.mxu0 %v2409_v10  ;;  %777 = vmatprep.mubr.f32.mxu0 %v2563_v4 }
 0x11f   :  { %2412 = vmatprep.subr.bf16.mxu0 %v2411_v11 }
 0x120   :  { %v3169_v20 = vpop.f32.mrb[30].mxu1 }
 0x121   :  { %1919 = vmatmul.mubr.msk.f32.gmra.mrb[18].mxu0 %vm300_vm3, %v3065_v35  ;;  %v2228_v23 = vpop.f32.mrb[31].mxu1  ;;  %v1980_v35 = vld [vmem:[%s3453_s2 + $0x318] sm:$0xff] }
 0x122   :  { %2414 = vmatpush1.bf16.msra.mxu0 %v2413_v16  ;;  %1013 = vmatprep.mubr.f32.mxu0 %v2563_v4  ;;  %v2432_v38 = vpack.c.bf16 %v1980_v35, %v1978_v34 }
 0x123   :  { %1952 = vmatprep.subr.msk.mxu0 %vm316_vm2, %v1951_v17 }
 0x124   :  { %v1146_v29 = vpop.f32.mrb[32].mxu1 }
 0x125   :  { %v2231_v33 = vpop.f32.mrb[33].mxu1 }
 0x126   :  { %1953 = vmatpush1.msk.msra.mxu0 %vm316_vm2, %v1950_v26 }
 0x127   :  { %2425 = vmatprep.subr.bf16.mxu0 %v2424_v27  ;;  %1954 = vmatmul.mubr.msk.f32.vlgmr.msra.gmra.mrb[10].mxu0 %vm300_vm3, %v3091_v44  ;;  %v2434_v44 = vpack.c.bf16 %v1979_v40, %v1977_v39  ;;  %v1442_v39 = vld [vmem:[%s3456_s5] sm:$0xff]  ;;  %v1443_v40 = vld [vmem:[%s3456_s5 + $0x8] sm:$0xff] }
 0x128   :  { %2427 = vmatpush1.bf16.msra.mxu0 %v2426_v28  ;;  %1019 = vmatprep.mubr.f32.mxu0 %v2563_v4  ;;  %v1151_v37 = vpop.f32.mrb[34].mxu1  ;;  %v2453_v43 = vpack.c.bf16 %v1443_v40, %v1442_v39 }
 0x129   :  { %2429 = vmatprep.subr.bf16.mxu0 %v2428_v30  ;;  %v2234_v41 = vpop.f32.mrb[35].mxu1 }
 0x12b   :  { %1955 = vmatmul.mubr.msk.f32.gmra.mrb[12].mxu0 %vm300_vm3, %v3110_v54  ;;  %v2440_v54 = vpack.c.bf16 %v1988_v51, %v1986_v50  ;;  %v1348_v50 = vld [vmem:[%s3457_s4 + $0x10] sm:$0xf] }
 0x12c   :  { %2431 = vmatpush1.bf16.msra.mxu0 %v2430_v36  ;;  %1025 = vmatprep.mubr.f32.mxu0 %v2563_v4  ;;  %v1156_v45 = vpop.f32.mrb[36].mxu1 }
 0x12d   :  { %2433 = vmatprep.subr.bf16.mxu0 %v2432_v38  ;;  %v2237_v49 = vpop.f32.mrb[37].mxu1 }
 0x12e   :  { %v1447_v49 = vld [vmem:[%s3456_s5 + $0x28] sm:$0xff] }
 0x12f   :  { %1956 = vmatmul.mubr.msk.f32.gmra.mrb[14].mxu0 %vm300_vm3, %v3127_v62  ;;  %v1317_v62 = vshrl.u32 %v1316_v61, 7  ;;  %v2459_v51 = vpack.c.bf16 %v1447_v49, %v1446_v48  ;;  %v1454_v61 = vld [vmem:[%s3456_s5 + $0x60] sm:$0xff] }
 0x130   :  { %2435 = vmatpush1.bf16.msra.mxu0 %v2434_v44  ;;  %1031 = vmatprep.mubr.f32.mxu0 %v2563_v4  ;;  %v1161_v53 = vpop.f32.mrb[38].mxu1  ;;  %v1444_v44 = vld [vmem:[%s3456_s5 + $0x10] sm:$0xff] }
 0x131   :  { %2437 = vmatprep.subr.bf16.mxu0 %v2436_v46  ;;  %v2240_v57 = vpop.f32.mrb[39].mxu1  ;;  %v3269_v63 = vsub.s32 0, %v1317_v62  ;;  %v1322_v2 = vsub.s32 1, %v1317_v62  ;;  %v1347_v46 = vld [vmem:[%s3457_s4 + $0x8] sm:$0xff] }
 0x132   :  { %v2465_v57 = vpack.c.bf16 %v1451_v56, %v1450_v55  ;;  %v1455_v62 = vld [vmem:[%s3456_s5 + $0x68] sm:$0xff] }
 0x133   :  { %1957 = vmatmul.mubr.msk.f32.gmra.mrb[16].mxu0 %vm300_vm3, %v3144_v8  ;;  %v1319_v3 = vrot.slane %v1314_v1, %v3269_v63  ;;  %v1323_v6 = vrot.slane %v1314_v1, %v1322_v2  ;;  %v2471_v1 = vpack.c.bf16 %v1455_v62, %v1454_v61  ;;  %v1456_v2 = vld [vmem:[%s3456_s5 + $0x70] sm:$0xff] }
 0x134   :  { %2439 = vmatpush1.bf16.msra.mxu0 %v2438_v52  ;;  %1037 = vmatprep.mubr.f32.mxu0 %v2563_v4  ;;  %v1448_v52 = vld [vmem:[%s3456_s5 + $0x30] sm:$0xff] }
 0x135   :  { %2441 = vmatprep.subr.bf16.mxu0 %v2440_v54 }
 0x137   :  { %1958 = vmatmul.mubr.msk.f32.gmra.mrb[18].mxu0 %vm300_vm3, %v3155_v14 }
 0x138   :  { %2443 = vmatpush1.bf16.msra.mxu0 %v2442_v58  ;;  %1273 = vmatprep.mubr.f32.mxu0 %v2563_v4  ;;  %v1452_v58 = vld [vmem:[%s3456_s5 + $0x50] sm:$0xff] }
 0x139   :  { %1991 = vmatprep.subr.msk.mxu0 %vm316_vm2, %v1990_v59  ;;  %v1453_v59 = vld [vmem:[%s3456_s5 + $0x58] sm:$0xff] }
 0x13c   :  { %1992 = vmatpush1.msk.msra.mxu0 %vm316_vm2, %v1989_v60  ;;  %v2468_v60 = vpack.c.bf16 %v1453_v59, %v1452_v58 }
 0x13d   :  { %1993 = vmatmul.mubr.msk.f32.vlgmr.msra.gmra.mrb[10].mxu0 %vm300_vm3, %v3169_v20  ;;  %2482 = vmatprep.subr.bf16.mxu0 %v2561_v0 }
 0x13e   :  { %1279 = vmatprep.mubr.f32.mxu0 %v2563_v4 }
 0x141   :  { %1994 = vmatmul.mubr.msk.f32.gmra.mrb[12].mxu0 %vm300_vm3, %v1146_v29 }
 0x142   :  { %1285 = vmatprep.mubr.f32.mxu0 %v2563_v4 }
 0x145   :  { %1995 = vmatmul.mubr.msk.f32.gmra.mrb[14].mxu0 %vm300_vm3, %v1151_v37 }
 0x146   :  { %1291 = vmatprep.mubr.f32.mxu0 %v2563_v4 }
 0x149   :  { %1996 = vmatmul.mubr.msk.f32.gmra.mrb[16].mxu0 %vm300_vm3, %v1156_v45  ;;  %v1445_v45 = vld [vmem:[%s3456_s5 + $0x18] sm:$0xff] }
 0x14a   :  { %1297 = vmatprep.mubr.f32.mxu0 %v2563_v4  ;;  %v2456_v47 = vpack.c.bf16 %v1445_v45, %v1444_v44 }
 0x14d   :  { %1997 = vmatmul.mubr.msk.f32.gmra.mrb[18].mxu0 %vm300_vm3, %v1161_v53  ;;  %v1449_v53 = vld [vmem:[%s3456_s5 + $0x38] sm:$0xff] }
 0x14e   :  { %2261 = vmatprep.mubr.msk.f32.mxu0 %vm2562_vm0, %v2563_v4  ;;  %v2462_v54 = vpack.c.bf16 %v1449_v53, %v1448_v52 }
 0x210   :  { %v1275_v5 = vpop.f32.mrb[10].mxu0 }
 0x211   :  { %v1277_v7 = vpop.f32.mrb[11].mxu0  ;;  %v1326_v8 = vadd.f32 %v1319_v3, %v1275_v5 }
 0x212   :  { %v1327_v9 = vadd.f32 %v1323_v6, %v1277_v7  ;;  %v1459_v7 = vld [vmem:[%s3456_s5 + $0x88] sm:$0xff] }
 0x213   :  { %v1336_v14 = vmax.f32 %v1326_v8, 0.0 }
 0x214   :  { %v1281_v10 = vpop.f32.mrb[12].mxu0  ;;  %v1337_v16 = vmax.f32 %v1327_v9, 0.0  ;;  %v1460_v9 = vld [vmem:[%s3456_s5 + $0x90] sm:$0xff] }
 0x215   :  { %v1328_v11 = vadd.f32 %v1319_v3, %v1281_v10  ;;  %v1283_v12 = vpop.f32.mrb[13].mxu0  ;;  %v1461_v10 = vld [vmem:[%s3456_s5 + $0x98] sm:$0xff] }
 0x216   :  { %v1329_v13 = vadd.f32 %v1323_v6, %v1283_v12  ;;  %v1552_v12 = vld [vmem:[%s3458_s6] sm:$0xff] }
 0x217   :  { %v1338_v15 = vmax.f32 %v1328_v11, 0.0  ;;  %v2480_v11 = vpack.c.bf16 %v1461_v10, %v1460_v9 }
 0x218   :  { %v1339_v17 = vmax.f32 %v1329_v13, 0.0  ;;  %v1287_v18 = vpop.f32.mrb[14].mxu0  ;;  %v1553_v13 = vld [vmem:[%s3458_s6 + $0x8] sm:$0xff] }
 0x219   :  { %v2446_v19 = vpack.c.bf16 %v1338_v15, %v1336_v14  ;;  %v1289_v20 = vpop.f32.mrb[15].mxu0  ;;  %v1330_v22 = vadd.f32 %v1319_v3, %v1287_v18  ;;  %v1554_v14 = vld [vmem:[%s3458_s6 + $0x10] sm:$0xff]  ;;  %v2483_v15 = vpack.c.bf16 %v1553_v13, %v1552_v12  ;;  %v1556_v18 = vld [vmem:[%s3458_s6 + $0x20] sm:$0xff] }
 0x21a   :  { %v2444_v21 = vpack.c.bf16 %v1339_v17, %v1337_v16  ;;  %v1331_v23 = vadd.f32 %v1323_v6, %v1289_v20  ;;  %v1555_v16 = vld [vmem:[%s3458_s6 + $0x18] sm:$0xff] }
 0x21b   :  { %v1340_v28 = vmax.f32 %v1330_v22, 0.0  ;;  %2484 = vmatpush3.bf16.msra.mxu0 %v2483_v15  ;;  %v2486_v17 = vpack.c.bf16 %v1555_v16, %v1554_v14  ;;  %v1559_v22 = vld [vmem:[%s3458_s6 + $0x38] sm:$0xff] }
 0x21c   :  { %v1293_v24 = vpop.f32.mrb[16].mxu0  ;;  %2445 = vmatprep.subr.bf16.mxu1 %v2444_v21  ;;  %v1341_v30 = vmax.f32 %v1331_v23, 0.0  ;;  %2485 = vmatprep.subr.bf16.mxu0 %v2561_v0  ;;  %v1558_v21 = vld [vmem:[%s3458_s6 + $0x30] sm:$0xff] }
 0x21d   :  { %v1332_v25 = vadd.f32 %v1319_v3, %v1293_v24  ;;  %v1295_v26 = vpop.f32.mrb[17].mxu0  ;;  %2447 = vmatpush1.bf16.msra.mxu1 %v2446_v19  ;;  %v1557_v19 = vld [vmem:[%s3458_s6 + $0x28] sm:$0xff]  ;;  %v2492_v23 = vpack.c.bf16 %v1559_v22, %v1558_v21  ;;  %v1560_v24 = vld [vmem:[%s3458_s6 + $0x40] sm:$0xff] }
 0x21e   :  { %v1333_v27 = vadd.f32 %v1323_v6, %v1295_v26  ;;  %v2489_v20 = vpack.c.bf16 %v1557_v19, %v1556_v18 }
 0x21f   :  { %v1342_v29 = vmax.f32 %v1332_v25, 0.0  ;;  %2487 = vmatpush3.bf16.msra.mxu0 %v2486_v17  ;;  %v1561_v25 = vld [vmem:[%s3458_s6 + $0x48] sm:$0xff]  ;;  %s2564_s6 = smov 48  }
 0x220   :  { %v1343_v31 = vmax.f32 %v1333_v27, 0.0  ;;  %v1299_v32 = vpop.f32.mrb[18].mxu0  ;;  %2488 = vmatprep.subr.bf16.mxu0 %v2561_v0  ;;  %v2495_v26 = vpack.c.bf16 %v1561_v25, %v1560_v24 }
 0x221   :  { %v2450_v33 = vpack.c.bf16 %v1342_v29, %v1340_v28  ;;  %v1301_v34 = vpop.f32.mrb[19].mxu0  ;;  %v1334_v37 = vadd.f32 %v1319_v3, %v1299_v32  ;;  %v1457_v3 = vld [vmem:[%s3456_s5 + $0x78] sm:$0xff] }
 0x222   :  { %v2448_v35 = vpack.c.bf16 %v1343_v31, %v1341_v30  ;;  %v1335_v36 = vadd.f32 %v1323_v6, %v1301_v34  ;;  %v2474_v5 = vpack.c.bf16 %v1457_v3, %v1456_v2  ;;  %v1458_v6 = vld [vmem:[%s3456_s5 + $0x80] sm:$0xff] }
 0x223   :  { %v1344_v41 = vmax.f32 %v1334_v37, 0.0  ;;  %v2477_v8 = vpack.c.bf16 %v1459_v7, %v1458_v6  ;;  %2490 = vmatpush3.bf16.msra.mxu0 %v2489_v20 }
 0x224   :  { %v1345_v38 = vmax.f32 %v1335_v36, 0.0  ;;  %2449 = vmatprep.subr.bf16.mxu1 %v2448_v35  ;;  %2491 = vmatprep.subr.bf16.mxu0 %v2561_v0 }
 0x225   :  { %2451 = vmatpush1.bf16.msra.mxu1 %v2450_v33 }
 0x226   :  { %1367 = vmatprep.subr.mxu1 %v1345_v38 }
 0x227   :  { %2493 = vmatpush3.bf16.msra.mxu0 %v2492_v23 }
 0x228   :  { %2494 = vmatprep.subr.bf16.mxu0 %v2561_v0 }
 0x229   :  { %1368 = vmatpush1.msra.mxu1 %v1344_v41 }
 0x22a   :  { %1998 = vmatmul.mubr.msk.f32.vlgmr.msra.gmra.mrb[40].mxu1 %vm1349_vm4, %v1346_v42  ;;  %2452 = vmatprep.subr.bf16.mxu1 %v2561_v0 }
 0x22b   :  { %1429 = vmatprep.mubr.f32.mxu1 %v2563_v4  ;;  %2454 = vmatpush1.bf16.msra.mxu1 %v2453_v43 }
 0x22c   :  { %2455 = vmatprep.subr.bf16.mxu1 %v2561_v0  ;;  %2496 = vmatpush3.bf16.msra.mxu0 %v2495_v26 }
 0x22e   :  { %1999 = vmatmul.mubr.msk.f32.gmra.mrb[42].mxu1 %vm1349_vm4, %v1347_v46 }
 0x22f   :  { %1435 = vmatprep.mubr.f32.mxu1 %v2563_v4  ;;  %2457 = vmatpush1.bf16.msra.mxu1 %v2456_v47 }
 0x230   :  { %2458 = vmatprep.subr.bf16.mxu1 %v2561_v0 }
 0x232   :  { %2000 = vmatmul.mubr.msk.f32.gmra.mrb[44].mxu1 %vm1349_vm4, %v1348_v50 }
 0x233   :  { %2460 = vmatpush1.bf16.msra.mxu1 %v2459_v51 }
 0x234   :  { %2461 = vmatprep.subr.bf16.mxu1 %v2561_v0 }
 0x237   :  { %2463 = vmatpush1.bf16.msra.mxu1 %v2462_v54 }
 0x238   :  { %2464 = vmatprep.subr.bf16.mxu1 %v2561_v0 }
 0x23b   :  { %2466 = vmatpush1.bf16.msra.mxu1 %v2465_v57 }
 0x23c   :  { %2467 = vmatprep.subr.bf16.mxu1 %v2561_v0 }
 0x23f   :  { %2469 = vmatpush1.bf16.msra.mxu1 %v2468_v60 }
 0x240   :  { %2470 = vmatprep.subr.bf16.mxu1 %v2561_v0 }
 0x243   :  { %2472 = vmatpush1.bf16.msra.mxu1 %v2471_v1 }
 0x244   :  { %2473 = vmatprep.subr.bf16.mxu1 %v2561_v0 }
 0x247   :  { %2475 = vmatpush1.bf16.msra.mxu1 %v2474_v5 }
 0x248   :  { %2476 = vmatprep.subr.bf16.mxu1 %v2561_v0 }
 0x24b   :  { %2478 = vmatpush1.bf16.msra.mxu1 %v2477_v8 }
 0x24c   :  { %2479 = vmatprep.subr.bf16.mxu1 %v2561_v0 }
 0x24f   :  { %2481 = vmatpush1.bf16.msra.mxu1 %v2480_v11 }
 0x250   :  { %2497 = vmatprep.subr.bf16.mxu1 %v2561_v0 }
 0x2fd   :  { %v1425_v27 = vpop.f32.mrb[40].mxu1 }
 0x2fe   :  { %v1427_v28 = vpop.f32.mrb[41].mxu1 }
 0x2ff   :  { %2001 = vmatprep.mubr.msk.f32.mxu1 %vm1462_vm5, %v1427_v28 }
 0x300   :  { %1537 = vmatmul.mubr.f32.vlgmr.msra.gmra.mrb[46].mxu1 %v1425_v27 }
 0x301   :  { %v1431_v29 = vpop.f32.mrb[42].mxu1  ;;  %2499 = vmatpush3.bf16.msra.mxu1 %v2483_v15 }
 0x302   :  { %v1433_v30 = vpop.f32.mrb[43].mxu1  ;;  %2500 = vmatprep.subr.bf16.mxu1 %v2561_v0 }
 0x303   :  { %2002 = vmatprep.mubr.msk.f32.mxu1 %vm1462_vm5, %v1433_v30 }
 0x304   :  { %1542 = vmatmul.mubr.f32.gmra.mrb[48].mxu1 %v1431_v29 }
 0x305   :  { %v1437_v31 = vpop.f32.mrb[44].mxu1  ;;  %2502 = vmatpush3.bf16.msra.mxu1 %v2486_v17 }
 0x306   :  { %v1439_v32 = vpop.f32.mrb[45].mxu1  ;;  %2503 = vmatprep.subr.bf16.mxu1 %v2561_v0 }
 0x307   :  { %2003 = vmatprep.mubr.msk.f32.mxu1 %vm1462_vm5, %v1439_v32 }
 0x308   :  { %1547 = vmatmul.mubr.f32.gmra.mrb[50].mxu1 %v1437_v31 }
 0x309   :  { %2505 = vmatpush3.bf16.msra.mxu1 %v2489_v20  ;;  %2290 = vmatprep.mubr.msk.f32.mxu1 %vm2562_vm0, %v2563_v4 }
 0x30a   :  { %2506 = vmatprep.subr.bf16.mxu1 %v2561_v0 }
 0x30d   :  { %2508 = vmatpush3.bf16.msra.mxu1 %v2492_v23 }
 0x30e   :  { %2509 = vmatprep.subr.bf16.mxu1 %v2561_v0 }
 0x311   :  { %2511 = vmatpush3.bf16.msra.mxu1 %v2495_v26 }
 0x3d3   :  { %v1538_v33 = vpop.f32.mrb[46].mxu1 }
 0x3d4   :  { %2262 = vmatmul.mubr.msk.f32.vlgmr.msra.gmra.mrb[20].mxu0 %vm1562_vm6, %v1538_v33  ;;  %v1540_v34 = vpop.f32.mrb[47].mxu1 }
 0x3d5   :  { %2264 = vmatprep.mubr.msk.f32.mxu0 %vm2562_vm0, %v2563_v4 }
 0x3d7   :  { %v1543_v35 = vpop.f32.mrb[48].mxu1 }
 0x3d8   :  { %2265 = vmatmul.mubr.msk.f32.gmra.mrb[22].mxu0 %vm1562_vm6, %v1543_v35  ;;  %v1545_v36 = vpop.f32.mrb[49].mxu1 }
 0x3d9   :  { %2267 = vmatprep.mubr.msk.f32.mxu0 %vm2562_vm0, %v2563_v4 }
 0x3db   :  { %v1548_v37 = vpop.f32.mrb[50].mxu1 }
 0x3dc   :  { %2268 = vmatmul.mubr.msk.f32.gmra.mrb[24].mxu0 %vm1562_vm6, %v1548_v37  ;;  %v1550_v0 = vpop.f32.mrb[51].mxu1 }
 0x4a7   :  { %v1638_v38 = vpop.f32.mrb[20].mxu0 }
 0x4a8   :  { %v2263_v39 = vpop.f32.mrb[21].mxu0  ;;  %v1653_v41 = vsel %vm1652_vm7, %v1638_v38, 0.0 }
 0x4ab   :  { %v1643_v40 = vpop.f32.mrb[22].mxu0 }
 0x4ac   :  { %v1654_v42 = vsel %vm1652_vm7, %v1643_v40, 0.0  ;;  %v2266_v43 = vpop.f32.mrb[23].mxu0 }
 0x4ad   :  { %v1655_v44 = vadd.f32 %v1654_v42, %v1653_v41 }
 0x4af   :  { %v1648_v45 = vpop.f32.mrb[24].mxu0 }
 0x4b0   :  { %v1657_v46 = vsel %vm1656_vm8, %v1648_v45, 0.0  ;;  %v2269_v47 = vpop.f32.mrb[25].mxu0 }
 0x4b1   :  { %v1658_v48 = vadd.f32 %v1657_v46, %v1655_v44 }
 0x4b3   :  { %v1659_v49 = vrot.slane %v1658_v48, 4 }
 0x4b5   :  { %v1660_v50 = vadd.f32 %v1659_v49, %v1658_v48 }
 0x4b7   :  { %v1661_v51 = vrot.slane %v1660_v50, 2 }
 0x4b9   :  { %v1662_v52 = vadd.f32 %v1661_v51, %v1660_v50 }
 0x4bb   :  { %v1663_v53 = vrot.slane %v1662_v52, 1 }
 0x4bd   :  { %v1664_v54 = vadd.f32 %v1663_v53, %v1662_v52 }
 0x4bf   :  { %v1665_v55 = vmul.f32 0.01, %v1664_v54 }
 0x4c1   :  { %1673 = vrot.lane.b32.xlu1 %v1665_v55, %s2564_s6  ;;  %1667 = vrot.lane.b32.xlu0 %v1665_v55, %s2565_s22 }
 0x4c5   :  { %1676 = vrot.lane.b32.xlu1 %v1665_v55, %s2566_s23  ;;  %1670 = vrot.lane.b32.xlu0 %v1665_v55, %s2567_s24 }
 0x533   :  { %v1674_v56 = vpop.permute.xlu1 %1673  ;;  %v1668_v57 = vpop.permute.xlu0 %1667 }
 0x534   :  { %v1679_v58 = vsel %vm1652_vm7, %v1665_v55, %v1668_v57 }
 0x537   :  { %v1671_v59 = vpop.permute.xlu0 %1670  ;;  %v1677_v61 = vpop.permute.xlu1 %1676 }
 0x538   :  { %v1680_v60 = vsel %vm1462_vm5, %v1679_v58, %v1671_v59 }
 0x539   :  { %v1682_v62 = vsel %vm1681_vm9, %v1680_v60, %v1674_v56 }
 0x53a   :  { %v1684_v1 = vsel %vm1683_vm10, %v1682_v62, %v1677_v61 }
 0x53b   :  { %v1688_v2 = vrot.slane %v1684_v1, %v3269_v63 }
 0x53d   :  { %v1689_v3 = vsub.f32 %v1538_v33, %v1688_v2  ;;  %v1690_v6 = vsub.f32 %v1543_v35, %v1688_v2  ;;  %v1691_v8 = vsub.f32 %v1548_v37, %v1688_v2 }
 0x53f   :  { %v1692_v5 = vmul.f32 %v1689_v3, %v1689_v3  ;;  %v1693_v7 = vmul.f32 %v1690_v6, %v1690_v6  ;;  %v1694_v9 = vmul.f32 %v1691_v8, %v1691_v8 }
 0x541   :  { %2291 = vmatmul.mubr.msk.f32.vlgmr.msra.gmra.mrb[52].mxu1 %vm1562_vm6, %v1692_v5 }
 0x542   :  { %2293 = vmatprep.mubr.msk.f32.mxu1 %vm2562_vm0, %v2563_v4 }
 0x545   :  { %2294 = vmatmul.mubr.msk.f32.gmra.mrb[54].mxu1 %vm1562_vm6, %v1693_v7 }
 0x546   :  { %2296 = vmatprep.mubr.msk.f32.mxu1 %vm2562_vm0, %v2563_v4 }
 0x549   :  { %2297 = vmatmul.mubr.msk.f32.gmra.mrb[56].mxu1 %vm1562_vm6, %v1694_v9 }
 0x614   :  { %v1770_v10 = vpop.f32.mrb[52].mxu1 }
 0x615   :  { %v2292_v11 = vpop.f32.mrb[53].mxu1  ;;  %v1784_v13 = vsel %vm1652_vm7, %v1770_v10, 0.0 }
 0x618   :  { %v1775_v12 = vpop.f32.mrb[54].mxu1 }
 0x619   :  { %v1785_v14 = vsel %vm1652_vm7, %v1775_v12, 0.0  ;;  %v2295_v15 = vpop.f32.mrb[55].mxu1 }
 0x61a   :  { %v1786_v16 = vadd.f32 %v1785_v14, %v1784_v13 }
 0x61c   :  { %v1780_v17 = vpop.f32.mrb[56].mxu1 }
 0x61d   :  { %v1787_v18 = vsel %vm1656_vm8, %v1780_v17, 0.0  ;;  %v2298_v19 = vpop.f32.mrb[57].mxu1 }
 0x61e   :  { %v1788_v20 = vadd.f32 %v1787_v18, %v1786_v16 }
 0x620   :  { %v1789_v21 = vrot.slane %v1788_v20, 4 }
 0x622   :  { %v1790_v22 = vadd.f32 %v1789_v21, %v1788_v20 }
 0x624   :  { %v1791_v4 = vrot.slane %v1790_v22, 2 }
 0x626   :  { %v1792_v23 = vadd.f32 %v1791_v4, %v1790_v22 }
 0x628   :  { %v1793_v24 = vrot.slane %v1792_v23, 1 }
 0x62a   :  { %v1794_v25 = vadd.f32 %v1793_v24, %v1792_v23 }
 0x62c   :  { %v1795_v26 = vmul.f32 0.01, %v1794_v25 }
 0x62e   :  { %v1796_v27 = vadd.f32 1e-05, %v1795_v26 }
 0x630   :  { %2559 = vrsqrt.f32 %v1796_v27 }
 0x63a   :  { %v2560_v28 = vpop.eup %2559 }
 0x63b   :  { %1802 = vrot.lane.b32.xlu1 %v2560_v28, %s2567_s24  ;;  %1799 = vrot.lane.b32.xlu0 %v2560_v28, %s2565_s22 }
 0x63f   :  { %1808 = vrot.lane.b32.xlu1 %v2560_v28, %s2566_s23  ;;  %1805 = vrot.lane.b32.xlu0 %v2560_v28, %s2564_s6 }
 0x6ad   :  { %v1803_v29 = vpop.permute.xlu1 %1802  ;;  %v1800_v30 = vpop.permute.xlu0 %1799 }
 0x6ae   :  { %v1811_v31 = vsel %vm1652_vm7, %v2560_v28, %v1800_v30 }
 0x6af   :  { %v1812_v33 = vsel %vm1462_vm5, %v1811_v31, %v1803_v29 }
 0x6b1   :  { %v1809_v32 = vpop.permute.xlu1 %1808  ;;  %v1806_v34 = vpop.permute.xlu0 %1805 }
 0x6b2   :  { %v1813_v35 = vsel %vm1681_vm9, %v1812_v33, %v1806_v34 }
 0x6b3   :  { %v1814_v36 = vsel %vm1683_vm10, %v1813_v35, %v1809_v32 }
 0x6b4   :  { %v1818_v37 = vrot.slane %v1814_v36, %v3269_v63 }
 0x6b6   :  { %v1819_v0 = vmul.f32 %v1818_v37, %v1689_v3  ;;  %v1820_v38 = vmul.f32 %v1818_v37, %v1690_v6  ;;  %v1821_v39 = vmul.f32 %v1818_v37, %v1691_v8 }
 0x6b8   :  { %1822 = vst.msk [vmem:[%s3459_s7] sm:$0xff] %vm1562_vm6, %v1819_v0  ;;  %1823 = vst.msk [vmem:[%s3459_s7 + $0x8] sm:$0xff] %vm1562_vm6, %v1820_v38 }
 0x6b9   :  { %1825 = vst.msk [vmem:[%s3459_s7 + $0x10] sm:$0xf] %vm1824_vm11, %v1821_v39 }

</bundles_post_ra>
